<compile_context>
chip_gen: v7x
topology: tpu7x:2x2x1
jax: 0.10.0
libtpu: 0.0.40
codegen_flags: <defaults>
</compile_context>

<pallas_src>
import jax
import jax.numpy as jnp
import numpy as np
from jax.experimental import pallas as pl
from jax.experimental.pallas import tpu as pltpu


# ----------------------------- in-kernel math helpers -----------------------------

def _layer_norm(h, w_ref, b_ref, eps=1e-6):
    # FP32_Layernorm semantics: fp32 math, population variance, eps=1e-6
    mu = jnp.mean(h, axis=-1, keepdims=True)
    var = jnp.mean(jnp.square(h - mu), axis=-1, keepdims=True)
    return (h - mu) * jax.lax.rsqrt(var + eps) * w_ref[...] + b_ref[...]


def _gelu_tanh(x):
    # nn.GELU(approximate='tanh'), fp32
    c = jnp.float32(0.7978845608028654)  # sqrt(2/pi)
    return 0.5 * x * (1.0 + jnp.tanh(c * (x + 0.044715 * x * x * x)))


def _mm(a, w_ref, b_ref):
    # bf16 operands -> f32 MXU accumulation -> f32 bias add.
    return jnp.dot(a.astype(jnp.bfloat16), w_ref[...],
                   preferred_element_type=jnp.float32) + b_ref[...]


def _mha(q, k, v, num_heads, head_dim):
    # q: (M, D) f32 (scale already folded into the projection), k/v: (L, D) f32.
    # Heads become the leading batch dim of one batched dot_general per matmul
    # (replaces the per-head python loop + concatenate).
    M = q.shape[0]
    L = k.shape[0]
    qh = jnp.transpose(q.reshape(M, num_heads, head_dim), (1, 0, 2)).astype(jnp.bfloat16)
    kh = jnp.transpose(k.reshape(L, num_heads, head_dim), (1, 0, 2)).astype(jnp.bfloat16)
    vh = jnp.transpose(v.reshape(L, num_heads, head_dim), (1, 0, 2)).astype(jnp.bfloat16)
    s = jnp.einsum("hqd,hkd->hqk", qh, kh, preferred_element_type=jnp.float32)  # (H,M,L)
    m = jnp.max(s, axis=-1, keepdims=True)
    e = jnp.exp(s - m)                                                           # EUP
    inv = pl.reciprocal(jnp.sum(e, axis=-1, keepdims=True), approx=True)         # EUP
    p = e * inv                                                                  # f32 probs
    ctx = jnp.einsum("hqk,hkd->hqd", p.astype(jnp.bfloat16), vh,
                     preferred_element_type=jnp.float32)                         # (H,M,hd)
    return jnp.transpose(ctx, (1, 0, 2)).reshape(M, num_heads * head_dim)        # (M, D)


# ----------------------------------- wrapper -----------------------------------

def hunyuan_dit_block(x, c, text, params, num_heads, q_tile=8):
    B, N, D = x.shape
    _, T, Dt = text.shape
    Ce = c.shape[-1]
    hd = D // num_heads
    scale = float(hd) ** -0.5
    assert N % q_tile == 0 and q_tile % 8 == 0

    f32 = jnp.float32
    bf16 = jnp.bfloat16

    # Split packed projections on the host; fold the 1/sqrt(hd) scale into the q
    # projections (weight + bias); cast matmul weights to bf16 (LN params / biases f32).
    wqkv, bqkv = params["wqkv"], params["bqkv"]
    kvw, kvb = params["kv_w"], params["kv_b"]
    weights = [
        params["norm1_w"].astype(f32), params["norm1_b"].astype(f32),
        params["norm2_w"].astype(f32), params["norm2_b"].astype(f32),
        params["norm3_w"].astype(f32), params["norm3_b"].astype(f32),
        params["mod_w"].astype(bf16), params["mod_b"].astype(f32),
        (wqkv[:, :D] * scale).astype(bf16), (bqkv[:, :D] * scale).astype(f32),
        wqkv[:, D:2 * D].astype(bf16), bqkv[:, D:2 * D].astype(f32),
        wqkv[:, 2 * D:].astype(bf16), bqkv[:, 2 * D:].astype(f32),
        params["attn1_ow"].astype(bf16), params["attn1_ob"].astype(f32),
        (params["q_w"] * scale).astype(bf16), (params["q_b"] * scale).astype(f32),
        kvw[:, :D].astype(bf16), kvb[:, :D].astype(f32),
        kvw[:, D:].astype(bf16), kvb[:, D:].astype(f32),
        params["attn2_ow"].astype(bf16), params["attn2_ob"].astype(f32),
        params["fc1_w"].astype(bf16), params["fc1_b"].astype(f32),
        params["fc2_w"].astype(bf16), params["fc2_b"].astype(f32),
    ]

    c3 = c.astype(f32).reshape(B, 1, Ce)
    text_b = text.astype(bf16)

    def kernel(x_ref, c_ref, y_ref,
               n1w, n1b, n2w, n2b, n3w, n3b,
               modw, modb,
               wq, bq, wk, bk, wv, bv, o1w, o1b,
               qw, qb, k2w, k2b, v2w, v2b, o2w, o2b,
               f1w, f1b, f2w, f2b,
               out_ref):
        row = pl.multiple_of(pl.program_id(1) * q_tile, q_tile)

        # default_modulation = FP32_SiLU -> Linear(c_emb, hidden)
        cb = c_ref[0]                             # (1, Ce) f32
        silu_c = cb * jax.nn.sigmoid(cb)          # fp32 SiLU
        shift_msa = _mm(silu_c, modw, modb)       # (1, D) f32

        # --------- self attention: x = x + attn1(norm1(x) + shift_msa) ---------
        x_full = x_ref[0]                                    # (N, D)  f32 (all tokens)
        x_tile = x_ref[0, pl.ds(row, q_tile), :]             # (TQ, D) f32 residual rows
        h_full = _layer_norm(x_full, n1w, n1b) + shift_msa   # K/V need every token
        h_tile = _layer_norm(x_tile, n1w, n1b) + shift_msa   # Q only for this tile
        # TODO(synk): for production N, precompute K/V once (separate pipeline stage /
        # scratch) and stream KV tiles flash-style instead of re-projecting the full
        # sequence for every query tile.
        q1 = _mm(h_tile, wq, bq)          # (TQ, D) (scale folded into wq/bq)
        k1 = _mm(h_full, wk, bk)          # (N, D)
        v1 = _mm(h_full, wv, bv)          # (N, D)
        attn1 = _mha(q1, k1, v1, num_heads, hd)              # (TQ, D) f32
        xb = x_tile + _mm(attn1, o1w, o1b)

        # --------- cross attention: x = x + attn2(norm3(x), text_states) ---------
        yb = y_ref[0]                     # (T, Dt) bf16
        hq = _layer_norm(xb, n3w, n3b)
        q2 = _mm(hq, qw, qb)              # (TQ, D) (scale folded in)
        k2 = _mm(yb, k2w, k2b)            # (T, D)
        v2 = _mm(yb, v2w, v2b)            # (T, D)
        attn2 = _mha(q2, k2, v2, num_heads, hd)              # (TQ, D) f32
        xb = xb + _mm(attn2, o2w, o2b)

        # --------- MLP: x = x + mlp(norm2(x)) ---------
        hm = _layer_norm(xb, n2w, n2b)
        a = _gelu_tanh(_mm(hm, f1w, f1b))                    # (TQ, Dh) f32
        xb = xb + _mm(a, f2w, f2b)

        out_ref[0] = xb.astype(out_ref.dtype)

    in_specs = [
        pl.BlockSpec((1, N, D), lambda b, q: (b, 0, 0)),     # full sequence (self-attn K/V)
        pl.BlockSpec((1, 1, Ce), lambda b, q: (b, 0, 0)),
        pl.BlockSpec((1, T, Dt), lambda b, q: (b, 0, 0)),
    ] + [
        # TODO(synk): at production sizes (D~1408, Dh~5632) stream fc1/fc2/qkv weight
        # tiles (extra grid axis over Dh, or memory_space=pl.ANY + emit_pipeline)
        # instead of keeping whole matrices resident in VMEM.
        pl.BlockSpec(tuple(w.shape), lambda b, q: (0, 0)) for w in weights
    ]

    out = pl.pallas_call(
        kernel,
        out_shape=jax.ShapeDtypeStruct((B, N, D), f32),
        grid=(B, N // q_tile),
        in_specs=in_specs,
        out_specs=pl.BlockSpec((1, q_tile, D), lambda b, q: (b, q, 0)),
        compiler_params=pltpu.CompilerParams(
            dimension_semantics=("parallel", "parallel"),
            vmem_limit_bytes=32 * 1024 * 1024,
        ),
    )(x.astype(f32), c3, text_b, *weights)
    return out


# ----------------------------- pure-JAX reference (f32) -----------------------------

def reference_forward(x, c, text, params, num_heads):
    B, N, D = x.shape
    T = text.shape[1]
    hd = D // num_heads
    scale = float(hd) ** -0.5

    def ln(h, w, b, eps=1e-6):
        mu = jnp.mean(h, axis=-1, keepdims=True)
        var = jnp.mean(jnp.square(h - mu), axis=-1, keepdims=True)
        return (h - mu) * jax.lax.rsqrt(var + eps) * w + b

    p = params
    shift = (jax.nn.silu(c) @ p["mod_w"] + p["mod_b"])[:, None, :]        # (B,1,D)

    h = ln(x, p["norm1_w"], p["norm1_b"]) + shift
    qkv = (h @ p["wqkv"] + p["bqkv"]).reshape(B, N, 3, num_heads, hd)
    q, k, v = qkv[:, :, 0], qkv[:, :, 1], qkv[:, :, 2]
    attn = jax.nn.softmax(jnp.einsum("bnhd,bmhd->bhnm", q * scale, k), axis=-1)
    o = jnp.einsum("bhnm,bmhd->bnhd", attn, v).reshape(B, N, D)
    x = x + o @ p["attn1_ow"] + p["attn1_ob"]

    hq = ln(x, p["norm3_w"], p["norm3_b"])
    q = (hq @ p["q_w"] + p["q_b"]).reshape(B, N, num_heads, hd)
    kv = (text @ p["kv_w"] + p["kv_b"]).reshape(B, T, 2, num_heads, hd)
    k, v = kv[:, :, 0], kv[:, :, 1]
    attn = jax.nn.softmax(jnp.einsum("bnhd,bmhd->bhnm", q * scale, k), axis=-1)
    o = jnp.einsum("bhnm,bmhd->bnhd", attn, v).reshape(B, N, D)
    x = x + o @ p["attn2_ow"] + p["attn2_ob"]

    hm = ln(x, p["norm2_w"], p["norm2_b"])
    a = _gelu_tanh(hm @ p["fc1_w"] + p["fc1_b"])
    x = x + a @ p["fc2_w"] + p["fc2_b"]
    return x


# ----------------------------------- params -----------------------------------

def make_params(key, D, Ce, Dt, Dh):
    ks = jax.random.split(key, 16)
    nrm = lambda k, shape, s=0.05: (s * jax.random.normal(k, shape)).astype(jnp.float32)
    params = {
        "norm1_w": 1.0 + nrm(ks[0], (1, D), 0.02), "norm1_b": nrm(ks[1], (1, D), 0.02),
        "norm2_w": 1.0 + nrm(ks[2], (1, D), 0.02), "norm2_b": nrm(ks[3], (1, D), 0.02),
        "norm3_w": 1.0 + nrm(ks[4], (1, D), 0.02), "norm3_b": nrm(ks[5], (1, D), 0.02),
        "mod_w": nrm(ks[6], (Ce, D)), "mod_b": nrm(ks[6], (1, D), 0.01),
        "wqkv": nrm(ks[7], (D, 3 * D)), "bqkv": nrm(ks[7], (1, 3 * D), 0.01),
        "attn1_ow": nrm(ks[8], (D, D)), "attn1_ob": nrm(ks[8], (1, D), 0.01),
        "q_w": nrm(ks[9], (D, D)), "q_b": nrm(ks[9], (1, D), 0.01),
        "kv_w": nrm(ks[10], (Dt, 2 * D)), "kv_b": nrm(ks[10], (1, 2 * D), 0.01),
        "attn2_ow": nrm(ks[11], (D, D)), "attn2_ob": nrm(ks[11], (1, D), 0.01),
        "fc1_w": nrm(ks[12], (D, Dh)), "fc1_b": nrm(ks[12], (1, Dh), 0.01),
        "fc2_w": nrm(ks[13], (Dh, D)), "fc2_b": nrm(ks[13], (1, D), 0.01),
    }
    return params


# ------------------------------------- main -------------------------------------

if __name__ == "__main__":
    # hidden_size=32, c_emb_size=32, num_heads=4 (head_dim=8), mlp_ratio=4, text_states_dim=64
    B, N, D, H = 2, 16, 32, 4
    Ce, T, Dt = 32, 8, 64
    Dh = int(D * 4.0)

    key = jax.random.PRNGKey(0)
    k_x, k_c, k_t, k_p = jax.random.split(key, 4)
    x = jax.random.normal(k_x, (B, N, D), jnp.float32)
    c = jax.random.normal(k_c, (B, Ce), jnp.float32)
    text_states = jax.random.normal(k_t, (B, T, Dt), jnp.float32)
    params = make_params(k_p, D, Ce, Dt, Dh)

    out = hunyuan_dit_block(x, c, text_states, params, num_heads=H, q_tile=8)
    out = jax.block_until_ready(out)

    ref = reference_forward(x, c, text_states, params, num_heads=H)
    # bf16 matmul operands + approx-reciprocal softmax vs. pure-f32 reference
    np.testing.assert_allclose(np.asarray(out), np.asarray(ref), rtol=2e-2, atol=2e-2)

    print("KERNEL_OK")
</pallas_src>

<mosaic_0001>
module attributes {stable_mosaic.version = 11 : i64} {
  func.func @kernel(%arg0: i32, %arg1: i32, %arg2: memref<1x16x32xf32, #tpu.memory_space<vmem>>, %arg3: memref<1x1x32xf32, #tpu.memory_space<vmem>>, %arg4: memref<1x8x64xbf16, #tpu.memory_space<vmem>>, %arg5: memref<1x32xf32, #tpu.memory_space<vmem>>, %arg6: memref<1x32xf32, #tpu.memory_space<vmem>>, %arg7: memref<1x32xf32, #tpu.memory_space<vmem>>, %arg8: memref<1x32xf32, #tpu.memory_space<vmem>>, %arg9: memref<1x32xf32, #tpu.memory_space<vmem>>, %arg10: memref<1x32xf32, #tpu.memory_space<vmem>>, %arg11: memref<32x32xbf16, #tpu.memory_space<vmem>>, %arg12: memref<1x32xf32, #tpu.memory_space<vmem>>, %arg13: memref<32x32xbf16, #tpu.memory_space<vmem>>, %arg14: memref<1x32xf32, #tpu.memory_space<vmem>>, %arg15: memref<32x32xbf16, #tpu.memory_space<vmem>>, %arg16: memref<1x32xf32, #tpu.memory_space<vmem>>, %arg17: memref<32x32xbf16, #tpu.memory_space<vmem>>, %arg18: memref<1x32xf32, #tpu.memory_space<vmem>>, %arg19: memref<32x32xbf16, #tpu.memory_space<vmem>>, %arg20: memref<1x32xf32, #tpu.memory_space<vmem>>, %arg21: memref<32x32xbf16, #tpu.memory_space<vmem>>, %arg22: memref<1x32xf32, #tpu.memory_space<vmem>>, %arg23: memref<64x32xbf16, #tpu.memory_space<vmem>>, %arg24: memref<1x32xf32, #tpu.memory_space<vmem>>, %arg25: memref<64x32xbf16, #tpu.memory_space<vmem>>, %arg26: memref<1x32xf32, #tpu.memory_space<vmem>>, %arg27: memref<32x32xbf16, #tpu.memory_space<vmem>>, %arg28: memref<1x32xf32, #tpu.memory_space<vmem>>, %arg29: memref<32x128xbf16, #tpu.memory_space<vmem>>, %arg30: memref<1x128xf32, #tpu.memory_space<vmem>>, %arg31: memref<128x32xbf16, #tpu.memory_space<vmem>>, %arg32: memref<1x32xf32, #tpu.memory_space<vmem>>, %arg33: memref<1x8x32xf32, #tpu.memory_space<vmem>>) attributes {dimension_semantics = [#tpu.dimension_semantics<parallel>, #tpu.dimension_semantics<parallel>], iteration_bounds = array<i64: 2, 2>, scalar_prefetch = 0 : i64, scratch_operands = 0 : i64, tpu.core_type = #tpu.core_type<tc>, window_params = [{transform_indices = @transform_0, window_bounds = array<i64: 1, 16, 32>}, {transform_indices = @transform_1, window_bounds = array<i64: 1, 1, 32>}, {transform_indices = @transform_2, window_bounds = array<i64: 1, 8, 64>}, {pipeline_mode = #tpu.pipeline_mode<synchronous>, transform_indices = @transform_3, window_bounds = array<i64: 1, 32>}, {pipeline_mode = #tpu.pipeline_mode<synchronous>, transform_indices = @transform_4, window_bounds = array<i64: 1, 32>}, {pipeline_mode = #tpu.pipeline_mode<synchronous>, transform_indices = @transform_5, window_bounds = array<i64: 1, 32>}, {pipeline_mode = #tpu.pipeline_mode<synchronous>, transform_indices = @transform_6, window_bounds = array<i64: 1, 32>}, {pipeline_mode = #tpu.pipeline_mode<synchronous>, transform_indices = @transform_7, window_bounds = array<i64: 1, 32>}, {pipeline_mode = #tpu.pipeline_mode<synchronous>, transform_indices = @transform_8, window_bounds = array<i64: 1, 32>}, {pipeline_mode = #tpu.pipeline_mode<synchronous>, transform_indices = @transform_9, window_bounds = array<i64: 32, 32>}, {pipeline_mode = #tpu.pipeline_mode<synchronous>, transform_indices = @transform_10, window_bounds = array<i64: 1, 32>}, {pipeline_mode = #tpu.pipeline_mode<synchronous>, transform_indices = @transform_11, window_bounds = array<i64: 32, 32>}, {pipeline_mode = #tpu.pipeline_mode<synchronous>, transform_indices = @transform_12, window_bounds = array<i64: 1, 32>}, {pipeline_mode = #tpu.pipeline_mode<synchronous>, transform_indices = @transform_13, window_bounds = array<i64: 32, 32>}, {pipeline_mode = #tpu.pipeline_mode<synchronous>, transform_indices = @transform_14, window_bounds = array<i64: 1, 32>}, {pipeline_mode = #tpu.pipeline_mode<synchronous>, transform_indices = @transform_15, window_bounds = array<i64: 32, 32>}, {pipeline_mode = #tpu.pipeline_mode<synchronous>, transform_indices = @transform_16, window_bounds = array<i64: 1, 32>}, {pipeline_mode = #tpu.pipeline_mode<synchronous>, transform_indices = @transform_17, window_bounds = array<i64: 32, 32>}, {pipeline_mode = #tpu.pipeline_mode<synchronous>, transform_indices = @transform_18, window_bounds = array<i64: 1, 32>}, {pipeline_mode = #tpu.pipeline_mode<synchronous>, transform_indices = @transform_19, window_bounds = array<i64: 32, 32>}, {pipeline_mode = #tpu.pipeline_mode<synchronous>, transform_indices = @transform_20, window_bounds = array<i64: 1, 32>}, {pipeline_mode = #tpu.pipeline_mode<synchronous>, transform_indices = @transform_21, window_bounds = array<i64: 64, 32>}, {pipeline_mode = #tpu.pipeline_mode<synchronous>, transform_indices = @transform_22, window_bounds = array<i64: 1, 32>}, {pipeline_mode = #tpu.pipeline_mode<synchronous>, transform_indices = @transform_23, window_bounds = array<i64: 64, 32>}, {pipeline_mode = #tpu.pipeline_mode<synchronous>, transform_indices = @transform_24, window_bounds = array<i64: 1, 32>}, {pipeline_mode = #tpu.pipeline_mode<synchronous>, transform_indices = @transform_25, window_bounds = array<i64: 32, 32>}, {pipeline_mode = #tpu.pipeline_mode<synchronous>, transform_indices = @transform_26, window_bounds = array<i64: 1, 32>}, {pipeline_mode = #tpu.pipeline_mode<synchronous>, transform_indices = @transform_27, window_bounds = array<i64: 32, 128>}, {pipeline_mode = #tpu.pipeline_mode<synchronous>, transform_indices = @transform_28, window_bounds = array<i64: 1, 128>}, {pipeline_mode = #tpu.pipeline_mode<synchronous>, transform_indices = @transform_29, window_bounds = array<i64: 128, 32>}, {pipeline_mode = #tpu.pipeline_mode<synchronous>, transform_indices = @transform_30, window_bounds = array<i64: 1, 32>}, {transform_indices = @transform_31, window_bounds = array<i64: 1, 8, 32>}]} {
    %c8_i32 = arith.constant 8 : i32
    %0 = arith.muli %arg1, %c8_i32 : i32
    %1 = tpu.assume_multiple %0, 8 : i32
    %c0 = arith.constant 0 : index
    %c0_0 = arith.constant 0 : index
    %c0_1 = arith.constant 0 : index
    %2 = vector.load %arg3[%c0, %c0_0, %c0_1] : memref<1x1x32xf32, #tpu.memory_space<vmem>>, vector<1x1x32xf32>
    %3 = vector.shape_cast %2 : vector<1x1x32xf32> to vector<1x32xf32>
    %4 = arith.negf %3 : vector<1x32xf32>
    %5 = math.exp %4 : vector<1x32xf32>
    %cst = arith.constant 1.000000e+00 : f32
    %6 = vector.broadcast %cst : f32 to vector<1x32xf32>
    %7 = arith.addf %6, %5 : vector<1x32xf32>
    %8 = arith.divf %6, %7 : vector<1x32xf32>
    %9 = arith.mulf %3, %8 : vector<1x32xf32>
    %10 = arith.truncf %9 : vector<1x32xf32> to vector<1x32xbf16>
    %c0_2 = arith.constant 0 : index
    %c0_3 = arith.constant 0 : index
    %11 = vector.load %arg11[%c0_2, %c0_3] : memref<32x32xbf16, #tpu.memory_space<vmem>>, vector<32x32xbf16>
    %cst_4 = arith.constant dense<0.000000e+00> : vector<1x32xf32>
    %12 = tpu.matmul %10, %11, %cst_4 {dimension_numbers = #tpu.dot_dimension_numbers<[1], [0], [0], [1], [0, 0, 1, 1], [], []>} : vector<1x32xbf16>, vector<32x32xbf16>, vector<1x32xf32> -> vector<1x32xf32>
    %c0_5 = arith.constant 0 : index
    %c0_6 = arith.constant 0 : index
    %13 = vector.load %arg12[%c0_5, %c0_6] : memref<1x32xf32, #tpu.memory_space<vmem>>, vector<1x32xf32>
    %14 = arith.addf %12, %13 : vector<1x32xf32>
    %c0_7 = arith.constant 0 : index
    %c0_8 = arith.constant 0 : index
    %c0_9 = arith.constant 0 : index
    %15 = vector.load %arg2[%c0_7, %c0_8, %c0_9] : memref<1x16x32xf32, #tpu.memory_space<vmem>>, vector<1x16x32xf32>
    %16 = vector.shape_cast %15 : vector<1x16x32xf32> to vector<16x32xf32>
    %c0_10 = arith.constant 0 : index
    %17 = arith.index_cast %1 : i32 to index
    %c0_11 = arith.constant 0 : index
    %18 = vector.load %arg2[%c0_10, %17, %c0_11] : memref<1x16x32xf32, #tpu.memory_space<vmem>>, vector<1x8x32xf32>
    %19 = vector.shape_cast %18 : vector<1x8x32xf32> to vector<8x32xf32>
    %cst_12 = arith.constant dense<0.000000e+00> : vector<16xf32>
    %20 = vector.multi_reduction <add>, %16, %cst_12 [1] : vector<16x32xf32> to vector<16xf32>
    %21 = vector.shape_cast %20 : vector<16xf32> to vector<16x1xf32>
    %cst_13 = arith.constant 3.200000e+01 : f32
    %22 = vector.broadcast %cst_13 : f32 to vector<16x1xf32>
    %23 = arith.divf %21, %22 : vector<16x1xf32>
    %24 = vector.broadcast %23 : vector<16x1xf32> to vector<16x32xf32>
    %25 = arith.subf %16, %24 : vector<16x32xf32>
    %26 = arith.mulf %25, %25 : vector<16x32xf32>
    %cst_14 = arith.constant dense<0.000000e+00> : vector<16xf32>
    %27 = vector.multi_reduction <add>, %26, %cst_14 [1] : vector<16x32xf32> to vector<16xf32>
    %28 = vector.shape_cast %27 : vector<16xf32> to vector<16x1xf32>
    %cst_15 = arith.constant 3.200000e+01 : f32
    %29 = vector.broadcast %cst_15 : f32 to vector<16x1xf32>
    %30 = arith.divf %28, %29 : vector<16x1xf32>
    %31 = vector.broadcast %23 : vector<16x1xf32> to vector<16x32xf32>
    %32 = arith.subf %16, %31 : vector<16x32xf32>
    %cst_16 = arith.constant 9.99999997E-7 : f32
    %33 = vector.broadcast %cst_16 : f32 to vector<16x1xf32>
    %34 = arith.addf %30, %33 : vector<16x1xf32>
    %35 = math.rsqrt %34 : vector<16x1xf32>
    %36 = vector.broadcast %35 : vector<16x1xf32> to vector<16x32xf32>
    %37 = arith.mulf %32, %36 : vector<16x32xf32>
    %c0_17 = arith.constant 0 : index
    %c0_18 = arith.constant 0 : index
    %38 = vector.load %arg5[%c0_17, %c0_18] : memref<1x32xf32, #tpu.memory_space<vmem>>, vector<1x32xf32>
    %39 = vector.broadcast %38 : vector<1x32xf32> to vector<16x32xf32>
    %40 = arith.mulf %37, %39 : vector<16x32xf32>
    %c0_19 = arith.constant 0 : index
    %c0_20 = arith.constant 0 : index
    %41 = vector.load %arg6[%c0_19, %c0_20] : memref<1x32xf32, #tpu.memory_space<vmem>>, vector<1x32xf32>
    %42 = vector.broadcast %41 : vector<1x32xf32> to vector<16x32xf32>
    %43 = arith.addf %40, %42 : vector<16x32xf32>
    %44 = vector.broadcast %14 : vector<1x32xf32> to vector<16x32xf32>
    %45 = arith.addf %43, %44 : vector<16x32xf32>
    %cst_21 = arith.constant dense<0.000000e+00> : vector<8xf32>
    %46 = vector.multi_reduction <add>, %19, %cst_21 [1] : vector<8x32xf32> to vector<8xf32>
    %47 = vector.shape_cast %46 : vector<8xf32> to vector<8x1xf32>
    %cst_22 = arith.constant 3.200000e+01 : f32
    %48 = vector.broadcast %cst_22 : f32 to vector<8x1xf32>
    %49 = arith.divf %47, %48 : vector<8x1xf32>
    %50 = vector.broadcast %49 : vector<8x1xf32> to vector<8x32xf32>
    %51 = arith.subf %19, %50 : vector<8x32xf32>
    %52 = arith.mulf %51, %51 : vector<8x32xf32>
    %cst_23 = arith.constant dense<0.000000e+00> : vector<8xf32>
    %53 = vector.multi_reduction <add>, %52, %cst_23 [1] : vector<8x32xf32> to vector<8xf32>
    %54 = vector.shape_cast %53 : vector<8xf32> to vector<8x1xf32>
    %cst_24 = arith.constant 3.200000e+01 : f32
    %55 = vector.broadcast %cst_24 : f32 to vector<8x1xf32>
    %56 = arith.divf %54, %55 : vector<8x1xf32>
    %57 = vector.broadcast %49 : vector<8x1xf32> to vector<8x32xf32>
    %58 = arith.subf %19, %57 : vector<8x32xf32>
    %cst_25 = arith.constant 9.99999997E-7 : f32
    %59 = vector.broadcast %cst_25 : f32 to vector<8x1xf32>
    %60 = arith.addf %56, %59 : vector<8x1xf32>
    %61 = math.rsqrt %60 : vector<8x1xf32>
    %62 = vector.broadcast %61 : vector<8x1xf32> to vector<8x32xf32>
    %63 = arith.mulf %58, %62 : vector<8x32xf32>
    %c0_26 = arith.constant 0 : index
    %c0_27 = arith.constant 0 : index
    %64 = vector.load %arg5[%c0_26, %c0_27] : memref<1x32xf32, #tpu.memory_space<vmem>>, vector<1x32xf32>
    %65 = vector.broadcast %64 : vector<1x32xf32> to vector<8x32xf32>
    %66 = arith.mulf %63, %65 : vector<8x32xf32>
    %c0_28 = arith.constant 0 : index
    %c0_29 = arith.constant 0 : index
    %67 = vector.load %arg6[%c0_28, %c0_29] : memref<1x32xf32, #tpu.memory_space<vmem>>, vector<1x32xf32>
    %68 = vector.broadcast %67 : vector<1x32xf32> to vector<8x32xf32>
    %69 = arith.addf %66, %68 : vector<8x32xf32>
    %70 = vector.broadcast %14 : vector<1x32xf32> to vector<8x32xf32>
    %71 = arith.addf %69, %70 : vector<8x32xf32>
    %72 = arith.truncf %71 : vector<8x32xf32> to vector<8x32xbf16>
    %c0_30 = arith.constant 0 : index
    %c0_31 = arith.constant 0 : index
    %73 = vector.load %arg13[%c0_30, %c0_31] : memref<32x32xbf16, #tpu.memory_space<vmem>>, vector<32x32xbf16>
    %cst_32 = arith.constant dense<0.000000e+00> : vector<8x32xf32>
    %74 = tpu.matmul %72, %73, %cst_32 {dimension_numbers = #tpu.dot_dimension_numbers<[1], [0], [0], [1], [0, 0, 1, 1], [], []>} : vector<8x32xbf16>, vector<32x32xbf16>, vector<8x32xf32> -> vector<8x32xf32>
    %c0_33 = arith.constant 0 : index
    %c0_34 = arith.constant 0 : index
    %75 = vector.load %arg14[%c0_33, %c0_34] : memref<1x32xf32, #tpu.memory_space<vmem>>, vector<1x32xf32>
    %76 = vector.broadcast %75 : vector<1x32xf32> to vector<8x32xf32>
    %77 = arith.addf %74, %76 : vector<8x32xf32>
    %78 = arith.truncf %45 : vector<16x32xf32> to vector<16x32xbf16>
    %c0_35 = arith.constant 0 : index
    %c0_36 = arith.constant 0 : index
    %79 = vector.load %arg15[%c0_35, %c0_36] : memref<32x32xbf16, #tpu.memory_space<vmem>>, vector<32x32xbf16>
    %cst_37 = arith.constant dense<0.000000e+00> : vector<16x32xf32>
    %80 = tpu.matmul %78, %79, %cst_37 {dimension_numbers = #tpu.dot_dimension_numbers<[1], [0], [0], [1], [0, 0, 1, 1], [], []>} : vector<16x32xbf16>, vector<32x32xbf16>, vector<16x32xf32> -> vector<16x32xf32>
    %c0_38 = arith.constant 0 : index
    %c0_39 = arith.constant 0 : index
    %81 = vector.load %arg16[%c0_38, %c0_39] : memref<1x32xf32, #tpu.memory_space<vmem>>, vector<1x32xf32>
    %82 = vector.broadcast %81 : vector<1x32xf32> to vector<16x32xf32>
    %83 = arith.addf %80, %82 : vector<16x32xf32>
    %84 = arith.truncf %45 : vector<16x32xf32> to vector<16x32xbf16>
    %c0_40 = arith.constant 0 : index
    %c0_41 = arith.constant 0 : index
    %85 = vector.load %arg17[%c0_40, %c0_41] : memref<32x32xbf16, #tpu.memory_space<vmem>>, vector<32x32xbf16>
    %cst_42 = arith.constant dense<0.000000e+00> : vector<16x32xf32>
    %86 = tpu.matmul %84, %85, %cst_42 {dimension_numbers = #tpu.dot_dimension_numbers<[1], [0], [0], [1], [0, 0, 1, 1], [], []>} : vector<16x32xbf16>, vector<32x32xbf16>, vector<16x32xf32> -> vector<16x32xf32>
    %c0_43 = arith.constant 0 : index
    %c0_44 = arith.constant 0 : index
    %87 = vector.load %arg18[%c0_43, %c0_44] : memref<1x32xf32, #tpu.memory_space<vmem>>, vector<1x32xf32>
    %88 = vector.broadcast %87 : vector<1x32xf32> to vector<16x32xf32>
    %89 = arith.addf %86, %88 : vector<16x32xf32>
    %90 = vector.shape_cast %77 : vector<8x32xf32> to vector<8x4x8xf32>
    %91 = tpu.transpose %90, [1, 0, 2] : vector<8x4x8xf32> -> vector<4x8x8xf32>
    %92 = arith.truncf %91 : vector<4x8x8xf32> to vector<4x8x8xbf16>
    %93 = vector.shape_cast %83 : vector<16x32xf32> to vector<16x4x8xf32>
    %94 = tpu.transpose %93, [1, 0, 2] : vector<16x4x8xf32> -> vector<4x16x8xf32>
    %95 = arith.truncf %94 : vector<4x16x8xf32> to vector<4x16x8xbf16>
    %96 = vector.shape_cast %89 : vector<16x32xf32> to vector<16x4x8xf32>
    %97 = tpu.transpose %96, [1, 0, 2] : vector<16x4x8xf32> -> vector<4x16x8xf32>
    %98 = arith.truncf %97 : vector<4x16x8xf32> to vector<4x16x8xbf16>
    "tpu.trace_start"() <{level = 10 : i32, message = "hqd,hkd->hqk"}> : () -> ()
    %cst_45 = arith.constant dense<0.000000e+00> : vector<4x8x16xf32>
    %99 = tpu.matmul %92, %95, %cst_45 {dimension_numbers = #tpu.dot_dimension_numbers<[2], [2], [1], [1], [0, 0, 0, 1, 1, 1], [0], [0]>} : vector<4x8x8xbf16>, vector<4x16x8xbf16>, vector<4x8x16xf32> -> vector<4x8x16xf32>
    "tpu.trace_stop"() : () -> ()
    %cst_46 = arith.constant dense<0xFF800000> : vector<4x8xf32>
    %100 = vector.multi_reduction <maximumf>, %99, %cst_46 [2] : vector<4x8x16xf32> to vector<4x8xf32>
    %101 = vector.shape_cast %100 : vector<4x8xf32> to vector<4x8x1xf32>
    %102 = vector.broadcast %101 : vector<4x8x1xf32> to vector<4x8x16xf32>
    %103 = arith.subf %99, %102 : vector<4x8x16xf32>
    %104 = math.exp %103 : vector<4x8x16xf32>
    %cst_47 = arith.constant dense<0.000000e+00> : vector<4x8xf32>
    %105 = vector.multi_reduction <add>, %104, %cst_47 [2] : vector<4x8x16xf32> to vector<4x8xf32>
    %106 = vector.shape_cast %105 : vector<4x8xf32> to vector<4x8x1xf32>
    %107 = tpu.reciprocal %106 {approx = true} : vector<4x8x1xf32> -> vector<4x8x1xf32>
    %108 = vector.broadcast %107 : vector<4x8x1xf32> to vector<4x8x16xf32>
    %109 = arith.mulf %104, %108 : vector<4x8x16xf32>
    %110 = arith.truncf %109 : vector<4x8x16xf32> to vector<4x8x16xbf16>
    "tpu.trace_start"() <{level = 10 : i32, message = "hqk,hkd->hqd"}> : () -> ()
    %cst_48 = arith.constant dense<0.000000e+00> : vector<4x8x8xf32>
    %111 = tpu.matmul %110, %98, %cst_48 {dimension_numbers = #tpu.dot_dimension_numbers<[2], [1], [1], [2], [0, 0, 0, 1, 1, 2], [0], [0]>} : vector<4x8x16xbf16>, vector<4x16x8xbf16>, vector<4x8x8xf32> -> vector<4x8x8xf32>
    "tpu.trace_stop"() : () -> ()
    %112 = tpu.transpose %111, [1, 0, 2] : vector<4x8x8xf32> -> vector<8x4x8xf32>
    %113 = vector.shape_cast %112 : vector<8x4x8xf32> to vector<8x32xf32>
    %114 = arith.truncf %113 : vector<8x32xf32> to vector<8x32xbf16>
    %c0_49 = arith.constant 0 : index
    %c0_50 = arith.constant 0 : index
    %115 = vector.load %arg19[%c0_49, %c0_50] : memref<32x32xbf16, #tpu.memory_space<vmem>>, vector<32x32xbf16>
    %cst_51 = arith.constant dense<0.000000e+00> : vector<8x32xf32>
    %116 = tpu.matmul %114, %115, %cst_51 {dimension_numbers = #tpu.dot_dimension_numbers<[1], [0], [0], [1], [0, 0, 1, 1], [], []>} : vector<8x32xbf16>, vector<32x32xbf16>, vector<8x32xf32> -> vector<8x32xf32>
    %c0_52 = arith.constant 0 : index
    %c0_53 = arith.constant 0 : index
    %117 = vector.load %arg20[%c0_52, %c0_53] : memref<1x32xf32, #tpu.memory_space<vmem>>, vector<1x32xf32>
    %118 = vector.broadcast %117 : vector<1x32xf32> to vector<8x32xf32>
    %119 = arith.addf %116, %118 : vector<8x32xf32>
    %120 = arith.addf %19, %119 : vector<8x32xf32>
    %c0_54 = arith.constant 0 : index
    %c0_55 = arith.constant 0 : index
    %c0_56 = arith.constant 0 : index
    %121 = vector.load %arg4[%c0_54, %c0_55, %c0_56] : memref<1x8x64xbf16, #tpu.memory_space<vmem>>, vector<1x8x64xbf16>
    %122 = vector.shape_cast %121 : vector<1x8x64xbf16> to vector<8x64xbf16>
    %cst_57 = arith.constant dense<0.000000e+00> : vector<8xf32>
    %123 = vector.multi_reduction <add>, %120, %cst_57 [1] : vector<8x32xf32> to vector<8xf32>
    %124 = vector.shape_cast %123 : vector<8xf32> to vector<8x1xf32>
    %cst_58 = arith.constant 3.200000e+01 : f32
    %125 = vector.broadcast %cst_58 : f32 to vector<8x1xf32>
    %126 = arith.divf %124, %125 : vector<8x1xf32>
    %127 = vector.broadcast %126 : vector<8x1xf32> to vector<8x32xf32>
    %128 = arith.subf %120, %127 : vector<8x32xf32>
    %129 = arith.mulf %128, %128 : vector<8x32xf32>
    %cst_59 = arith.constant dense<0.000000e+00> : vector<8xf32>
    %130 = vector.multi_reduction <add>, %129, %cst_59 [1] : vector<8x32xf32> to vector<8xf32>
    %131 = vector.shape_cast %130 : vector<8xf32> to vector<8x1xf32>
    %cst_60 = arith.constant 3.200000e+01 : f32
    %132 = vector.broadcast %cst_60 : f32 to vector<8x1xf32>
    %133 = arith.divf %131, %132 : vector<8x1xf32>
    %134 = vector.broadcast %126 : vector<8x1xf32> to vector<8x32xf32>
    %135 = arith.subf %120, %134 : vector<8x32xf32>
    %cst_61 = arith.constant 9.99999997E-7 : f32
    %136 = vector.broadcast %cst_61 : f32 to vector<8x1xf32>
    %137 = arith.addf %133, %136 : vector<8x1xf32>
    %138 = math.rsqrt %137 : vector<8x1xf32>
    %139 = vector.broadcast %138 : vector<8x1xf32> to vector<8x32xf32>
    %140 = arith.mulf %135, %139 : vector<8x32xf32>
    %c0_62 = arith.constant 0 : index
    %c0_63 = arith.constant 0 : index
    %141 = vector.load %arg9[%c0_62, %c0_63] : memref<1x32xf32, #tpu.memory_space<vmem>>, vector<1x32xf32>
    %142 = vector.broadcast %141 : vector<1x32xf32> to vector<8x32xf32>
    %143 = arith.mulf %140, %142 : vector<8x32xf32>
    %c0_64 = arith.constant 0 : index
    %c0_65 = arith.constant 0 : index
    %144 = vector.load %arg10[%c0_64, %c0_65] : memref<1x32xf32, #tpu.memory_space<vmem>>, vector<1x32xf32>
    %145 = vector.broadcast %144 : vector<1x32xf32> to vector<8x32xf32>
    %146 = arith.addf %143, %145 : vector<8x32xf32>
    %147 = arith.truncf %146 : vector<8x32xf32> to vector<8x32xbf16>
    %c0_66 = arith.constant 0 : index
    %c0_67 = arith.constant 0 : index
    %148 = vector.load %arg21[%c0_66, %c0_67] : memref<32x32xbf16, #tpu.memory_space<vmem>>, vector<32x32xbf16>
    %cst_68 = arith.constant dense<0.000000e+00> : vector<8x32xf32>
    %149 = tpu.matmul %147, %148, %cst_68 {dimension_numbers = #tpu.dot_dimension_numbers<[1], [0], [0], [1], [0, 0, 1, 1], [], []>} : vector<8x32xbf16>, vector<32x32xbf16>, vector<8x32xf32> -> vector<8x32xf32>
    %c0_69 = arith.constant 0 : index
    %c0_70 = arith.constant 0 : index
    %150 = vector.load %arg22[%c0_69, %c0_70] : memref<1x32xf32, #tpu.memory_space<vmem>>, vector<1x32xf32>
    %151 = vector.broadcast %150 : vector<1x32xf32> to vector<8x32xf32>
    %152 = arith.addf %149, %151 : vector<8x32xf32>
    %c0_71 = arith.constant 0 : index
    %c0_72 = arith.constant 0 : index
    %153 = vector.load %arg23[%c0_71, %c0_72] : memref<64x32xbf16, #tpu.memory_space<vmem>>, vector<64x32xbf16>
    %cst_73 = arith.constant dense<0.000000e+00> : vector<8x32xf32>
    %154 = tpu.matmul %122, %153, %cst_73 {dimension_numbers = #tpu.dot_dimension_numbers<[1], [0], [0], [1], [0, 0, 1, 1], [], []>} : vector<8x64xbf16>, vector<64x32xbf16>, vector<8x32xf32> -> vector<8x32xf32>
    %c0_74 = arith.constant 0 : index
    %c0_75 = arith.constant 0 : index
    %155 = vector.load %arg24[%c0_74, %c0_75] : memref<1x32xf32, #tpu.memory_space<vmem>>, vector<1x32xf32>
    %156 = vector.broadcast %155 : vector<1x32xf32> to vector<8x32xf32>
    %157 = arith.addf %154, %156 : vector<8x32xf32>
    %c0_76 = arith.constant 0 : index
    %c0_77 = arith.constant 0 : index
    %158 = vector.load %arg25[%c0_76, %c0_77] : memref<64x32xbf16, #tpu.memory_space<vmem>>, vector<64x32xbf16>
    %cst_78 = arith.constant dense<0.000000e+00> : vector<8x32xf32>
    %159 = tpu.matmul %122, %158, %cst_78 {dimension_numbers = #tpu.dot_dimension_numbers<[1], [0], [0], [1], [0, 0, 1, 1], [], []>} : vector<8x64xbf16>, vector<64x32xbf16>, vector<8x32xf32> -> vector<8x32xf32>
    %c0_79 = arith.constant 0 : index
    %c0_80 = arith.constant 0 : index
    %160 = vector.load %arg26[%c0_79, %c0_80] : memref<1x32xf32, #tpu.memory_space<vmem>>, vector<1x32xf32>
    %161 = vector.broadcast %160 : vector<1x32xf32> to vector<8x32xf32>
    %162 = arith.addf %159, %161 : vector<8x32xf32>
    %163 = vector.shape_cast %152 : vector<8x32xf32> to vector<8x4x8xf32>
    %164 = tpu.transpose %163, [1, 0, 2] : vector<8x4x8xf32> -> vector<4x8x8xf32>
    %165 = arith.truncf %164 : vector<4x8x8xf32> to vector<4x8x8xbf16>
    %166 = vector.shape_cast %157 : vector<8x32xf32> to vector<8x4x8xf32>
    %167 = tpu.transpose %166, [1, 0, 2] : vector<8x4x8xf32> -> vector<4x8x8xf32>
    %168 = arith.truncf %167 : vector<4x8x8xf32> to vector<4x8x8xbf16>
    %169 = vector.shape_cast %162 : vector<8x32xf32> to vector<8x4x8xf32>
    %170 = tpu.transpose %169, [1, 0, 2] : vector<8x4x8xf32> -> vector<4x8x8xf32>
    %171 = arith.truncf %170 : vector<4x8x8xf32> to vector<4x8x8xbf16>
    "tpu.trace_start"() <{level = 10 : i32, message = "hqd,hkd->hqk"}> : () -> ()
    %cst_81 = arith.constant dense<0.000000e+00> : vector<4x8x8xf32>
    %172 = tpu.matmul %165, %168, %cst_81 {dimension_numbers = #tpu.dot_dimension_numbers<[2], [2], [1], [1], [0, 0, 0, 1, 1, 1], [0], [0]>} : vector<4x8x8xbf16>, vector<4x8x8xbf16>, vector<4x8x8xf32> -> vector<4x8x8xf32>
    "tpu.trace_stop"() : () -> ()
    %cst_82 = arith.constant dense<0xFF800000> : vector<4x8xf32>
    %173 = vector.multi_reduction <maximumf>, %172, %cst_82 [2] : vector<4x8x8xf32> to vector<4x8xf32>
    %174 = vector.shape_cast %173 : vector<4x8xf32> to vector<4x8x1xf32>
    %175 = vector.broadcast %174 : vector<4x8x1xf32> to vector<4x8x8xf32>
    %176 = arith.subf %172, %175 : vector<4x8x8xf32>
    %177 = math.exp %176 : vector<4x8x8xf32>
    %cst_83 = arith.constant dense<0.000000e+00> : vector<4x8xf32>
    %178 = vector.multi_reduction <add>, %177, %cst_83 [2] : vector<4x8x8xf32> to vector<4x8xf32>
    %179 = vector.shape_cast %178 : vector<4x8xf32> to vector<4x8x1xf32>
    %180 = tpu.reciprocal %179 {approx = true} : vector<4x8x1xf32> -> vector<4x8x1xf32>
    %181 = vector.broadcast %180 : vector<4x8x1xf32> to vector<4x8x8xf32>
    %182 = arith.mulf %177, %181 : vector<4x8x8xf32>
    %183 = arith.truncf %182 : vector<4x8x8xf32> to vector<4x8x8xbf16>
    "tpu.trace_start"() <{level = 10 : i32, message = "hqk,hkd->hqd"}> : () -> ()
    %cst_84 = arith.constant dense<0.000000e+00> : vector<4x8x8xf32>
    %184 = tpu.matmul %183, %171, %cst_84 {dimension_numbers = #tpu.dot_dimension_numbers<[2], [1], [1], [2], [0, 0, 0, 1, 1, 2], [0], [0]>} : vector<4x8x8xbf16>, vector<4x8x8xbf16>, vector<4x8x8xf32> -> vector<4x8x8xf32>
    "tpu.trace_stop"() : () -> ()
    %185 = tpu.transpose %184, [1, 0, 2] : vector<4x8x8xf32> -> vector<8x4x8xf32>
    %186 = vector.shape_cast %185 : vector<8x4x8xf32> to vector<8x32xf32>
    %187 = arith.truncf %186 : vector<8x32xf32> to vector<8x32xbf16>
    %c0_85 = arith.constant 0 : index
    %c0_86 = arith.constant 0 : index
    %188 = vector.load %arg27[%c0_85, %c0_86] : memref<32x32xbf16, #tpu.memory_space<vmem>>, vector<32x32xbf16>
    %cst_87 = arith.constant dense<0.000000e+00> : vector<8x32xf32>
    %189 = tpu.matmul %187, %188, %cst_87 {dimension_numbers = #tpu.dot_dimension_numbers<[1], [0], [0], [1], [0, 0, 1, 1], [], []>} : vector<8x32xbf16>, vector<32x32xbf16>, vector<8x32xf32> -> vector<8x32xf32>
    %c0_88 = arith.constant 0 : index
    %c0_89 = arith.constant 0 : index
    %190 = vector.load %arg28[%c0_88, %c0_89] : memref<1x32xf32, #tpu.memory_space<vmem>>, vector<1x32xf32>
    %191 = vector.broadcast %190 : vector<1x32xf32> to vector<8x32xf32>
    %192 = arith.addf %189, %191 : vector<8x32xf32>
    %193 = arith.addf %120, %192 : vector<8x32xf32>
    %cst_90 = arith.constant dense<0.000000e+00> : vector<8xf32>
    %194 = vector.multi_reduction <add>, %193, %cst_90 [1] : vector<8x32xf32> to vector<8xf32>
    %195 = vector.shape_cast %194 : vector<8xf32> to vector<8x1xf32>
    %cst_91 = arith.constant 3.200000e+01 : f32
    %196 = vector.broadcast %cst_91 : f32 to vector<8x1xf32>
    %197 = arith.divf %195, %196 : vector<8x1xf32>
    %198 = vector.broadcast %197 : vector<8x1xf32> to vector<8x32xf32>
    %199 = arith.subf %193, %198 : vector<8x32xf32>
    %200 = arith.mulf %199, %199 : vector<8x32xf32>
    %cst_92 = arith.constant dense<0.000000e+00> : vector<8xf32>
    %201 = vector.multi_reduction <add>, %200, %cst_92 [1] : vector<8x32xf32> to vector<8xf32>
    %202 = vector.shape_cast %201 : vector<8xf32> to vector<8x1xf32>
    %cst_93 = arith.constant 3.200000e+01 : f32
    %203 = vector.broadcast %cst_93 : f32 to vector<8x1xf32>
    %204 = arith.divf %202, %203 : vector<8x1xf32>
    %205 = vector.broadcast %197 : vector<8x1xf32> to vector<8x32xf32>
    %206 = arith.subf %193, %205 : vector<8x32xf32>
    %cst_94 = arith.constant 9.99999997E-7 : f32
    %207 = vector.broadcast %cst_94 : f32 to vector<8x1xf32>
    %208 = arith.addf %204, %207 : vector<8x1xf32>
    %209 = math.rsqrt %208 : vector<8x1xf32>
    %210 = vector.broadcast %209 : vector<8x1xf32> to vector<8x32xf32>
    %211 = arith.mulf %206, %210 : vector<8x32xf32>
    %c0_95 = arith.constant 0 : index
    %c0_96 = arith.constant 0 : index
    %212 = vector.load %arg7[%c0_95, %c0_96] : memref<1x32xf32, #tpu.memory_space<vmem>>, vector<1x32xf32>
    %213 = vector.broadcast %212 : vector<1x32xf32> to vector<8x32xf32>
    %214 = arith.mulf %211, %213 : vector<8x32xf32>
    %c0_97 = arith.constant 0 : index
    %c0_98 = arith.constant 0 : index
    %215 = vector.load %arg8[%c0_97, %c0_98] : memref<1x32xf32, #tpu.memory_space<vmem>>, vector<1x32xf32>
    %216 = vector.broadcast %215 : vector<1x32xf32> to vector<8x32xf32>
    %217 = arith.addf %214, %216 : vector<8x32xf32>
    %218 = arith.truncf %217 : vector<8x32xf32> to vector<8x32xbf16>
    %c0_99 = arith.constant 0 : index
    %c0_100 = arith.constant 0 : index
    %219 = vector.load %arg29[%c0_99, %c0_100] : memref<32x128xbf16, #tpu.memory_space<vmem>>, vector<32x128xbf16>
    %cst_101 = arith.constant dense<0.000000e+00> : vector<8x128xf32>
    %220 = tpu.matmul %218, %219, %cst_101 {dimension_numbers = #tpu.dot_dimension_numbers<[1], [0], [0], [1], [0, 0, 1, 1], [], []>} : vector<8x32xbf16>, vector<32x128xbf16>, vector<8x128xf32> -> vector<8x128xf32>
    %c0_102 = arith.constant 0 : index
    %c0_103 = arith.constant 0 : index
    %221 = vector.load %arg30[%c0_102, %c0_103] : memref<1x128xf32, #tpu.memory_space<vmem>>, vector<1x128xf32>
    %222 = vector.broadcast %221 : vector<1x128xf32> to vector<8x128xf32>
    %223 = arith.addf %220, %222 : vector<8x128xf32>
    %cst_104 = arith.constant 5.000000e-01 : f32
    %224 = vector.broadcast %cst_104 : f32 to vector<8x128xf32>
    %225 = arith.mulf %224, %223 : vector<8x128xf32>
    %cst_105 = arith.constant 4.471500e-02 : f32
    %226 = vector.broadcast %cst_105 : f32 to vector<8x128xf32>
    %227 = arith.mulf %226, %223 : vector<8x128xf32>
    %228 = arith.mulf %227, %223 : vector<8x128xf32>
    %229 = arith.mulf %228, %223 : vector<8x128xf32>
    %230 = arith.addf %223, %229 : vector<8x128xf32>
    %cst_106 = arith.constant 0.797884583 : f32
    %231 = vector.broadcast %cst_106 : f32 to vector<8x128xf32>
    %232 = arith.mulf %231, %230 : vector<8x128xf32>
    %233 = math.tanh %232 : vector<8x128xf32>
    %cst_107 = arith.constant 1.000000e+00 : f32
    %234 = vector.broadcast %cst_107 : f32 to vector<8x128xf32>
    %235 = arith.addf %234, %233 : vector<8x128xf32>
    %236 = arith.mulf %225, %235 : vector<8x128xf32>
    %237 = arith.truncf %236 : vector<8x128xf32> to vector<8x128xbf16>
    %c0_108 = arith.constant 0 : index
    %c0_109 = arith.constant 0 : index
    %238 = vector.load %arg31[%c0_108, %c0_109] : memref<128x32xbf16, #tpu.memory_space<vmem>>, vector<128x32xbf16>
    %cst_110 = arith.constant dense<0.000000e+00> : vector<8x32xf32>
    %239 = tpu.matmul %237, %238, %cst_110 {dimension_numbers = #tpu.dot_dimension_numbers<[1], [0], [0], [1], [0, 0, 1, 1], [], []>} : vector<8x128xbf16>, vector<128x32xbf16>, vector<8x32xf32> -> vector<8x32xf32>
    %c0_111 = arith.constant 0 : index
    %c0_112 = arith.constant 0 : index
    %240 = vector.load %arg32[%c0_111, %c0_112] : memref<1x32xf32, #tpu.memory_space<vmem>>, vector<1x32xf32>
    %241 = vector.broadcast %240 : vector<1x32xf32> to vector<8x32xf32>
    %242 = arith.addf %239, %241 : vector<8x32xf32>
    %243 = arith.addf %193, %242 : vector<8x32xf32>
    %c0_113 = arith.constant 0 : index
    %c0_114 = arith.constant 0 : index
    %c0_115 = arith.constant 0 : index
    %244 = vector.load %arg33[%c0_113, %c0_114, %c0_115] : memref<1x8x32xf32, #tpu.memory_space<vmem>>, vector<1x8x32xf32>
    %245 = vector.shape_cast %244 : vector<1x8x32xf32> to vector<8x32xf32>
    %246 = vector.shape_cast %243 : vector<8x32xf32> to vector<1x8x32xf32>
    tpu.vector_store %arg33[%c0_113, %c0_114, %c0_115], %246 {strides = array<i32>} : memref<1x8x32xf32, #tpu.memory_space<vmem>>, vector<1x8x32xf32>,
    return
  }
  func.func @transform_0(%arg0: i32, %arg1: i32) -> (i32, i32, i32) {
    %c0_i32 = arith.constant 0 : i32
    %c0_i32_0 = arith.constant 0 : i32
    %c0_i32_1 = arith.constant 0 : i32
    return %arg0, %c0_i32, %c0_i32_0 : i32, i32, i32
  }
  func.func @transform_1(%arg0: i32, %arg1: i32) -> (i32, i32, i32) {
    %c0_i32 = arith.constant 0 : i32
    %c0_i32_0 = arith.constant 0 : i32
    %c0_i32_1 = arith.constant 0 : i32
    return %arg0, %c0_i32, %c0_i32_0 : i32, i32, i32
  }
  func.func @transform_2(%arg0: i32, %arg1: i32) -> (i32, i32, i32) {
    %c0_i32 = arith.constant 0 : i32
    %c0_i32_0 = arith.constant 0 : i32
    %c0_i32_1 = arith.constant 0 : i32
    return %arg0, %c0_i32, %c0_i32_0 : i32, i32, i32
  }
  func.func @transform_3(%arg0: i32, %arg1: i32) -> (i32, i32) {
    %c0_i32 = arith.constant 0 : i32
    %c0_i32_0 = arith.constant 0 : i32
    %c0_i32_1 = arith.constant 0 : i32
    return %c0_i32, %c0_i32_0 : i32, i32
  }
  func.func @transform_4(%arg0: i32, %arg1: i32) -> (i32, i32) {
    %c0_i32 = arith.constant 0 : i32
    %c0_i32_0 = arith.constant 0 : i32
    %c0_i32_1 = arith.constant 0 : i32
    return %c0_i32, %c0_i32_0 : i32, i32
  }
  func.func @transform_5(%arg0: i32, %arg1: i32) -> (i32, i32) {
    %c0_i32 = arith.constant 0 : i32
    %c0_i32_0 = arith.constant 0 : i32
    %c0_i32_1 = arith.constant 0 : i32
    return %c0_i32, %c0_i32_0 : i32, i32
  }
  func.func @transform_6(%arg0: i32, %arg1: i32) -> (i32, i32) {
    %c0_i32 = arith.constant 0 : i32
    %c0_i32_0 = arith.constant 0 : i32
    %c0_i32_1 = arith.constant 0 : i32
    return %c0_i32, %c0_i32_0 : i32, i32
  }
  func.func @transform_7(%arg0: i32, %arg1: i32) -> (i32, i32) {
    %c0_i32 = arith.constant 0 : i32
    %c0_i32_0 = arith.constant 0 : i32
    %c0_i32_1 = arith.constant 0 : i32
    return %c0_i32, %c0_i32_0 : i32, i32
  }
  func.func @transform_8(%arg0: i32, %arg1: i32) -> (i32, i32) {
    %c0_i32 = arith.constant 0 : i32
    %c0_i32_0 = arith.constant 0 : i32
    %c0_i32_1 = arith.constant 0 : i32
    return %c0_i32, %c0_i32_0 : i32, i32
  }
  func.func @transform_9(%arg0: i32, %arg1: i32) -> (i32, i32) {
    %c0_i32 = arith.constant 0 : i32
    %c0_i32_0 = arith.constant 0 : i32
    %c0_i32_1 = arith.constant 0 : i32
    return %c0_i32, %c0_i32_0 : i32, i32
  }
  func.func @transform_10(%arg0: i32, %arg1: i32) -> (i32, i32) {
    %c0_i32 = arith.constant 0 : i32
    %c0_i32_0 = arith.constant 0 : i32
    %c0_i32_1 = arith.constant 0 : i32
    return %c0_i32, %c0_i32_0 : i32, i32
  }
  func.func @transform_11(%arg0: i32, %arg1: i32) -> (i32, i32) {
    %c0_i32 = arith.constant 0 : i32
    %c0_i32_0 = arith.constant 0 : i32
    %c0_i32_1 = arith.constant 0 : i32
    return %c0_i32, %c0_i32_0 : i32, i32
  }
  func.func @transform_12(%arg0: i32, %arg1: i32) -> (i32, i32) {
    %c0_i32 = arith.constant 0 : i32
    %c0_i32_0 = arith.constant 0 : i32
    %c0_i32_1 = arith.constant 0 : i32
    return %c0_i32, %c0_i32_0 : i32, i32
  }
  func.func @transform_13(%arg0: i32, %arg1: i32) -> (i32, i32) {
    %c0_i32 = arith.constant 0 : i32
    %c0_i32_0 = arith.constant 0 : i32
    %c0_i32_1 = arith.constant 0 : i32
    return %c0_i32, %c0_i32_0 : i32, i32
  }
  func.func @transform_14(%arg0: i32, %arg1: i32) -> (i32, i32) {
    %c0_i32 = arith.constant 0 : i32
    %c0_i32_0 = arith.constant 0 : i32
    %c0_i32_1 = arith.constant 0 : i32
    return %c0_i32, %c0_i32_0 : i32, i32
  }
  func.func @transform_15(%arg0: i32, %arg1: i32) -> (i32, i32) {
    %c0_i32 = arith.constant 0 : i32
    %c0_i32_0 = arith.constant 0 : i32
    %c0_i32_1 = arith.constant 0 : i32
    return %c0_i32, %c0_i32_0 : i32, i32
  }
  func.func @transform_16(%arg0: i32, %arg1: i32) -> (i32, i32) {
    %c0_i32 = arith.constant 0 : i32
    %c0_i32_0 = arith.constant 0 : i32
    %c0_i32_1 = arith.constant 0 : i32
    return %c0_i32, %c0_i32_0 : i32, i32
  }
  func.func @transform_17(%arg0: i32, %arg1: i32) -> (i32, i32) {
    %c0_i32 = arith.constant 0 : i32
    %c0_i32_0 = arith.constant 0 : i32
    %c0_i32_1 = arith.constant 0 : i32
    return %c0_i32, %c0_i32_0 : i32, i32
  }
  func.func @transform_18(%arg0: i32, %arg1: i32) -> (i32, i32) {
    %c0_i32 = arith.constant 0 : i32
    %c0_i32_0 = arith.constant 0 : i32
    %c0_i32_1 = arith.constant 0 : i32
    return %c0_i32, %c0_i32_0 : i32, i32
  }
  func.func @transform_19(%arg0: i32, %arg1: i32) -> (i32, i32) {
    %c0_i32 = arith.constant 0 : i32
    %c0_i32_0 = arith.constant 0 : i32
    %c0_i32_1 = arith.constant 0 : i32
    return %c0_i32, %c0_i32_0 : i32, i32
  }
  func.func @transform_20(%arg0: i32, %arg1: i32) -> (i32, i32) {
    %c0_i32 = arith.constant 0 : i32
    %c0_i32_0 = arith.constant 0 : i32
    %c0_i32_1 = arith.constant 0 : i32
    return %c0_i32, %c0_i32_0 : i32, i32
  }
  func.func @transform_21(%arg0: i32, %arg1: i32) -> (i32, i32) {
    %c0_i32 = arith.constant 0 : i32
    %c0_i32_0 = arith.constant 0 : i32
    %c0_i32_1 = arith.constant 0 : i32
    return %c0_i32, %c0_i32_0 : i32, i32
  }
  func.func @transform_22(%arg0: i32, %arg1: i32) -> (i32, i32) {
    %c0_i32 = arith.constant 0 : i32
    %c0_i32_0 = arith.constant 0 : i32
    %c0_i32_1 = arith.constant 0 : i32
    return %c0_i32, %c0_i32_0 : i32, i32
  }
  func.func @transform_23(%arg0: i32, %arg1: i32) -> (i32, i32) {
    %c0_i32 = arith.constant 0 : i32
    %c0_i32_0 = arith.constant 0 : i32
    %c0_i32_1 = arith.constant 0 : i32
    return %c0_i32, %c0_i32_0 : i32, i32
  }
  func.func @transform_24(%arg0: i32, %arg1: i32) -> (i32, i32) {
    %c0_i32 = arith.constant 0 : i32
    %c0_i32_0 = arith.constant 0 : i32
    %c0_i32_1 = arith.constant 0 : i32
    return %c0_i32, %c0_i32_0 : i32, i32
  }
  func.func @transform_25(%arg0: i32, %arg1: i32) -> (i32, i32) {
    %c0_i32 = arith.constant 0 : i32
    %c0_i32_0 = arith.constant 0 : i32
    %c0_i32_1 = arith.constant 0 : i32
    return %c0_i32, %c0_i32_0 : i32, i32
  }
  func.func @transform_26(%arg0: i32, %arg1: i32) -> (i32, i32) {
    %c0_i32 = arith.constant 0 : i32
    %c0_i32_0 = arith.constant 0 : i32
    %c0_i32_1 = arith.constant 0 : i32
    return %c0_i32, %c0_i32_0 : i32, i32
  }
  func.func @transform_27(%arg0: i32, %arg1: i32) -> (i32, i32) {
    %c0_i32 = arith.constant 0 : i32
    %c0_i32_0 = arith.constant 0 : i32
    %c0_i32_1 = arith.constant 0 : i32
    return %c0_i32, %c0_i32_0 : i32, i32
  }
  func.func @transform_28(%arg0: i32, %arg1: i32) -> (i32, i32) {
    %c0_i32 = arith.constant 0 : i32
    %c0_i32_0 = arith.constant 0 : i32
    %c0_i32_1 = arith.constant 0 : i32
    return %c0_i32, %c0_i32_0 : i32, i32
  }
  func.func @transform_29(%arg0: i32, %arg1: i32) -> (i32, i32) {
    %c0_i32 = arith.constant 0 : i32
    %c0_i32_0 = arith.constant 0 : i32
    %c0_i32_1 = arith.constant 0 : i32
    return %c0_i32, %c0_i32_0 : i32, i32
  }
  func.func @transform_30(%arg0: i32, %arg1: i32) -> (i32, i32) {
    %c0_i32 = arith.constant 0 : i32
    %c0_i32_0 = arith.constant 0 : i32
    %c0_i32_1 = arith.constant 0 : i32
    return %c0_i32, %c0_i32_0 : i32, i32
  }
  func.func @transform_31(%arg0: i32, %arg1: i32) -> (i32, i32, i32) {
    %c0_i32 = arith.constant 0 : i32
    %c0_i32_0 = arith.constant 0 : i32
    return %arg0, %arg1, %c0_i32 : i32, i32, i32
  }
}

</mosaic_0001>

<bundles_post_ra>
// kernel: tpu_custom_call.1
= control target key start
LH: loop header
LB: loop body
LE: loop exit
PB: predicated region body
PF: predicated region fallthrough
CT: control target
= control target key end

     0   :  { %s5604_s6 = smov 1   ;;  %s5605_s10 = smov 2   ;;  %s6656_s0 = inlined_call_operand.smem [shape: u32[32], index: -1, kind: input, shape index: {}] }
   0x1   :  { %s5661_s5 = sld [smem:[%s6656_s0]]   ;;  %s5606_s14 = smov 3  }
   0x2   :  { %s5666_s9 = sld [smem:[%s6656_s0 + %s5604_s6]]   ;;  %s5607_s18 = smov 4  }
   0x3   :  { %s5671_s13 = sld [smem:[%s6656_s0 + %s5605_s10]]   ;;  %s5608_s22 = smov 5  }
   0x4   :  { %s5676_s17 = sld [smem:[%s6656_s0 + %s5606_s14]]   ;;  %s5609_s26 = smov 6  }
   0x5   :  { %s5681_s21 = sld [smem:[%s6656_s0 + %s5607_s18]]   ;;  %s5610_s30 = smov 7  }
   0x6   :  { %s5686_s25 = sld [smem:[%s6656_s0 + %s5608_s22]]   ;;  %s5611_s4 = smov 8  }
   0x7   :  { %6693 = sst [smem:[#allocation20_spill]] %s5661_s5  ;;  %s5612_s10 = smov 9  }
   0x8   :  { %6694 = sst [smem:[#allocation21_spill]] %s5666_s9  ;;  %s5613_s15 = smov 10  }
   0x9   :  { %6695 = sst [smem:[#allocation22_spill]] %s5671_s13  ;;  %s5614_s20 = smov 11  }
   0xa   :  { %6696 = sst [smem:[#allocation23_spill]] %s5676_s17  ;;  %s5616_s1 = smov 13  }
   0xb   :  { %6697 = sst [smem:[#allocation24_spill]] %s5681_s21  ;;  %s5617_s7 = smov 14  }
   0xc   :  { %6698 = sst [smem:[#allocation25_spill]] %s5686_s25  ;;  %s5619_s22 = smov 16  }
   0xd   :  { %s5691_s29 = sld [smem:[%s6656_s0 + %s5609_s26]]   ;;  %s5615_s26 = smov 12  }
   0xe   :  { %s5696_s3 = sld [smem:[%s6656_s0 + %s5610_s30]]   ;;  %s5620_s28 = smov 17  }
   0xf   :  { %s5701_s8 = sld [smem:[%s6656_s0 + %s5611_s4]]  }
  0x10   :  { %s5706_s14 = sld [smem:[%s6656_s0 + %s5612_s10]]  }
  0x11   :  { %s5711_s19 = sld [smem:[%s6656_s0 + %s5613_s15]]   ;;  %s5618_s15 = smov 15  }
  0x12   :  { %s5716_s24 = sld [smem:[%s6656_s0 + %s5614_s20]]  }
  0x13   :  { %6699 = sst [smem:[#allocation26_spill]] %s5691_s29 }
  0x14   :  { %6700 = sst [smem:[#allocation27_spill]] %s5696_s3 }
  0x15   :  { %6701 = sst [smem:[#allocation28_spill]] %s5701_s8 }
  0x16   :  { %6702 = sst [smem:[#allocation29_spill]] %s5706_s14 }
  0x17   :  { %6703 = sst [smem:[#allocation30_spill]] %s5711_s19 }
  0x18   :  { %6704 = sst [smem:[#allocation31_spill]] %s5716_s24 }
  0x19   :  { %s5721_s30 = sld [smem:[%s6656_s0 + %s5615_s26]]  }
  0x1a   :  { %s5726_s6 = sld [smem:[%s6656_s0 + %s5616_s1]]  }
  0x1b   :  { %s5731_s12 = sld [smem:[%s6656_s0 + %s5617_s7]]   ;;  %s5621_s7 = smov 18  }
  0x1c   :  { %s5736_s20 = sld [smem:[%s6656_s0 + %s5618_s15]]   ;;  %s5622_s15 = smov 19  }
  0x1d   :  { %s5741_s27 = sld [smem:[%s6656_s0 + %s5619_s22]]   ;;  %s5623_s22 = smov 20  }
  0x1e   :  { %s5746_s4 = sld [smem:[%s6656_s0 + %s5620_s28]]   ;;  %s5624_s28 = smov 21  }
  0x1f   :  { %6705 = sst [smem:[#allocation32_spill]] %s5721_s30 }
  0x20   :  { %6706 = sst [smem:[#allocation33_spill]] %s5726_s6 }
  0x21   :  { %6707 = sst [smem:[#allocation34_spill]] %s5731_s12 }
  0x22   :  { %6708 = sst [smem:[#allocation35_spill]] %s5736_s20 }
  0x23   :  { %6709 = sst [smem:[#allocation36_spill]] %s5741_s27 }
  0x24   :  { %6710 = sst [smem:[#allocation37_spill]] %s5746_s4 }
  0x25   :  { %s5751_s30 = sld [smem:[%s6656_s0 + %s5621_s7]]   ;;  %s5625_s7 = smov 22  }
  0x26   :  { %s5756_s12 = sld [smem:[%s6656_s0 + %s5622_s15]]   ;;  %s5626_s15 = smov 23  }
  0x27   :  { %s5761_s27 = sld [smem:[%s6656_s0 + %s5623_s22]]   ;;  %s5627_s22 = smov 24  }
  0x28   :  { %s5766_s4 = sld [smem:[%s6656_s0 + %s5624_s28]]   ;;  %s5628_s28 = smov 25  }
  0x2b   :  { %6711 = sst [smem:[#allocation38_spill]] %s5751_s30 }
  0x2c   :  { %6712 = sst [smem:[#allocation39_spill]] %s5756_s12 }
  0x2d   :  { %6713 = sst [smem:[#allocation40_spill]] %s5761_s27 }
  0x2e   :  { %6714 = sst [smem:[#allocation41_spill]] %s5766_s4 }
  0x2f   :  { %s5771_s30 = sld [smem:[%s6656_s0 + %s5625_s7]]   ;;  %s5629_s7 = smov 26  }
  0x30   :  { %s5776_s12 = sld [smem:[%s6656_s0 + %s5626_s15]]   ;;  %s5630_s15 = smov 27  }
  0x31   :  { %s5781_s27 = sld [smem:[%s6656_s0 + %s5627_s22]]   ;;  %s5631_s22 = smov 28  }
  0x32   :  { %s5786_s4 = sld [smem:[%s6656_s0 + %s5628_s28]]   ;;  %s5632_s28 = smov 29  }
  0x35   :  { %6715 = sst [smem:[#allocation42_spill]] %s5771_s30 }
  0x36   :  { %6716 = sst [smem:[#allocation43_spill]] %s5776_s12 }
  0x37   :  { %6717 = sst [smem:[#allocation44_spill]] %s5781_s27 }
  0x38   :  { %6718 = sst [smem:[#allocation45_spill]] %s5786_s4 }
  0x39   :  { %s5791_s30 = sld [smem:[%s6656_s0 + %s5629_s7]]   ;;  %s5633_s7 = smov 30  }
  0x3a   :  { %s5796_s12 = sld [smem:[%s6656_s0 + %s5630_s15]]   ;;  %s5634_s15 = smov 31  }
  0x3b   :  { %s5801_s27 = sld [smem:[%s6656_s0 + %s5631_s22]]  }
  0x3c   :  { %s5806_s4 = sld [smem:[%s6656_s0 + %s5632_s28]]  }
  0x3f   :  { %6719 = sst [smem:[#allocation46_spill]] %s5791_s30 }
  0x40   :  { %6720 = sst [smem:[#allocation47_spill]] %s5796_s12 }
  0x41   :  { %6721 = sst [smem:[#allocation48_spill]] %s5801_s27 }
  0x42   :  { %6722 = sst [smem:[#allocation49_spill]] %s5806_s4 }
  0x43   :  { %s5811_s30 = sld [smem:[%s6656_s0 + %s5633_s7]]  }
  0x44   :  { %s5816_s12 = sld [smem:[%s6656_s0 + %s5634_s15]]  }
  0x49   :  { %6723 = sst [smem:[#allocation50_spill]] %s5811_s30 }
  0x4a   :  { %6724 = sst [smem:[#allocation51_spill]] %s5816_s12 }
  0x4b   :  { %68 = vsyncpa [#allocation3], 0 }
  0x4c   :  { %70 = vsyncpa [#allocation3 + $0x1], 0 }
  0x4d   :  { %71 = vsyncpa [#allocation6], 0 }
  0x4e   :  { %72 = vsyncpa [#allocation9], 0 }
  0x4f   :  { %73 = vsyncpa [#allocation12], 0 }
  0x50   :  { %74 = vsyncpa [#allocation4], 0 }
  0x51   :  { %76 = vsyncpa [#allocation4 + $0x1], 0  ;;  %s5818_s22 = smov 0   ;;  %s5820_s23 = smov 0  }
  0x52   :  { %s5822_s26 = smov 0   ;;  %s5824_s28 = smov 0  }
  0x53   :  { %s5826_s1 = smov 0   ;;  %s5828_s2 = smov 0  }
  0x54   :  { %s5830_s0 = smov 0   ;;  %s5832_s7 = smov 0  }
  0x55   :  { %s5834_s10 = smov 0   ;;  %s5836_s11 = smov 0  }
  0x56   :  { %s5838_s15 = smov 0  }
  0x57 LB: > { %s6725_s14 = sld [smem:[#allocation29_spill]]  ;;  %s6726_s13 = sld [smem:[#allocation22_spill]]  ;;  %s5590_s7 = sphi %s5832_s7, %s6790_s7   ;;  %s5586_s0 = sphi %s5830_s0, %s6789_s0   ;;  %s5582_s2 = sphi %s5828_s2, %s6788_s2   ;;  %s5578_s1 = sphi %s5826_s1, %s6787_s1   ;;  %s5574_s28 = sphi %s5824_s28, %s6786_s28   ;;  %s5570_s26 = sphi %s5822_s26, %s6785_s26   ;;  %s5566_s23 = sphi %s5820_s23, %s6784_s23   ;;  %s5562_s22 = sphi %s5818_s22, %s6783_s22   ;;  %s5602_s15 = sphi %s5838_s15, %s82_s15   ;;  %s5598_s11 = sphi %s5836_s11, %s6792_s11   ;;  %s5594_s10 = sphi %s5834_s10, %s6791_s10  }
  0x58   : > { %s6727_s29 = sld [smem:[#allocation26_spill]]  ;;  %s6728_s21 = sld [smem:[#allocation24_spill]] }
  0x59   : > { %s6729_s8 = sld [smem:[#allocation28_spill]]  ;;  %s6730_s3 = sld [smem:[#allocation27_spill]] }
  0x5a   : > { %s6731_s25 = sld [smem:[#allocation25_spill]]  ;;  %s6732_s17 = sld [smem:[#allocation23_spill]] }
  0x5b   : > { %s6666_s16 = sadd.s32 4294967295, %s5602_s15   ;;  %p4583_p0 = scmp.ge.s32.totalorder %s5602_s15, 1 }
  0x5c   : > { %p5877_p1 = scmp.eq.s32.totalorder %s6666_s16, 0  ;;  %p793_p2 = scmp.lt.s32.totalorder %s5602_s15, 5 }
  0x5d   : > { %s5635_s30 = smov [#allocation5]   ;;  %s5636_s4 = smov [#allocation8]  }
  0x5e   : > { %s6733_s18 = scalar_select %p5877_p1, 1, 0 }
  0x5f   : > { %p5882_p3 = pnand %p4583_p0, %p793_p2  ;;  %s806_s27 = sshll.u32 %s5635_s30, 4  ;;  %s807_s27 = int_to_ptr.vmem [resolvable:$true] %s806_s27 }
  0x60   : > { %s828_s20 = sshll.u32 %s5636_s4, 4  ;;  %s5637_s19 = smov [#allocation11]   ;;  %s5894_s20 = int_to_ptr.vmem [resolvable:$true] %s828_s20 }
  0x61   : > { %s6734_s12 = scalar_select %p5882_p3, 1, 0 }
  0x62   : > { %p5013_p4 = pneg %p5882_p3  ;;  %s850_s6 = sshll.u32 %s5637_s19, 4  ;;  %s5896_s6 = int_to_ptr.vmem [resolvable:$true] %s850_s6 }
  0x63   : > { %s5270_s24 = scalar_lea.hbm %s6732_s17, 16 }
  0x64   : > { %p5890_p5 = pnand %p5013_p4, %p5877_p1  ;;  %p5271_p6 = scmp.ne.s32.totalorder %s6732_s17, %s5270_s24 }
  0x65   : > { %p5277_p10 = scmp.lt.u32.totalorder %s5270_s24, %s6732_s17 }
  0x66   : > { %p5902_p7 = pneg %p5890_p5 }
  0x68   : > { %p5273_p8 = pnand %p5902_p7, %p5271_p6 }
  0x6a   : > { %p5274_p9 = pneg %p5273_p8 }
  0x6c   : > { %p5279_p11 = pnand %p5277_p10, %p5274_p9 }
  0x6e   : > { %5282 = shalt.err (!%p5279_p11)
}
  0x6f   : > { %s5283_s4 = scalar_lea.vmem %s807_s27, 16  ;;  %s5290_s19 = scalar_lea.vmem %s807_s27, 32 }
  0x70   : > { %p5284_p12 = scmp.ne.s32.totalorder %s807_s27, %s5283_s4  ;;  %p5291_p2 = scmp.lt.s32.totalorder %s807_s27, %s807_s27 }
  0x71   : > { %p5292_p4 = scmp.lt.s32.totalorder %s5290_s19, %s5283_s4 }
  0x72   : > { %p5286_p13 = pnand %p5284_p12, %p5902_p7 }
  0x73   : > { %p5293_p3 = por %p5292_p4, %p5291_p2 }
  0x74   : > { %p5287_p0 = pneg %p5286_p13 }
  0x76   : > { %p5294_p1 = pnand %p5293_p3, %p5287_p0 }
  0x78   : > { %5297 = shalt.err (!%p5294_p1)
}
  0x79   : > { %5016 = dma.hbm_to_vmem [thread:$0]  (!%p5890_p5), %s6732_s17, 16, %s807_s27, [#allocation6]  }
  0x7a   : > { %s5298_s24 = scalar_lea.hbm %s6731_s25, 16 }
  0x7b   : > { %p5299_p6 = scmp.ne.s32.totalorder %s6731_s25, %s5298_s24  ;;  %p5305_p10 = scmp.lt.u32.totalorder %s5298_s24, %s6731_s25 }
  0x7d   : > { %p5301_p8 = pnand %p5299_p6, %p5902_p7 }
  0x7f   : > { %p5302_p9 = pneg %p5301_p8 }
  0x81   : > { %p5307_p11 = pnand %p5305_p10, %p5302_p9 }
  0x83   : > { %5310 = shalt.err (!%p5307_p11)
}
  0x84   : > { %s5311_s4 = scalar_lea.vmem %s5894_s20, 16  ;;  %s5318_s19 = scalar_lea.vmem %s5894_s20, 32 }
  0x85   : > { %p5312_p1 = scmp.ne.s32.totalorder %s5894_s20, %s5311_s4  ;;  %p5319_p13 = scmp.lt.s32.totalorder %s5894_s20, %s5894_s20 }
  0x86   : > { %p5320_p0 = scmp.lt.s32.totalorder %s5318_s19, %s5311_s4 }
  0x87   : > { %p5314_p3 = pnand %p5312_p1, %p5902_p7 }
  0x88   : > { %p5321_p2 = por %p5320_p0, %p5319_p13 }
  0x89   : > { %p5315_p12 = pneg %p5314_p3 }
  0x8b   : > { %p5322_p4 = pnand %p5321_p2, %p5315_p12 }
  0x8d   : > { %5325 = shalt.err (!%p5322_p4)
}
  0x8e   : > { %5022 = dma.hbm_to_vmem [thread:$0]  (!%p5890_p5), %s6731_s25, 16, %s5894_s20, [#allocation9]  }
  0x8f   : > { %s5326_s27 = scalar_lea.hbm %s6730_s3, 16 }
  0x90   : > { %p5327_p6 = scmp.ne.s32.totalorder %s6730_s3, %s5326_s27  ;;  %p5333_p10 = scmp.lt.u32.totalorder %s5326_s27, %s6730_s3 }
  0x92   : > { %p5329_p8 = pnand %p5327_p6, %p5902_p7 }
  0x94   : > { %p5330_p9 = pneg %p5329_p8 }
  0x96   : > { %p5335_p11 = pnand %p5333_p10, %p5330_p9 }
  0x98   : > { %5338 = shalt.err (!%p5335_p11)
}
  0x99   : > { %s5339_s24 = scalar_lea.vmem %s5896_s6, 16  ;;  %s5346_s4 = scalar_lea.vmem %s5896_s6, 32 }
  0x9a   : > { %p5340_p1 = scmp.ne.s32.totalorder %s5896_s6, %s5339_s24  ;;  %p5347_p13 = scmp.lt.s32.totalorder %s5896_s6, %s5896_s6 }
  0x9b   : > { %p5348_p0 = scmp.lt.s32.totalorder %s5346_s4, %s5339_s24 }
  0x9c   : > { %p5342_p3 = pnand %p5340_p1, %p5902_p7 }
  0x9d   : > { %p5349_p2 = por %p5348_p0, %p5347_p13 }
  0x9e   : > { %p5343_p12 = pneg %p5342_p3 }
  0xa0   : > { %p5350_p4 = pnand %p5349_p2, %p5343_p12 }
  0xa2   : > { %5353 = shalt.err (!%p5350_p4)
}
  0xa3   : > { %5028 = dma.hbm_to_vmem [thread:$0]  (!%p5890_p5), %s6730_s3, 16, %s5896_s6, [#allocation12]  }
  0xa4   : > { %s5638_s20 = smov [#allocation7]   ;;  %s5639_s27 = smov [#allocation10]  }
  0xa5   : > { %s817_s19 = sshll.u32 %s5638_s20, 4  ;;  %s839_s17 = sshll.u32 %s5639_s27, 4  ;;  %s818_s19 = int_to_ptr.vmem [resolvable:$true] %s817_s19  ;;  %s840_s17 = int_to_ptr.vmem [resolvable:$true] %s839_s17 }
  0xa6   : > { %s5354_s25 = scalar_lea.hbm %s6728_s21, 16 }
  0xa7   : > { %p5355_p6 = scmp.ne.s32.totalorder %s6728_s21, %s5354_s25  ;;  %p5361_p10 = scmp.lt.u32.totalorder %s5354_s25, %s6728_s21 }
  0xa9   : > { %p5357_p8 = pnand %p5355_p6, %p5902_p7 }
  0xab   : > { %p5358_p9 = pneg %p5357_p8 }
  0xad   : > { %p5363_p11 = pnand %p5361_p10, %p5358_p9 }
  0xaf   : > { %5366 = shalt.err (!%p5363_p11)
}
  0xb0   : > { %s5367_s24 = scalar_lea.vmem %s818_s19, 16  ;;  %s5374_s6 = scalar_lea.vmem %s818_s19, 32 }
  0xb1   : > { %p5368_p1 = scmp.ne.s32.totalorder %s818_s19, %s5367_s24  ;;  %p5375_p13 = scmp.lt.s32.totalorder %s818_s19, %s818_s19 }
  0xb2   : > { %p5376_p0 = scmp.lt.s32.totalorder %s5374_s6, %s5367_s24 }
  0xb3   : > { %p5370_p3 = pnand %p5368_p1, %p5902_p7 }
  0xb4   : > { %p5377_p2 = por %p5376_p0, %p5375_p13 }
  0xb5   : > { %p5371_p12 = pneg %p5370_p3 }
  0xb7   : > { %p5378_p4 = pnand %p5377_p2, %p5371_p12 }
  0xb9   : > { %5381 = shalt.err (!%p5378_p4)
}
  0xba   : > { %5019 = dma.hbm_to_vmem [thread:$0]  (!%p5890_p5), %s6728_s21, 16, %s818_s19, [#allocation6]  }
  0xbb   : > { %s5382_s25 = scalar_lea.hbm %s6727_s29, 16 }
  0xbc   : > { %p5383_p6 = scmp.ne.s32.totalorder %s6727_s29, %s5382_s25  ;;  %p5389_p10 = scmp.lt.u32.totalorder %s5382_s25, %s6727_s29 }
  0xbe   : > { %p5385_p8 = pnand %p5383_p6, %p5902_p7 }
  0xc0   : > { %p5386_p9 = pneg %p5385_p8 }
  0xc2   : > { %p5391_p11 = pnand %p5389_p10, %p5386_p9 }
  0xc4   : > { %5394 = shalt.err (!%p5391_p11)
}
  0xc5   : > { %s5395_s4 = scalar_lea.vmem %s840_s17, 16  ;;  %s5402_s20 = scalar_lea.vmem %s840_s17, 32 }
  0xc6   : > { %p5396_p1 = scmp.ne.s32.totalorder %s840_s17, %s5395_s4  ;;  %p5403_p13 = scmp.lt.s32.totalorder %s840_s17, %s840_s17 }
  0xc7   : > { %p5404_p0 = scmp.lt.s32.totalorder %s5402_s20, %s5395_s4 }
  0xc8   : > { %p5398_p3 = pnand %p5396_p1, %p5902_p7 }
  0xc9   : > { %p5405_p2 = por %p5404_p0, %p5403_p13 }
  0xca   : > { %p5399_p12 = pneg %p5398_p3 }
  0xcc   : > { %p5406_p4 = pnand %p5405_p2, %p5399_p12 }
  0xce   : > { %5409 = shalt.err (!%p5406_p4)
}
  0xcf   : > { %5025 = dma.hbm_to_vmem [thread:$0]  (!%p5890_p5), %s6727_s29, 16, %s840_s17, [#allocation9]  }
  0xd0   : > { %s5640_s19 = smov [#allocation13]   ;;  %s5410_s24 = scalar_lea.hbm %s6729_s8, 16 }
  0xd1   : > { %s861_s27 = sshll.u32 %s5640_s19, 4  ;;  %p5411_p6 = scmp.ne.s32.totalorder %s6729_s8, %s5410_s24  ;;  %s862_s27 = int_to_ptr.vmem [resolvable:$true] %s861_s27 }
  0xd2   : > { %p5417_p10 = scmp.lt.u32.totalorder %s5410_s24, %s6729_s8 }
  0xd3   : > { %p5413_p8 = pnand %p5411_p6, %p5902_p7 }
  0xd5   : > { %p5414_p9 = pneg %p5413_p8 }
  0xd7   : > { %p5419_p11 = pnand %p5417_p10, %p5414_p9 }
  0xd9   : > { %5422 = shalt.err (!%p5419_p11)
}
  0xda   : > { %s5423_s6 = scalar_lea.vmem %s862_s27, 16  ;;  %s5430_s25 = scalar_lea.vmem %s862_s27, 32 }
  0xdb   : > { %p5424_p1 = scmp.ne.s32.totalorder %s862_s27, %s5423_s6  ;;  %p5431_p13 = scmp.lt.s32.totalorder %s862_s27, %s862_s27 }
  0xdc   : > { %p5432_p0 = scmp.lt.s32.totalorder %s5430_s25, %s5423_s6 }
  0xdd   : > { %p5426_p3 = pnand %p5424_p1, %p5902_p7 }
  0xde   : > { %p5433_p2 = por %p5432_p0, %p5431_p13 }
  0xdf   : > { %p5427_p12 = pneg %p5426_p3 }
  0xe1   : > { %p5434_p4 = pnand %p5433_p2, %p5427_p12 }
  0xe3   : > { %5437 = shalt.err (!%p5434_p4)
}
  0xe4   : > { %5031 = dma.hbm_to_vmem [thread:$0]  (!%p5890_p5), %s6729_s8, 16, %s862_s27, [#allocation12]  }
  0xe5   : > { %s4582_s17 = sadd.s32 4294967294, %s5602_s15   ;;  %s91_s30 = sadd.s32 1, %s5594_s10 }
  0xe6   : > { %p92_p7 = scmp.ge.s32.totalorder %s91_s30, 2  ;;  %s94_s16 = sadd.s32 1, %s5598_s11 }
  0xe7   : > { %s153_s4 = sadd.s32 1, %s5582_s2  ;;  %p160_p6 = scmp.ne.s32.totalorder %s5582_s2, %s5578_s1 }
  0xe8   : > { %s6794_s30 = smov (%p92_p7, %s91_s30), 0  ;;  %s6796_s16 = smov (!%p92_p7, %s94_s16), %s5598_s11 }
  0xe9   : > { %6737 = sst [smem:[#allocation52_spill]] %s6794_s30  ;;  %p161_p8 = scmp.eq.s32.totalorder %s5602_s15, 0 }
  0xea   : > { %p166_p9 = scmp.ne.s32.totalorder %s5578_s1, %s5574_s28  ;;  %p96_p5 = scmp.ge.s32.totalorder %s6796_s16, 2 }
  0xeb   : > { %s765_s20 = ssub.s32 %s5594_s10, %s6794_s30  ;;  %p5990_p10 = por %p161_p8, %p160_p6 }
  0xec   : > { %p6739_p11 = scmp.ne.s32.totalorder %s6733_s18, 0  ;;  %s6798_s16 = smov (%p96_p5, %s6796_s16), 0 }
  0xed   : > { %6741 = sst [smem:[#allocation53_spill]] %s6798_s16  ;;  %s769_s24 = sadd.s32 1, %s5570_s26 }
  0xee   : > { %p5996_p1 = por %p6739_p11, %p166_p9  ;;  %p779_p3 = scmp.ne.s32.totalorder %s5570_s26, %s5566_s23 }
  0xef   : > { %s150_s28 = ssub.s32 %s5598_s11, %s6798_s16  ;;  %s6742_s6 = sadd.s32 4294967295, %s5602_s15  }
  0xf0   : > { %s6740_s27 = scalar_select %p5996_p1, 1, 0 }
  0xf1   : > { %p780_p12 = scmp.eq.s32.totalorder %s6742_s6, 3  ;;  %p151_p13 = scmp.eq.s32.totalorder %s150_s28, 0 }
  0xf2   : > { %s766_s25 = sor.u32 %s765_s20, %s150_s28  ;;  %p785_p4 = scmp.ne.s32.totalorder %s5566_s23, %s5562_s22 }
  0xf3   : > { %p767_p0 = scmp.eq.s32.totalorder %s766_s25, 0  ;;  %p6009_p2 = por %p780_p12, %p779_p3 }
  0xf4   : > { %s6014_s8 = scalar_select %p151_p13, %s5582_s2, %s153_s4  }
  0xf5   : > { %s6743_s3 = scalar_select %p6009_p2, 1, 0 }
  0xf6   : > { %s6017_s21 = scalar_select %p767_p0, %s5570_s26, %s769_s24  }
  0xf7   : > { %p786_p7 = scmp.eq.s32.totalorder %s4582_s17, 3  ;;  %p5046_p6 = scmp.lt.s32.totalorder %s5602_s15, 4 }
  0xf8   : > { %s952_s29 = sand.u32 1, %s5582_s2   ;;  %s4592_s28 = sshll.u32 %s5598_s11, 6 }
  0xf9   : > { %p6023_p8 = por %p786_p7, %p785_p4  ;;  %s4591_s20 = sshll.u32 %s952_s29, 2 }
  0xfa   : > { %s6029_s25 = scalar_lea.hbm %s6726_s13, %s4592_s28  ;;  %s956_s4 = scalar_lea.vmem [#allocation2], %s4591_s20 }
  0xfb   : > { %s6744_s6 = scalar_select %p6023_p8, 1, 0 }
  0xfc   : > { %s963_s24 = sshll.u32 %s956_s4, 4  ;;  %p6033_p9 = pnand %p5046_p6, %p5990_p10  ;;  %s6037_s24 = int_to_ptr.vmem [resolvable:$true] %s963_s24 }
  0xfd   : > { %s953_s16 = scalar_lea.sflag [#allocation3], %s952_s29  ;;  %s5438_s30 = scalar_lea.hbm %s6029_s25, 64 }
  0xfe   : > { %p5439_p5 = scmp.ne.s32.totalorder %s6029_s25, %s5438_s30  ;;  %p5440_p11 = pneg %p6033_p9 }
  0xff   : > { %s5443_s20 = scalar_lea.hbm %s6726_s13, 128  ;;  %p5444_p13 = scmp.lt.u32.totalorder %s6029_s25, %s6726_s13 }
 0x100   : > { %p5441_p3 = pnand %p5440_p11, %p5439_p5  ;;  %p5445_p0 = scmp.lt.u32.totalorder %s5443_s20, %s5438_s30 }
 0x101   : > { %p5447_p4 = scmp.lt.u32.totalorder %s5438_s30, %s6029_s25 }
 0x102   : > { %p5442_p12 = pneg %p5441_p3  ;;  %p5446_p10 = por %p5445_p0, %p5444_p13 }
 0x104   : > { %p5448_p7 = por %p5447_p4, %p5446_p10 }
 0x106   : > { %p5449_p6 = pnand %p5448_p7, %p5442_p12 }
 0x108   : > { %5452 = shalt.err (!%p5449_p6)
}
 0x109   : > { %s5453_s29 = scalar_lea.vmem %s6037_s24, 64  ;;  %s5641_s19 = smov [#allocation2]  }
 0x10a   : > { %p5454_p8 = scmp.ne.s32.totalorder %s6037_s24, %s5453_s29  ;;  %s5458_s28 = sshll.u32 %s5641_s19, 4  ;;  %s5459_s28 = int_to_ptr.vmem [resolvable:$false] %s5458_s28 }
 0x10b   : > { %s5460_s4 = scalar_lea.vmem %s5459_s28, 128  ;;  %p5461_p5 = scmp.lt.s32.totalorder %s6037_s24, %s5459_s28 }
 0x10c   : > { %p5456_p2 = pnand %p5454_p8, %p5440_p11  ;;  %p5462_p3 = scmp.lt.s32.totalorder %s5460_s4, %s5453_s29 }
 0x10e   : > { %p5457_p1 = pneg %p5456_p2  ;;  %p5463_p13 = por %p5462_p3, %p5461_p5 }
 0x110   : > { %p5464_p0 = pnand %p5463_p13, %p5457_p1 }
 0x112   : > { %5467 = shalt.err (!%p5464_p0)
}
 0x113   : > { %5035 = dma.hbm_to_vmem [thread:$0]  (!%p6033_p9), %s6029_s25, 64, %s6037_s24, %s953_s16  }
 0x114   : > { %p6746_p12 = scmp.ne.s32.totalorder %s6734_s12, 0 }
 0x115   : > { %s974_s30 = sand.u32 (!%p6746_p12), 1, %s5578_s1   ;;  %p6747_p2 = scmp.ne.s32.totalorder (!%p6746_p12), %s6740_s27, 0 }
 0x116   : > { %972 = sbr.rel (%p6746_p12) target bundleno = 4771 (0x12a3), region = 144  ;;  %s6063_s20 = sshll.u32 (!%p6746_p12), %s974_s30, 2 }
 0x117   : > { %s975_s19 = scalar_lea.sflag (!%p6746_p12), [#allocation3], %s974_s30  ;;  %s978_s28 = scalar_lea.vmem (!%p6746_p12), [#allocation2], %s6063_s20 }
 0x11d   : > { %5541 = dma.done.wait (%p6747_p2), %s975_s19, 64  }
 0x11e   : > { %5543 = vsyncadd (%p6747_p2), %s975_s19, 4294967232  ;;  %p6748_p1 = scmp.ne.s32.totalorder %s6733_s18, 0 }
 0x120   : > { %5545 = dma.done.wait (%p6748_p1), [#allocation6], 32  }
 0x121   : > { %5547 = vsyncadd (%p6748_p1), [#allocation6], 4294967264 }
 0x122   : > { %5549 = dma.done.wait (%p6748_p1), [#allocation9], 32  }
 0x123   : > { %5551 = vsyncadd (%p6748_p1), [#allocation9], 4294967264 }
 0x124   : > { %5553 = dma.done.wait (%p6748_p1), [#allocation12], 32  }
 0x125   : > { %5555 = vsyncadd (%p6748_p1), [#allocation12], 4294967264  ;;  %s6749_s9 = sld [smem:[#allocation21_spill]]  ;;  %s6750_s5 = sld [smem:[#allocation20_spill]]  ;;  %v5642_v0 = vmov 0.0   ;;  %vm5643_vm0 = vmmov 0   ;;  %v1218_v48 = vlaneseq }
 0x126   : > { %p1089_p8 = scmp.lt.s32.totalorder %s5590_s7, 1  ;;  %4781 = vmatprep.subr.bf16.mxu0 %v5642_v0  ;;  %4789 = vmatprep.subr.bf16.mxu1 %v5642_v0  ;;  %s4604_s18 = sshll.u32 %s5586_s0, 3  ;;  %vm1125_vm1 = vcmask 261120   ;;  %v5189_v8 = vld [vmem:[%s6725_s14] sm:$0xff]   ;;  %v5190_v10 = vld [vmem:[%s6725_s14 + $0x8] sm:$0xff]   ;;  %vm2181_vm2 = vcmask 64512  }
 0x127   : > { %4785 = vmatprep.mubr.msk.bf16.mxu0 %vm5643_vm0, %v5642_v0  ;;  %4793 = vmatprep.mubr.msk.bf16.mxu1 %vm5643_vm0, %v5642_v0  ;;  %s6751_s17 = sld [smem:[#allocation31_spill]]  ;;  %s6752_s29 = sld [smem:[#allocation33_spill]]  ;;  %v6117_v50 = vshrl.u32 %v1218_v48, 7  ;;  %v4609_v53 = vld [vmem:[#allocation5] ss:$0 sm:$0xff]  ;;  %vm2366_vm3 = vcmask 130048  }
 0x128   : > { %s1090_s12 = scalar_select %p1089_p8, %s5590_s7, 1  ;;  %4782 = vmatpush3.bf16.msra.mxu0 %v5189_v8  ;;  %v4610_v60 = vld [vmem:[#allocation7] ss:$0 sm:$0xff]  ;;  %vm2737_vm4 = vcmask 195584   ;;  %vm2943_vm5 = vcmask 523264   ;;  %vm3751_vm6 = vcmask 1043456  }
 0x129   : > { %4783 = vmatprep.subr.bf16.mxu0 %v5642_v0  ;;  %s6753_s4 = sld [smem:[#allocation30_spill]]  ;;  %s6754_s30 = sld [smem:[#allocation35_spill]]  ;;  %v1220_v57 = vsub.s32 0, %v6117_v50 }
 0x12a   : > { %s4705_s16 = sshll.u32 %s1090_s12, 4  ;;  %s6755_s19 = sld [smem:[#allocation34_spill]] }
 0x12b   : > { %s1096_s27 = scalar_lea.vmem %s6749_s9, %s1090_s12  ;;  %s1093_s25 = scalar_lea.vmem %s6750_s5, %s4705_s16 }
 0x12c   : > { %s6093_s24 = scalar_lea.vmem %s1093_s25, %s4604_s18  ;;  %v1169_v1 = vld [vmem:[%s1093_s25] sm:$0xff]  ;;  %v1170_v7 = vld [vmem:[%s1093_s25 + $0x8] sm:$0xff]  ;;  %4784 = vmatpush3.bf16.msra.mxu0 %v5190_v10  ;;  %s6756_s12 = sld [smem:[#allocation32_spill]] }
 0x12d   : > { %v1099_v2 = vld [vmem:[%s1096_s27] sm:$0x1]  ;;  %v1173_v4 = vsel %vm1125_vm1, %v1169_v1, 0.0  ;;  %v1176_v9 = vsel %vm1125_vm1, %v1170_v7, 0.0  ;;  %4797 = vmatprep.subr.bf16.mxu0 %v5642_v0  ;;  %v5193_v33 = vld [vmem:[%s6751_s17 + $0x8] sm:$0xff]   ;;  %s6757_s18 = sld [smem:[#allocation36_spill]] }
 0x12e   : > { %v1172_v3 = vld [vmem:[%s6093_s24] sm:$0xff]  ;;  %v4605_v5 = vmul.f32 -1.442695, %v1099_v2  ;;  %1174 = vadd.xlane.f32.xlu0 %v1173_v4  ;;  %v5194_v34 = vld [vmem:[%s6752_s29 + $0x8] sm:$0xff]   ;;  %s5644_s16 = smov 112   ;;  %s5645_s27 = smov 120  }
 0x12f   : > { %v1224_v6 = vsel %vm1125_vm1, %v1172_v3, 0.0  ;;  %v5191_v31 = vld [vmem:[%s6751_s17] sm:$0xff]   ;;  %s6682_s25 = smov 104   ;;  %s6765_s20 = smov 104  }
 0x130   : > { %1225 = vadd.xlane.f32.xlu1 %v1224_v6  ;;  %5221 = vpow2.f32 %v4605_v5  ;;  %v5192_v32 = vld [vmem:[%s6752_s29] sm:$0xff]   ;;  %4790 = vmatpush3.bf16.msra.mxu1 %v5191_v31  ;;  %s4701_s9 = sshll.u32 %s5590_s7, 1  ;;  %p6779_p11 = scmp.ne.s32.totalorder %s6743_s3, 0 }
 0x131   : > { %4791 = vmatprep.subr.bf16.mxu1 %v5642_v0  ;;  %v1112_v52 = vld [vmem:[%s6753_s4] sm:$0x1]  ;;  %s6758_s4 = sld [smem:[#allocation37_spill]] }
 0x132   : > { %1177 = vadd.xlane.f32.xlu0 %v1176_v9  ;;  %v5195_v8 = vld [vmem:[%s6754_s30] sm:$0xff]  }
 0x134   : > { %4792 = vmatpush3.bf16.msra.mxu1 %v5193_v33 }
 0x135   : > { %4805 = vmatprep.subr.bf16.mxu1 %v5642_v0 }
 0x13a   : > { %v5222_v11 = vpop.eup %5221 }
 0x13b   : > { %v1103_v12 = vadd.f32 1.0, %v5222_v11  ;;  %v5196_v11 = vld [vmem:[%s6754_s30 + $0x8] sm:$0xff]  }
 0x13d   : > { %5223 = vrcp.f32 %v1103_v12  ;;  %v4615_v12 = vld [vmem:[%s6755_s19] ss:$0 sm:$0xff]  ;;  %s6686_s19 = smov 16  }
 0x147   : > { %v5224_v13 = vpop.eup %5223 }
 0x148   : > { %v1106_v14 = vmul.f32 %v5224_v13, %v1099_v2 }
 0x14a   : > { %v1107_v15 = vpack.c.bf16 %v1106_v14, %v1106_v14 }
 0x14c   : > { %4786 = vmatmul.mubr.msk.bf16.vlgmr.msra.gmra.mrb[0].mxu0 %vm1125_vm1, %v1107_v15 }
 0x14d   : > { %4801 = vmatprep.mubr.msk.bf16.mxu0 %vm5643_vm0, %v5642_v0  ;;  %4798 = vmatpush3.bf16.msra.mxu0 %v5192_v32  ;;  %v5647_v32 = vmov 1983009808  }
 0x14e   : > { %4799 = vmatprep.subr.bf16.mxu0 %v5642_v0  ;;  %v1452_v33 = vunpack.c.l.s4 %v5647_v32 }
 0x151   : > { %4800 = vmatpush3.bf16.msra.mxu0 %v5194_v34  ;;  %v5648_v34 = vmov 1934713408  }
 0x152   : > { %4813 = vmatprep.subr.bf16.mxu0 %v5642_v0 }
 0x1bb   : > { %v1175_v16 = vpop.xlane.xlu0 %1174 }
 0x1bc   : > { %v1180_v18 = vmul.f32 0.03125, %v1175_v16 }
 0x1bd   : > { %v1226_v17 = vpop.xlane.xlu1 %1225 }
 0x1be   : > { %v1227_v19 = vmul.f32 0.03125, %v1226_v17  ;;  %v1182_v20 = vsub.f32 %v1169_v1, %v1180_v18 }
 0x1bf   : > { %v1178_v22 = vpop.xlane.xlu0 %1177 }
 0x1c0   : > { %v1228_v21 = vsub.f32 %v1172_v3, %v1227_v19  ;;  %v1181_v23 = vmul.f32 0.03125, %v1178_v22  ;;  %v1184_v24 = vmul.f32 %v1182_v20, %v1182_v20 }
 0x1c2   : > { %v1229_v25 = vmul.f32 %v1228_v21, %v1228_v21  ;;  %v1183_v26 = vsub.f32 %v1170_v7, %v1181_v23  ;;  %v1186_v27 = vsel %vm1125_vm1, %v1184_v24, 0.0  ;;  %v4611_v23 = vld [vmem:[%s6756_s12] ss:$0 sm:$0xff]  ;;  %s6759_s12 = sld [smem:[#allocation38_spill]] }
 0x1c3   : > { %1187 = vadd.xlane.f32.xlu1 %v1186_v27  ;;  %v4619_v27 = vld [vmem:[%s6757_s18] ss:$0 sm:$0xff]  ;;  %s6684_s18 = smov 8  }
 0x1c4   : > { %v1230_v28 = vsel %vm1125_vm1, %v1229_v25, 0.0  ;;  %v1185_v29 = vmul.f32 %v1183_v26, %v1183_v26 }
 0x1c6   : > { %v1189_v30 = vsel %vm1125_vm1, %v1185_v29, 0.0 }
 0x1c7   : > { %1231 = vadd.xlane.f32.xlu1 %v1230_v28  ;;  %1190 = vadd.xlane.f32.xlu0 %v1189_v30 }
 0x21f   : > { %v1163_v35 = vpop.f32.mrb[0].mxu0 }
 0x220   : > { %v4787_v36 = vpop.f32.mrb[1].mxu0  ;;  %v1164_v55 = vadd.f32 %v1163_v35, %v1112_v52  ;;  %v1484_v35 = vunpack.c.l.s4 %v5648_v34 }
 0x221   : > { %v1166_v37 = vpop.f32.mrb[2].mxu0  ;;  %v1453_v36 = vunpack.c.0.s8 %v1452_v33 }
 0x222   : > { %v4788_v38 = vpop.f32.mrb[3].mxu0  ;;  %v1221_v2 = vrot.slane %v1164_v55, %v1220_v57 }
 0x250   : > { %v1188_v39 = vpop.xlane.xlu1 %1187 }
 0x251   : > { %v1192_v40 = vmul.f32 0.03125, %v1188_v39  ;;  %v1485_v39 = vunpack.c.0.s8 %v1484_v35 }
 0x253   : > { %v1194_v41 = vadd.f32 1e-06, %v1192_v40  ;;  %v6163_v40 = vsub.s32 %v1453_v36, %v6117_v50 }
 0x254   : > { %v1232_v42 = vpop.xlane.xlu1 %1231  ;;  %v1191_v43 = vpop.xlane.xlu0 %1190 }
 0x255   : > { %5225 = vrsqrt.f32 %v1194_v41  ;;  %v1233_v44 = vmul.f32 0.03125, %v1232_v42  ;;  %v1193_v45 = vmul.f32 0.03125, %v1191_v43 }
 0x257   : > { %v1234_v46 = vadd.f32 1e-06, %v1233_v44  ;;  %v1195_v47 = vadd.f32 1e-06, %v1193_v45 }
 0x259   : > { %5227 = vrsqrt.f32 %v1234_v46 }
 0x25a   : > { %5229 = vrsqrt.f32 %v1195_v47  ;;  %v6166_v47 = vsub.s32 %v1485_v39, %v6117_v50 }
 0x25f   : > { %v5226_v49 = vpop.eup %5225 }
 0x260   : > { %v1198_v51 = vmul.f32 %v5226_v49, %v1182_v20 }
 0x262   : > { %v1207_v56 = vmul.f32 %v4609_v53, %v1198_v51 }
 0x263   : > { %v5228_v54 = vpop.eup %5227 }
 0x264   : > { %v5230_v58 = vpop.eup %5229  ;;  %v1236_v59 = vmul.f32 %v5228_v54, %v1228_v21  ;;  %v1216_v1 = vadd.f32 %v4610_v60, %v1207_v56 }
 0x265   : > { %v1199_v61 = vmul.f32 %v5230_v58, %v1183_v26 }
 0x266   : > { %v1237_v62 = vmul.f32 %v4609_v53, %v1236_v59  ;;  %v1222_v6 = vadd.f32 %v1221_v2, %v1216_v1 }
 0x267   : > { %v1208_v63 = vmul.f32 %v4609_v53, %v1199_v61 }
 0x268   : > { %v1238_v3 = vadd.f32 %v4610_v60, %v1237_v62 }
 0x269   : > { %v1217_v4 = vadd.f32 %v4610_v60, %v1208_v63 }
 0x26a   : > { %v1239_v5 = vadd.f32 %v1238_v3, %v1221_v2 }
 0x26b   : > { %v1223_v7 = vadd.f32 %v1221_v2, %v1217_v4 }
 0x26c   : > { %v1240_v9 = vpack.c.bf16 %v1239_v5, %v1239_v5 }
 0x26d   : > { %v1307_v10 = vpack.c.bf16 %v1223_v7, %v1222_v6 }
 0x26e   : > { %4794 = vmatmul.mubr.msk.bf16.vlgmr.msra.gmra.mrb[0].mxu1 %vm1125_vm1, %v1240_v9 }
 0x26f   : > { %4802 = vmatmul.mubr.msk.bf16.vlgmr.msra.gmra.mrb[4].mxu0 %vm1125_vm1, %v1307_v10  ;;  %4806 = vmatpush3.bf16.msra.mxu1 %v5195_v8 }
 0x270   : > { %4807 = vmatprep.subr.bf16.mxu1 %v5642_v0  ;;  %4809 = vmatprep.mubr.msk.bf16.mxu1 %vm5643_vm0, %v5642_v0 }
 0x271   : > { %4815 = vmatprep.mubr.msk.bf16.mxu0 %vm5643_vm0, %v5642_v0 }
 0x273   : > { %4808 = vmatpush3.bf16.msra.mxu1 %v5196_v11 }
 0x274   : > { %4819 = vmatprep.subr.bf16.mxu1 %v5642_v0 }
 0x276   : > { %4810 = vmatmul.mubr.msk.bf16.vlgmr.msra.gmra.mrb[4].mxu1 %vm1125_vm1, %v1307_v10 }
 0x277   : > { %4821 = vmatprep.mubr.msk.bf16.mxu1 %vm5643_vm0, %v5642_v0 }
 0x341   : > { %v1301_v13 = vpop.f32.mrb[0].mxu1 }
 0x342   : > { %v1368_v14 = vpop.f32.mrb[4].mxu0  ;;  %v4795_v15 = vpop.f32.mrb[1].mxu1  ;;  %v6143_v26 = vadd.f32 %v4611_v23, %v1301_v13 }
 0x343   : > { %v1369_v16 = vadd.f32 %v4615_v12, %v1368_v14  ;;  %v4803_v17 = vpop.f32.mrb[5].mxu0  ;;  %v1304_v18 = vpop.f32.mrb[2].mxu1 }
 0x344   : > { %v1371_v19 = vpop.f32.mrb[6].mxu0  ;;  %v4796_v20 = vpop.f32.mrb[3].mxu1 }
 0x345   : > { %1597 = vrot.lane.b32.xlu1 %v1369_v16, %s5644_s16  ;;  %1591 = vrot.lane.b32.xlu0 %v1369_v16, %s5645_s27  ;;  %v4804_v21 = vpop.f32.mrb[7].mxu0  ;;  %v6137_v22 = vadd.f32 %v4615_v12, %v1371_v19 }
 0x349   : > { %1603 = vrot.lane.b32.xlu0 %v1369_v16, %s6682_s25  ;;  %1593 = vrot.lane.b32.xlu1 %v6137_v22, %s5645_s27  ;;  %v1432_v24 = vpop.f32.mrb[4].mxu1 }
 0x34a   : > { %v4811_v25 = vpop.f32.mrb[5].mxu1  ;;  %v6158_v31 = vadd.f32 %v4619_v27, %v1432_v24 }
 0x34b   : > { %v1435_v28 = vpop.f32.mrb[6].mxu1 }
 0x34c   : > { %v6146_v29 = vadd.f32 %v4619_v27, %v1435_v28  ;;  %v4812_v30 = vpop.f32.mrb[7].mxu1 }
 0x34d   : > { %1440 = vrot.lane.b32.xlu0 %v6143_v26, %s5645_s27  ;;  %1599 = vrot.lane.b32.xlu1 %v6137_v22, %s5644_s16 }
 0x351   : > { %1446 = vrot.lane.b32.xlu0 %v6143_v26, %s6682_s25  ;;  %1605 = vrot.lane.b32.xlu1 %v6137_v22, %s6682_s25 }
 0x355   : > { %1443 = vrot.lane.b32.xlu1 %v6143_v26, %s5644_s16 }
 0x359   : > { %1887 = vrot.lane.b32.xlu1 %v6158_v31, %s5645_s27 }
 0x3b7   : > { %v1598_v37 = vpop.permute.xlu1 %1597  ;;  %v1592_v38 = vpop.permute.xlu0 %1591 }
 0x3b8   : > { %v1609_v41 = vcombine.low %v1369_v16, %v1598_v37  ;;  %v1610_v42 = vcombine.high %v1369_v16, %v1598_v37 }
 0x3ba   : > { %v1617_v48 = vrot.slane %v1609_v41, %v6163_v40  ;;  %v1624_v49 = vrot.slane %v1610_v42, %v6163_v40 }
 0x3bb   : > { %v1604_v43 = vpop.permute.xlu0 %1603  ;;  %v1594_v44 = vpop.permute.xlu1 %1593 }
 0x3bc   : > { %v1625_v45 = vcombine.low %v1592_v38, %v1604_v43  ;;  %v1626_v46 = vcombine.high %v1592_v38, %v1604_v43 }
 0x3be   : > { %v1633_v51 = vrot.slane %v1625_v45, %v6163_v40  ;;  %v1640_v52 = vrot.slane %v1626_v46, %v6163_v40 }
 0x3bf   : > { %v1441_v53 = vpop.permute.xlu0 %1440  ;;  %v1600_v54 = vpop.permute.xlu1 %1599 }
 0x3c0   : > { %v1641_v55 = vcombine.low %v1617_v48, %v1633_v51  ;;  %v1642_v56 = vcombine.high %v1617_v48, %v1633_v51  ;;  %v1657_v57 = vcombine.low %v1624_v49, %v1640_v52  ;;  %v1658_v58 = vcombine.high %v1624_v49, %v1640_v52 }
 0x3c1   : > { %v1677_v62 = vcombine.low %v6137_v22, %v1600_v54  ;;  %v1678_v63 = vcombine.high %v6137_v22, %v1600_v54 }
 0x3c2   : > { %v1649_v59 = vrot.slane %v1641_v55, %v6166_v47  ;;  %v1656_v60 = vrot.slane %v1642_v56, %v6166_v47  ;;  %v1665_v50 = vrot.slane %v1657_v57, %v6166_v47  ;;  %v1672_v61 = vrot.slane %v1658_v58, %v6166_v47 }
 0x3c3   : > { %v1447_v1 = vpop.permute.xlu0 %1446  ;;  %v1606_v2 = vpop.permute.xlu1 %1605  ;;  %v1685_v15 = vrot.slane %v1677_v62, %v6163_v40  ;;  %v1692_v16 = vrot.slane %v1678_v63, %v6163_v40 }
 0x3c4   : > { %v1745_v3 = vcombine.low %v1649_v59, %v1656_v60  ;;  %v4625_v4 = vcombine.high %v1649_v59, %v1656_v60  ;;  %v1761_v5 = vcombine.low %v1665_v50, %v1672_v61  ;;  %v4626_v6 = vcombine.high %v1665_v50, %v1672_v61 }
 0x3c5   : > { %v1465_v7 = vcombine.low %v1441_v53, %v1447_v1  ;;  %v1466_v8 = vcombine.high %v1441_v53, %v1447_v1  ;;  %v1693_v9 = vcombine.low %v1594_v44, %v1606_v2  ;;  %v1694_v10 = vcombine.high %v1594_v44, %v1606_v2 }
 0x3c6   : > { %v6179_v11 = vrot.slane %v1745_v3, %v6163_v40  ;;  %v6182_v12 = vrot.slane %v4625_v4, %v6163_v40  ;;  %v6185_v13 = vrot.slane %v1761_v5, %v6163_v40  ;;  %v6188_v14 = vrot.slane %v4626_v6, %v6163_v40 }
 0x3c7   : > { %v1701_v17 = vrot.slane %v1693_v9, %v6163_v40  ;;  %v1708_v18 = vrot.slane %v1694_v10, %v6163_v40  ;;  %v1444_v19 = vpop.permute.xlu1 %1443  ;;  %v1473_v20 = vrot.slane %v1465_v7, %v6163_v40  ;;  %v1480_v21 = vrot.slane %v1466_v8, %v6163_v40 }
 0x3c8   : > { %v1449_v22 = vcombine.low %v6143_v26, %v1444_v19  ;;  %v1450_v23 = vcombine.high %v6143_v26, %v1444_v19  ;;  %v1777_v33 = vcombine.low %v6179_v11, %v6182_v12  ;;  %v1793_v34 = vcombine.low %v6185_v13, %v6188_v14 }
 0x3c9   : > { %v1709_v24 = vcombine.low %v1685_v15, %v1701_v17  ;;  %v1710_v25 = vcombine.high %v1685_v15, %v1701_v17  ;;  %v1725_v27 = vcombine.low %v1692_v16, %v1708_v18  ;;  %v1726_v28 = vcombine.high %v1692_v16, %v1708_v18 }
 0x3ca   : > { %v1457_v30 = vrot.slane %v1449_v22, %v6163_v40  ;;  %v1464_v32 = vrot.slane %v1450_v23, %v6163_v40  ;;  %v1785_v50 = vrot.slane %v1777_v33, %v6166_v47  ;;  %v1801_v61 = vrot.slane %v1793_v34, %v6166_v47 }
 0x3cb   : > { %v1717_v35 = vrot.slane %v1709_v24, %v6166_v47  ;;  %v1724_v36 = vrot.slane %v1710_v25, %v6166_v47  ;;  %v1733_v26 = vrot.slane %v1725_v27, %v6166_v47  ;;  %v1740_v37 = vrot.slane %v1726_v28, %v6166_v47 }
 0x3cc   : > { %v1481_v38 = vcombine.low %v1457_v30, %v1473_v20  ;;  %v1482_v39 = vcombine.high %v1457_v30, %v1473_v20  ;;  %v1497_v41 = vcombine.low %v1464_v32, %v1480_v21  ;;  %v1498_v42 = vcombine.high %v1464_v32, %v1480_v21 }
 0x3cd   : > { %v1813_v43 = vcombine.low %v1717_v35, %v1724_v36  ;;  %v4627_v44 = vcombine.high %v1717_v35, %v1724_v36  ;;  %v1829_v45 = vcombine.low %v1733_v26, %v1740_v37  ;;  %v4628_v46 = vcombine.high %v1733_v26, %v1740_v37 }
 0x3ce   : > { %v1489_v48 = vrot.slane %v1481_v38, %v6166_v47  ;;  %v1496_v49 = vrot.slane %v1482_v39, %v6166_v47  ;;  %v1505_v51 = vrot.slane %v1497_v41, %v6166_v47  ;;  %v1512_v52 = vrot.slane %v1498_v42, %v6166_v47 }
 0x3cf   : > { %v1820_v53 = vrot.slane %v1813_v43, %v6163_v40  ;;  %v1828_v54 = vrot.slane %v4627_v44, %v6163_v40  ;;  %v1836_v55 = vrot.slane %v1829_v45, %v6163_v40  ;;  %v1844_v56 = vrot.slane %v4628_v46, %v6163_v40 }
 0x3d0   : > { %v1517_v57 = vcombine.low %v1489_v48, %v1496_v49  ;;  %v4623_v58 = vcombine.high %v1489_v48, %v1496_v49  ;;  %v1533_v59 = vcombine.low %v1505_v51, %v1512_v52  ;;  %v4624_v60 = vcombine.high %v1505_v51, %v1512_v52 }
 0x3d1   : > { %v1845_v62 = vcombine.low %v1820_v53, %v1828_v54  ;;  %v1861_v63 = vcombine.low %v1836_v55, %v1844_v56  ;;  %v1778_v7 = vcombine.high %v6179_v11, %v6182_v12  ;;  %v1794_v8 = vcombine.high %v6185_v13, %v6188_v14 }
 0x3d2   : > { %v1524_v1 = vrot.slane %v1517_v57, %v6163_v40  ;;  %v1532_v2 = vrot.slane %v4623_v58, %v6163_v40  ;;  %v1540_v3 = vrot.slane %v1533_v59, %v6163_v40  ;;  %v1548_v4 = vrot.slane %v4624_v60, %v6163_v40 }
 0x3d3   : > { %v1853_v5 = vrot.slane %v1845_v62, %v6166_v47  ;;  %v1869_v6 = vrot.slane %v1861_v63, %v6166_v47  ;;  %v1809_v15 = vcombine.low %v1785_v50, %v1801_v61  ;;  %v1810_v17 = vcombine.high %v1785_v50, %v1801_v61 }
 0x3d4   : > { %v1549_v9 = vcombine.low %v1524_v1, %v1532_v2  ;;  %v1565_v10 = vcombine.low %v1540_v3, %v1548_v4  ;;  %v1792_v19 = vrot.slane %v1778_v7, %v6166_v47  ;;  %v1808_v20 = vrot.slane %v1794_v8, %v6166_v47  ;;  %v1888_v8 = vpop.permute.xlu1 %1887 }
 0x3d5   : > { %v1877_v16 = vcombine.low %v1853_v5, %v1869_v6  ;;  %v1878_v18 = vcombine.high %v1853_v5, %v1869_v6  ;;  %v1846_v21 = vcombine.high %v1820_v53, %v1828_v54  ;;  %v1862_v22 = vcombine.high %v1836_v55, %v1844_v56 }
 0x3d6   : > { %v1557_v11 = vrot.slane %v1549_v9, %v6166_v47  ;;  %v1573_v12 = vrot.slane %v1565_v10, %v6166_v47  ;;  %v1550_v25 = vcombine.high %v1524_v1, %v1532_v2  ;;  %v1566_v27 = vcombine.high %v1540_v3, %v1548_v4 }
 0x3d7   : > { %v1881_v23 = vpack.c.bf16 %v1877_v16, %v1809_v15  ;;  %v1882_v24 = vpack.c.bf16 %v1878_v18, %v1810_v17  ;;  %v1860_v13 = vrot.slane %v1846_v21, %v6166_v47  ;;  %v1876_v14 = vrot.slane %v1862_v22, %v6166_v47 }
 0x3d8   : > { %v1811_v32 = vcombine.low %v1792_v19, %v1808_v20  ;;  %v1812_v34 = vcombine.high %v1792_v19, %v1808_v20  ;;  %v1581_v35 = vcombine.low %v1557_v11, %v1573_v12  ;;  %v1582_v36 = vcombine.high %v1557_v11, %v1573_v12 }
 0x3d9   : > { %v2186_v28 = vsel %vm2181_vm2, %v1881_v23, 0  ;;  %v2232_v30 = vsel %vm2181_vm2, %v1882_v24, 0  ;;  %v1879_v33 = vcombine.low %v1860_v13, %v1876_v14  ;;  %v1880_v26 = vcombine.high %v1860_v13, %v1876_v14 }
 0x3da   : > { %4814 = vmatpush3.bf16.xpose.msra.mxu0 %v2186_v28  ;;  %4820 = vmatpush3.bf16.xpose.msra.mxu1 %v2232_v30  ;;  %v1585_v39 = vpack.c.bf16 %v1581_v35, %v1581_v35  ;;  %v1586_v41 = vpack.c.bf16 %v1582_v36, %v1582_v36  ;;  %v1564_v42 = vrot.slane %v1550_v25, %v6166_v47 }
 0x3db   : > { %4825 = vmatprep.subr.bf16.mxu0 %v5642_v0  ;;  %4831 = vmatprep.subr.bf16.mxu1 %v5642_v0  ;;  %v1883_v37 = vpack.c.bf16 %v1879_v33, %v1811_v32  ;;  %v1884_v38 = vpack.c.bf16 %v1880_v26, %v1812_v34  ;;  %v1580_v43 = vrot.slane %v1566_v27, %v6166_v47 }
 0x3dd   : > { %v2278_v44 = vsel %vm2181_vm2, %v1883_v37, 0  ;;  %v2324_v45 = vsel %vm2181_vm2, %v1884_v38, 0  ;;  %v1583_v46 = vcombine.low %v1564_v42, %v1580_v43  ;;  %v1584_v48 = vcombine.high %v1564_v42, %v1580_v43 }
 0x3df   : > { %v1587_v49 = vpack.c.bf16 %v1583_v46, %v1583_v46  ;;  %v1588_v51 = vpack.c.bf16 %v1584_v48, %v1584_v48 }
 0x3e1   : > { %4816 = vmatmul.mubr.msk.bf16.vlgmr.msra.gmra.mrb[8].mxu0 %vm2181_vm2, %v1585_v39  ;;  %4822 = vmatmul.mubr.msk.bf16.vlgmr.msra.gmra.mrb[8].mxu1 %vm2181_vm2, %v1586_v41 }
 0x3e2   : > { %4826 = vmatpush3.bf16.xpose.msra.mxu0 %v2278_v44  ;;  %4832 = vmatpush3.bf16.xpose.msra.mxu1 %v2324_v45 }
 0x3e3   : > { %4827 = vmatprep.mubr.msk.bf16.mxu0 %vm5643_vm0, %v5642_v0  ;;  %4833 = vmatprep.mubr.msk.bf16.mxu1 %vm5643_vm0, %v5642_v0 }
 0x3e4   : > { %4837 = vmatprep.subr.bf16.mxu0 %v5642_v0  ;;  %4843 = vmatprep.subr.bf16.mxu1 %v5642_v0 }
 0x3e9   : > { %4828 = vmatmul.mubr.msk.bf16.vlgmr.msra.gmra.mrb[12].mxu0 %vm2181_vm2, %v1587_v49  ;;  %4834 = vmatmul.mubr.msk.bf16.vlgmr.msra.gmra.mrb[12].mxu1 %vm2181_vm2, %v1588_v51 }
 0x3ea   : > { %4839 = vmatprep.mubr.msk.bf16.mxu0 %vm5643_vm0, %v5642_v0  ;;  %4845 = vmatprep.mubr.msk.bf16.mxu1 %vm5643_vm0, %v5642_v0 }
 0x4b4   : > { %v2222_v52 = vpop.f32.mrb[8].mxu0  ;;  %v2268_v53 = vpop.f32.mrb[8].mxu1 }
 0x4b5   : > { %v4817_v54 = vpop.f32.mrb[9].mxu0  ;;  %v4823_v55 = vpop.f32.mrb[9].mxu1  ;;  %v2370_v56 = vsel %vm2366_vm3, %v2268_v53, -inf  ;;  %v2367_v57 = vsel %vm2366_vm3, %v2222_v52, -inf }
 0x4b6   : > { %2371 = vmax.xlane.f32.xlu0 %v2370_v56  ;;  %v2271_v58 = vpop.f32.mrb[10].mxu1  ;;  %2368 = vmax.xlane.f32.xlu1 %v2367_v57  ;;  %v2225_v59 = vpop.f32.mrb[10].mxu0 }
 0x4b7   : > { %v4818_v60 = vpop.f32.mrb[11].mxu0  ;;  %v4824_v50 = vpop.f32.mrb[11].mxu1 }
 0x4bc   : > { %v2314_v61 = vpop.f32.mrb[12].mxu0  ;;  %v2360_v62 = vpop.f32.mrb[12].mxu1 }
 0x4bd   : > { %v4829_v63 = vpop.f32.mrb[13].mxu0  ;;  %v4835_v1 = vpop.f32.mrb[13].mxu1  ;;  %v2373_v2 = vsel %vm2366_vm3, %v2314_v61, -inf  ;;  %v2376_v7 = vsel %vm2366_vm3, %v2360_v62, -inf }
 0x4be   : > { %v2363_v3 = vpop.f32.mrb[14].mxu1  ;;  %2374 = vmax.xlane.f32.xlu0 %v2373_v2  ;;  %v2317_v4 = vpop.f32.mrb[14].mxu0 }
 0x4bf   : > { %v4830_v5 = vpop.f32.mrb[15].mxu0  ;;  %v4836_v6 = vpop.f32.mrb[15].mxu1 }
 0x4c2   : > { %2377 = vmax.xlane.f32.xlu0 %v2376_v7 }
 0x4c7   : > { %1893 = vrot.lane.b32.xlu1 %v6158_v31, %s5644_s16 }
 0x4cb   : > { %1895 = vrot.lane.b32.xlu1 %v6146_v29, %s5644_s16 }
 0x4d8   : > { %1889 = vrot.lane.b32.xlu0 %v6146_v29, %s5645_s27 }
 0x543   : > { %v2372_v9 = vpop.xlane.xlu0 %2371  ;;  %v2369_v10 = vpop.xlane.xlu1 %2368 }
 0x544   : > { %v2380_v15 = vsub.f32 %v2268_v53, %v2372_v9  ;;  %v2379_v16 = vsub.f32 %v2222_v52, %v2369_v10 }
 0x546   : > { %v2385_v17 = vmul.f32 1.442695, %v2380_v15  ;;  %v2383_v18 = vmul.f32 1.442695, %v2379_v16 }
 0x547   : > { %v1894_v32 = vpop.permute.xlu1 %1893 }
 0x548   : > { %5231 = vpow2.f32 %v2385_v17  ;;  %v1905_v26 = vcombine.low %v6158_v31, %v1894_v32  ;;  %v1906_v39 = vcombine.high %v6158_v31, %v1894_v32 }
 0x549   : > { %5233 = vpow2.f32 %v2383_v18 }
 0x54a   : > { %v1913_v45 = vrot.slane %v1905_v26, %v6163_v40 }
 0x54b   : > { %v2375_v23 = vpop.xlane.xlu0 %2374  ;;  %v1896_v34 = vpop.permute.xlu1 %1895 }
 0x54c   : > { %v2381_v12 = vsub.f32 %v2314_v61, %v2375_v23  ;;  %v1973_v37 = vcombine.low %v6146_v29, %v1896_v34  ;;  %v1974_v38 = vcombine.high %v6146_v29, %v1896_v34 }
 0x54e   : > { %v2387_v14 = vmul.f32 1.442695, %v2381_v12  ;;  %v1981_v46 = vrot.slane %v1973_v37, %v6163_v40  ;;  %v1988_v51 = vrot.slane %v1974_v38, %v6163_v40 }
 0x54f   : > { %v2378_v24 = vpop.xlane.xlu0 %2377 }
 0x550   : > { %v2382_v11 = vsub.f32 %v2360_v62, %v2378_v24 }
 0x552   : > { %v6266_v19 = vpop.eup %5231  ;;  %v2389_v13 = vmul.f32 1.442695, %v2382_v11 }
 0x553   : > { %v6268_v20 = vpop.eup %5233  ;;  %v2394_v21 = vsel %vm2366_vm3, %v6266_v19, 0.0  ;;  %v1890_v33 = vpop.permute.xlu0 %1889 }
 0x554   : > { %v2391_v22 = vsel %vm2366_vm3, %v6268_v20, 0.0  ;;  %2395 = vadd.xlane.f32.xlu0 %v2394_v21  ;;  %5235 = vpow2.f32 %v2389_v13 }
 0x555   : > { %2392 = vadd.xlane.f32.xlu1 %v2391_v22  ;;  %5237 = vpow2.f32 %v2387_v14 }
 0x55e   : > { %v6278_v25 = vpop.eup %5235 }
 0x55f   : > { %v6280_v27 = vpop.eup %5237  ;;  %v2400_v28 = vsel %vm2366_vm3, %v6278_v25, 0.0 }
 0x560   : > { %v2397_v30 = vsel %vm2366_vm3, %v6280_v27, 0.0 }
 0x566   : > { %1899 = vrot.lane.b32.xlu1 %v6158_v31, %s6682_s25 }
 0x56a   : > { %1901 = vrot.lane.b32.xlu0 %v6146_v29, %s6682_s25  ;;  %v1920_v29 = vrot.slane %v1906_v39, %v6163_v40  ;;  %s6685_s25 = smov 24  }
 0x589   : > { %2401 = vadd.xlane.f32.xlu0 %v2400_v28 }
 0x58a   : > { %2398 = vadd.xlane.f32.xlu1 %v2397_v30 }
 0x5e1   : > { %v2396_v35 = vpop.xlane.xlu0 %2395 }
 0x5e2   : > { %v2393_v36 = vpop.xlane.xlu1 %2392  ;;  %5239 = vrcp.f32 %v2396_v35 }
 0x5e3   : > { %5241 = vrcp.f32 %v2393_v36 }
 0x5e5   : > { %v1902_v41 = vpop.permute.xlu0 %1901 }
 0x5e6   : > { %v1900_v42 = vpop.permute.xlu1 %1899  ;;  %v1989_v43 = vcombine.low %v1890_v33, %v1902_v41  ;;  %v1990_v44 = vcombine.high %v1890_v33, %v1902_v41 }
 0x5e7   : > { %v1921_v48 = vcombine.low %v1888_v8, %v1900_v42  ;;  %v1922_v49 = vcombine.high %v1888_v8, %v1900_v42 }
 0x5e8   : > { %v1997_v52 = vrot.slane %v1989_v43, %v6163_v40  ;;  %v2004_v53 = vrot.slane %v1990_v44, %v6163_v40 }
 0x5e9   : > { %v1929_v31 = vrot.slane %v1921_v48, %v6163_v40  ;;  %v1936_v54 = vrot.slane %v1922_v49, %v6163_v40 }
 0x5ea   : > { %v2005_v55 = vcombine.low %v1981_v46, %v1997_v52  ;;  %v2006_v56 = vcombine.high %v1981_v46, %v1997_v52  ;;  %v2021_v57 = vcombine.low %v1988_v51, %v2004_v53  ;;  %v2022_v58 = vcombine.high %v1988_v51, %v2004_v53 }
 0x5eb   : > { %v1937_v59 = vcombine.low %v1913_v45, %v1929_v31  ;;  %v1938_v60 = vcombine.high %v1913_v45, %v1929_v31  ;;  %v1953_v50 = vcombine.low %v1920_v29, %v1936_v54  ;;  %v1954_v61 = vcombine.high %v1920_v29, %v1936_v54 }
 0x5ec   : > { %v2013_v62 = vrot.slane %v2005_v55, %v6166_v47  ;;  %v2020_v63 = vrot.slane %v2006_v56, %v6166_v47  ;;  %v2029_v1 = vrot.slane %v2021_v57, %v6166_v47  ;;  %v2036_v2 = vrot.slane %v2022_v58, %v6166_v47  ;;  %v5240_v13 = vpop.eup %5239 }
 0x5ed   : > { %v1945_v3 = vrot.slane %v1937_v59, %v6166_v47  ;;  %v1952_v4 = vrot.slane %v1938_v60, %v6166_v47  ;;  %v1961_v5 = vrot.slane %v1953_v50, %v6166_v47  ;;  %v1968_v6 = vrot.slane %v1954_v61, %v6166_v47  ;;  %v5242_v32 = vpop.eup %5241 }
 0x5ee   : > { %v2109_v7 = vcombine.low %v2013_v62, %v2020_v63  ;;  %v4631_v8 = vcombine.high %v2013_v62, %v2020_v63  ;;  %v2125_v15 = vcombine.low %v2029_v1, %v2036_v2  ;;  %v4632_v16 = vcombine.high %v2029_v1, %v2036_v2 }
 0x5ef   : > { %v2041_v9 = vcombine.low %v1945_v3, %v1952_v4  ;;  %v4629_v10 = vcombine.high %v1945_v3, %v1952_v4  ;;  %v2057_v17 = vcombine.low %v1961_v5, %v1968_v6  ;;  %v4630_v18 = vcombine.high %v1961_v5, %v1968_v6 }
 0x5f0   : > { %v2116_v21 = vrot.slane %v2109_v7, %v6163_v40  ;;  %v2124_v22 = vrot.slane %v4631_v8, %v6163_v40  ;;  %v2132_v11 = vrot.slane %v2125_v15, %v6163_v40  ;;  %v2140_v12 = vrot.slane %v4632_v16, %v6163_v40 }
 0x5f1   : > { %v2048_v23 = vrot.slane %v2041_v9, %v6163_v40  ;;  %v2056_v24 = vrot.slane %v4629_v10, %v6163_v40  ;;  %v2064_v14 = vrot.slane %v2057_v17, %v6163_v40  ;;  %v2072_v28 = vrot.slane %v4630_v18, %v6163_v40 }
 0x5f2   : > { %v2141_v30 = vcombine.low %v2116_v21, %v2124_v22  ;;  %v2157_v34 = vcombine.low %v2132_v11, %v2140_v12  ;;  %v2142_v38 = vcombine.high %v2116_v21, %v2124_v22  ;;  %v2158_v43 = vcombine.high %v2132_v11, %v2140_v12 }
 0x5f3   : > { %v2073_v33 = vcombine.low %v2048_v23, %v2056_v24  ;;  %v2074_v35 = vcombine.high %v2048_v23, %v2056_v24  ;;  %v2089_v36 = vcombine.low %v2064_v14, %v2072_v28  ;;  %v2090_v37 = vcombine.high %v2064_v14, %v2072_v28 }
 0x5f4   : > { %v2149_v26 = vrot.slane %v2141_v30, %v6166_v47  ;;  %v2165_v41 = vrot.slane %v2157_v34, %v6166_v47  ;;  %v2156_v46 = vrot.slane %v2142_v38, %v6166_v47  ;;  %v2172_v51 = vrot.slane %v2158_v43, %v6166_v47  ;;  %v5197_v38 = vld [vmem:[%s6758_s4] sm:$0xff]  }
 0x5f5   : > { %v2081_v39 = vrot.slane %v2073_v33, %v6166_v47  ;;  %v2088_v42 = vrot.slane %v2074_v35, %v6166_v47  ;;  %v2097_v44 = vrot.slane %v2089_v36, %v6166_v47  ;;  %v2104_v45 = vrot.slane %v2090_v37, %v6166_v47 }
 0x5f6   : > { %v2173_v48 = vcombine.low %v2149_v26, %v2165_v41  ;;  %v2174_v49 = vcombine.high %v2149_v26, %v2165_v41  ;;  %v2407_v29 = vmul.f32 %v5242_v32, %v6268_v20  ;;  %v2408_v31 = vmul.f32 %v5240_v13, %v6266_v19 }
 0x5f7   : > { %v2105_v52 = vcombine.low %v2081_v39, %v2097_v44  ;;  %v2106_v53 = vcombine.high %v2081_v39, %v2097_v44  ;;  %v2107_v54 = vcombine.low %v2088_v42, %v2104_v45  ;;  %v2108_v55 = vcombine.high %v2088_v42, %v2104_v45 }
 0x5f8   : > { %v2175_v58 = vcombine.low %v2156_v46, %v2172_v51  ;;  %v2176_v59 = vcombine.high %v2156_v46, %v2172_v51  ;;  %v2411_v60 = vpack.c.bf16 %v2407_v29, %v2407_v29  ;;  %v2412_v50 = vpack.c.bf16 %v2408_v31, %v2408_v31  ;;  %v5198_v29 = vld [vmem:[%s6758_s4 + $0x8] sm:$0xff]   ;;  %s1086_s4 = sand.u32 1, %s5566_s23  }
 0x5f9   : > { %v2177_v56 = vpack.c.bf16 %v2173_v48, %v2105_v52  ;;  %v2178_v57 = vpack.c.bf16 %v2174_v49, %v2106_v53  ;;  %s4601_s5 = sshll.u32 %s1086_s4, 3 }
 0x5fa   : > { %v2179_v61 = vpack.c.bf16 %v2175_v58, %v2107_v54  ;;  %v2180_v62 = vpack.c.bf16 %v2176_v59, %v2108_v55  ;;  %s1088_s14 = scalar_lea.vmem [#allocation14], %s4601_s5  ;;  %s5652_s5 = smov [#allocation14]  }
 0x5fb   : > { %4838 = vmatpush3.bf16.msra.mxu0 %v2177_v56  ;;  %4844 = vmatpush3.bf16.msra.mxu1 %v2178_v57  ;;  %s5472_s7 = sshll.u32 %s5652_s5, 4  ;;  %s5473_s7 = int_to_ptr.vmem [resolvable:$false] %s5472_s7 }
 0x5fc   : > { %4849 = vmatprep.subr.bf16.mxu0 %v5642_v0  ;;  %4855 = vmatprep.subr.bf16.mxu1 %v5642_v0 }
 0x5fe   : > { %4840 = vmatmul.mubr.msk.bf16.vlgmr.msra.gmra.mrb[16].mxu0 %vm2366_vm3, %v2411_v60  ;;  %4846 = vmatmul.mubr.msk.bf16.vlgmr.msra.gmra.mrb[16].mxu1 %vm2366_vm3, %v2412_v50 }
 0x5ff   : > { %4850 = vmatpush3.bf16.msra.mxu0 %v2179_v61  ;;  %4856 = vmatpush3.bf16.msra.mxu1 %v2180_v62 }
 0x600   : > { %4851 = vmatprep.mubr.msk.bf16.mxu0 %vm5643_vm0, %v5642_v0  ;;  %4857 = vmatprep.mubr.msk.bf16.mxu1 %vm5643_vm0, %v5642_v0 }
 0x601   : > { %4861 = vmatprep.subr.bf16.mxu0 %v5642_v0  ;;  %4869 = vmatprep.subr.bf16.mxu1 %v5642_v0 }
 0x616   : > { %v2402_v19 = vpop.xlane.xlu0 %2401 }
 0x617   : > { %v2399_v20 = vpop.xlane.xlu1 %2398  ;;  %5243 = vrcp.f32 %v2402_v19 }
 0x618   : > { %5245 = vrcp.f32 %v2399_v20 }
 0x621   : > { %v5244_v63 = vpop.eup %5243 }
 0x622   : > { %v5246_v1 = vpop.eup %5245  ;;  %v2410_v2 = vmul.f32 %v5244_v63, %v6278_v25 }
 0x623   : > { %v2409_v3 = vmul.f32 %v5246_v1, %v6280_v27 }
 0x624   : > { %v2414_v4 = vpack.c.bf16 %v2410_v2, %v2410_v2 }
 0x625   : > { %v2413_v5 = vpack.c.bf16 %v2409_v3, %v2409_v3 }
 0x626   : > { %4858 = vmatmul.mubr.msk.bf16.vlgmr.msra.gmra.mrb[20].mxu1 %vm2366_vm3, %v2414_v4 }
 0x627   : > { %4852 = vmatmul.mubr.msk.bf16.vlgmr.msra.gmra.mrb[20].mxu0 %vm2366_vm3, %v2413_v5  ;;  %4873 = vmatprep.mubr.msk.bf16.mxu1 %vm5643_vm0, %v5642_v0 }
 0x628   : > { %4865 = vmatprep.mubr.msk.bf16.mxu0 %vm5643_vm0, %v5642_v0  ;;  %4862 = vmatpush3.bf16.msra.mxu0 %v5197_v38 }
 0x629   : > { %4863 = vmatprep.subr.bf16.mxu0 %v5642_v0 }
 0x62c   : > { %4864 = vmatpush3.bf16.msra.mxu0 %v5198_v29 }
 0x62d   : > { %4901 = vmatprep.subr.bf16.mxu0 %v5642_v0 }
 0x6d1   : > { %v2452_v6 = vpop.f32.mrb[16].mxu0  ;;  %v2495_v7 = vpop.f32.mrb[16].mxu1 }
 0x6d2   : > { %v4841_v8 = vpop.f32.mrb[17].mxu0  ;;  %v4847_v9 = vpop.f32.mrb[17].mxu1 }
 0x6d3   : > { %v2455_v10 = vpop.f32.mrb[18].mxu0  ;;  %v2498_v25 = vpop.f32.mrb[18].mxu1 }
 0x6d4   : > { %v4842_v15 = vpop.f32.mrb[19].mxu0  ;;  %v4848_v27 = vpop.f32.mrb[19].mxu1  ;;  %v5269_v25 = vld [vmem:[%s6093_s24] sm:$0xff]  ;;  %s6762_s24 = sld [smem:[#allocation42_spill]] }
 0x6f9   : > { %v2581_v16 = vpop.f32.mrb[20].mxu1 }
 0x6fa   : > { %v2538_v17 = vpop.f32.mrb[20].mxu0  ;;  %v2603_v18 = vcombine.low %v2495_v7, %v2581_v16  ;;  %v2604_v21 = vcombine.high %v2495_v7, %v2581_v16  ;;  %v4859_v22 = vpop.f32.mrb[21].mxu1 }
 0x6fb   : > { %v2587_v23 = vcombine.low %v2452_v6, %v2538_v17  ;;  %v2588_v24 = vcombine.high %v2452_v6, %v2538_v17  ;;  %v4853_v11 = vpop.f32.mrb[21].mxu0  ;;  %v2584_v12 = vpop.f32.mrb[22].mxu1  ;;  %v4643_v6 = vld [vmem:[%s6759_s12] ss:$0 sm:$0xff]  ;;  %s6761_s12 = sld [smem:[#allocation41_spill]] }
 0x6fc   : > { %v2611_v13 = vrot.slane %v2603_v18, %v6163_v40  ;;  %v2618_v14 = vrot.slane %v2604_v21, %v6163_v40  ;;  %v2541_v28 = vpop.f32.mrb[22].mxu0  ;;  %v4860_v30 = vpop.f32.mrb[23].mxu1 }
 0x6fd   : > { %v2595_v32 = vrot.slane %v2587_v23, %v6163_v40  ;;  %v2602_v33 = vrot.slane %v2588_v24, %v6163_v40  ;;  %v4854_v34 = vpop.f32.mrb[23].mxu0  ;;  %v4647_v30 = vld [vmem:[#allocation11] ss:$0 sm:$0xff] }
 0x6ff   : > { %v2619_v35 = vcombine.low %v2595_v32, %v2611_v13  ;;  %v2620_v36 = vcombine.high %v2595_v32, %v2611_v13  ;;  %v2635_v26 = vcombine.low %v2602_v33, %v2618_v14  ;;  %v2636_v37 = vcombine.high %v2602_v33, %v2618_v14  ;;  %v4648_v33 = vld [vmem:[#allocation13] ss:$0 sm:$0xff] }
 0x701   : > { %v2627_v39 = vrot.slane %v2619_v35, %v6166_v47  ;;  %v2634_v41 = vrot.slane %v2620_v36, %v6166_v47  ;;  %v2643_v42 = vrot.slane %v2635_v26, %v6166_v47  ;;  %v2650_v43 = vrot.slane %v2636_v37, %v6166_v47  ;;  %v5201_v36 = vld [vmem:[%s6761_s12] sm:$0xff]   ;;  %v5202_v37 = vld [vmem:[%s6761_s12 + $0x8] sm:$0xff]   ;;  %v5203_v38 = vld [vmem:[%s6761_s12 + $0x10] sm:$0xff]  }
 0x703   : > { %v2655_v44 = vcombine.low %v2627_v39, %v2634_v41  ;;  %v4641_v45 = vcombine.high %v2627_v39, %v2634_v41  ;;  %v2671_v46 = vcombine.low %v2643_v42, %v2650_v43  ;;  %v4642_v48 = vcombine.high %v2643_v42, %v2650_v43  ;;  %v5204_v39 = vld [vmem:[%s6761_s12 + $0x18] sm:$0xff]   ;;  %v2807_v41 = vld [vmem:[%s978_s28] sm:$0xf]  ;;  %s6766_s28 = sld [smem:[#allocation44_spill]]  ;;  %s4383_s12 = sadd.s32 %s5586_s0, %s4701_s9 }
 0x704   : > { %s4702_s13 = sshll.u32 %s4383_s12, 7  ;;  %s4372_s9 = scalar_lea.sflag [#allocation4], %s1086_s4 }
 0x705   : > { %v2662_v49 = vrot.slane %v2655_v44, %v6163_v40  ;;  %v2670_v51 = vrot.slane %v4641_v45, %v6163_v40  ;;  %v2678_v52 = vrot.slane %v2671_v46, %v6163_v40  ;;  %v2686_v53 = vrot.slane %v4642_v48, %v6163_v40  ;;  %v4653_v46 = vld [vmem:[%s6762_s24] ss:$0 sm:$0xff]  ;;  %s6770_s24 = smov 8   ;;  %s5474_s12 = scalar_lea.vmem %s5473_s7, 256 }
 0x707   : > { %v2688_v31 = vcombine.high %v2662_v49, %v2670_v51  ;;  %v2704_v54 = vcombine.high %v2678_v52, %v2686_v53  ;;  %v2687_v55 = vcombine.low %v2662_v49, %v2670_v51  ;;  %v2703_v56 = vcombine.low %v2678_v52, %v2686_v53 }
 0x709   : > { %v2702_v57 = vrot.slane %v2688_v31, %v6166_v47  ;;  %v2718_v58 = vrot.slane %v2704_v54, %v6166_v47  ;;  %v2695_v59 = vrot.slane %v2687_v55, %v6166_v47  ;;  %v2711_v60 = vrot.slane %v2703_v56, %v6166_v47 }
 0x70b   : > { %v2721_v50 = vcombine.low %v2702_v57, %v2718_v58  ;;  %v2720_v61 = vcombine.high %v2695_v59, %v2711_v60  ;;  %v2722_v62 = vcombine.high %v2702_v57, %v2718_v58  ;;  %v2719_v19 = vcombine.low %v2695_v59, %v2711_v60 }
 0x70d   : > { %2728 = vrot.lane.b32.xlu1 %v2721_v50, %s6686_s19  ;;  %2724 = vrot.lane.b32.xlu0 %v2720_v61, %s6684_s18  ;;  %s6760_s18 = sld [smem:[#allocation39_spill]]  ;;  %s6764_s19 = sld [smem:[#allocation40_spill]] }
 0x711   : > { %2732 = vrot.lane.b32.xlu1 %v2722_v62, %s6685_s25  ;;  %s6763_s25 = sld [smem:[#allocation43_spill]] }
 0x713   : > { %v5199_v24 = vld [vmem:[%s6760_s18] sm:$0xff]   ;;  %v5200_v11 = vld [vmem:[%s6760_s18 + $0x8] sm:$0xff]  }
 0x714   : > { %4870 = vmatpush3.bf16.msra.mxu1 %v5199_v24  ;;  %v4649_v53 = vld [vmem:[%s6764_s19] ss:$0 sm:$0xff]  ;;  %s6769_s19 = smov 16  }
 0x715   : > { %4871 = vmatprep.subr.bf16.mxu1 %v5642_v0 }
 0x717   : > { %v5205_v49 = vld [vmem:[%s6763_s25] sm:$0xff]   ;;  %v5206_v54 = vld [vmem:[%s6763_s25 + $0x8] sm:$0xff]   ;;  %v5207_v56 = vld [vmem:[%s6763_s25 + $0x10] sm:$0xff]  }
 0x718   : > { %4872 = vmatpush3.bf16.msra.mxu1 %v5200_v11  ;;  %v5208_v57 = vld [vmem:[%s6763_s25 + $0x18] sm:$0xff]  }
 0x719   : > { %4877 = vmatprep.subr.bf16.mxu1 %v5642_v0 }
 0x77f   : > { %v2729_v20 = vpop.permute.xlu1 %2728  ;;  %v2725_v63 = vpop.permute.xlu0 %2724 }
 0x780   : > { %v2735_v1 = vsel %vm2181_vm2, %v2719_v19, %v2725_v63 }
 0x781   : > { %v2736_v3 = vsel %vm2366_vm3, %v2735_v1, %v2729_v20 }
 0x783   : > { %v2733_v2 = vpop.permute.xlu1 %2732 }
 0x784   : > { %v2738_v4 = vsel %vm2737_vm4, %v2736_v3, %v2733_v2 }
 0x785   : > { %v2739_v5 = vpack.c.bf16 %v2738_v4, %v2738_v4 }
 0x787   : > { %4866 = vmatmul.mubr.msk.bf16.vlgmr.msra.gmra.mrb[24].mxu0 %vm1125_vm1, %v2739_v5 }
 0x788   : > { %4903 = vmatprep.mubr.msk.bf16.mxu0 %vm5643_vm0, %v5642_v0 }
 0x85a   : > { %v2800_v7 = vpop.f32.mrb[24].mxu0 }
 0x85b   : > { %v2801_v8 = vadd.f32 %v4643_v6, %v2800_v7  ;;  %v4867_v9 = vpop.f32.mrb[25].mxu0 }
 0x85c   : > { %v2803_v10 = vpop.f32.mrb[26].mxu0 }
 0x85d   : > { %v6373_v15 = vadd.f32 %v5269_v25, %v2801_v8  ;;  %v4868_v27 = vpop.f32.mrb[27].mxu0 }
 0x85f   : > { %v2808_v16 = vsel %vm1125_vm1, %v6373_v15, 0.0 }
 0x860   : > { %2809 = vadd.xlane.f32.xlu0 %v2808_v16 }
 0x8ed   : > { %v2810_v17 = vpop.xlane.xlu0 %2809 }
 0x8ee   : > { %v2811_v18 = vmul.f32 0.03125, %v2810_v17 }
 0x8f0   : > { %v2812_v21 = vsub.f32 %v6373_v15, %v2811_v18 }
 0x8f2   : > { %v2813_v22 = vmul.f32 %v2812_v21, %v2812_v21 }
 0x8f4   : > { %v2814_v23 = vsel %vm1125_vm1, %v2813_v22, 0.0 }
 0x8f5   : > { %2815 = vadd.xlane.f32.xlu1 %v2814_v23 }
 0x982   : > { %v2816_v12 = vpop.xlane.xlu1 %2815 }
 0x983   : > { %v2817_v13 = vmul.f32 0.03125, %v2816_v12 }
 0x985   : > { %v2818_v14 = vadd.f32 1e-06, %v2817_v13 }
 0x987   : > { %5247 = vrsqrt.f32 %v2818_v14 }
 0x991   : > { %v5248_v28 = vpop.eup %5247 }
 0x992   : > { %v2820_v32 = vmul.f32 %v5248_v28, %v2812_v21 }
 0x994   : > { %v2828_v34 = vmul.f32 %v4647_v30, %v2820_v32 }
 0x996   : > { %v2836_v35 = vadd.f32 %v4648_v33, %v2828_v34 }
 0x998   : > { %v2837_v26 = vpack.c.bf16 %v2836_v35, %v2836_v35 }
 0x99a   : > { %4874 = vmatmul.mubr.msk.bf16.vlgmr.msra.gmra.mrb[24].mxu1 %vm1125_vm1, %v2837_v26 }
 0x99b   : > { %4878 = vmatpush3.bf16.msra.mxu1 %v5201_v36  ;;  %4885 = vmatprep.mubr.msk.bf16.mxu1 %vm5643_vm0, %v5642_v0 }
 0x99c   : > { %4879 = vmatprep.subr.bf16.mxu1 %v5642_v0 }
 0x99f   : > { %4880 = vmatpush3.bf16.msra.mxu1 %v5202_v37 }
 0x9a0   : > { %4881 = vmatprep.subr.bf16.mxu1 %v5642_v0 }
 0x9a3   : > { %4882 = vmatpush3.bf16.msra.mxu1 %v5203_v38 }
 0x9a4   : > { %4883 = vmatprep.subr.bf16.mxu1 %v5642_v0 }
 0x9a7   : > { %4884 = vmatpush3.bf16.msra.mxu1 %v5204_v39 }
 0x9a8   : > { %4889 = vmatprep.subr.bf16.mxu1 %v5642_v0 }
 0x9aa   : > { %4886 = vmatmul.mubr.msk.bf16.vlgmr.msra.gmra.mrb[28].mxu1 %vm2943_vm5, %v2807_v41 }
 0x9ab   : > { %4897 = vmatprep.mubr.msk.bf16.mxu1 %vm5643_vm0, %v5642_v0  ;;  %4890 = vmatpush3.bf16.msra.mxu1 %v5205_v49 }
 0x9ac   : > { %4891 = vmatprep.subr.bf16.mxu1 %v5642_v0 }
 0x9af   : > { %4892 = vmatpush3.bf16.msra.mxu1 %v5206_v54 }
 0x9b0   : > { %4893 = vmatprep.subr.bf16.mxu1 %v5642_v0 }
 0x9b3   : > { %4894 = vmatpush3.bf16.msra.mxu1 %v5207_v56 }
 0x9b4   : > { %4895 = vmatprep.subr.bf16.mxu1 %v5642_v0 }
 0x9b7   : > { %4896 = vmatpush3.bf16.msra.mxu1 %v5208_v57 }
 0x9b8   : > { %4907 = vmatprep.subr.bf16.mxu1 %v5642_v0 }
 0x9ba   : > { %4898 = vmatmul.mubr.msk.bf16.vlgmr.msra.gmra.mrb[32].mxu1 %vm2943_vm5, %v2807_v41 }
 0x9bb   : > { %4909 = vmatprep.mubr.msk.bf16.mxu1 %vm5643_vm0, %v5642_v0 }
 0xa6d   : > { %v2898_v42 = vpop.f32.mrb[24].mxu1 }
 0xa6e   : > { %v4875_v43 = vpop.f32.mrb[25].mxu1  ;;  %v2899_v55 = vadd.f32 %v4649_v53, %v2898_v42 }
 0xa6f   : > { %v2901_v44 = vpop.f32.mrb[26].mxu1 }
 0xa70   : > { %v4876_v45 = vpop.f32.mrb[27].mxu1 }
 0xa7d   : > { %v2981_v48 = vpop.f32.mrb[28].mxu1 }
 0xa7e   : > { %v2982_v51 = vadd.f32 %v4653_v46, %v2981_v48  ;;  %v4887_v52 = vpop.f32.mrb[29].mxu1 }
 0xa7f   : > { %v2984_v29 = vpop.f32.mrb[30].mxu1 }
 0xa80   : > { %3220 = vrot.lane.b32.xlu1 %v2982_v51, %s5644_s16  ;;  %3217 = vrot.lane.b32.xlu0 %v2982_v51, %s5645_s27  ;;  %v4888_v31 = vpop.f32.mrb[31].mxu1 }
 0xa84   : > { %3067 = vrot.lane.b32.xlu1 %v2899_v55, %s5645_s27  ;;  %3223 = vrot.lane.b32.xlu0 %v2982_v51, %s6765_s20 }
 0xa88   : > { %3073 = vrot.lane.b32.xlu1 %v2899_v55, %s6765_s20  ;;  %3070 = vrot.lane.b32.xlu0 %v2899_v55, %s5644_s16 }
 0xaf2   : > { %v3221_v58 = vpop.permute.xlu1 %3220  ;;  %v3218_v59 = vpop.permute.xlu0 %3217 }
 0xaf3   : > { %v3226_v60 = vcombine.low %v2982_v51, %v3221_v58  ;;  %v3227_v50 = vcombine.high %v2982_v51, %v3221_v58 }
 0xaf5   : > { %v3234_v63 = vrot.slane %v3226_v60, %v6163_v40  ;;  %v3241_v1 = vrot.slane %v3227_v50, %v6163_v40 }
 0xaf6   : > { %v3068_v61 = vpop.permute.xlu1 %3067  ;;  %v3224_v62 = vpop.permute.xlu0 %3223 }
 0xaf7   : > { %v3242_v19 = vcombine.low %v3218_v59, %v3224_v62  ;;  %v3243_v20 = vcombine.high %v3218_v59, %v3224_v62 }
 0xaf9   : > { %v3250_v2 = vrot.slane %v3242_v19, %v6163_v40  ;;  %v3257_v3 = vrot.slane %v3243_v20, %v6163_v40 }
 0xafa   : > { %v3074_v4 = vpop.permute.xlu1 %3073  ;;  %v3071_v5 = vpop.permute.xlu0 %3070 }
 0xafb   : > { %v3258_v6 = vcombine.low %v3234_v63, %v3250_v2  ;;  %v3259_v7 = vcombine.high %v3234_v63, %v3250_v2  ;;  %v3274_v8 = vcombine.low %v3241_v1, %v3257_v3  ;;  %v3275_v9 = vcombine.high %v3241_v1, %v3257_v3 }
 0xafc   : > { %v3092_v10 = vcombine.low %v3068_v61, %v3074_v4  ;;  %v3093_v25 = vcombine.high %v3068_v61, %v3074_v4  ;;  %v3076_v27 = vcombine.low %v2899_v55, %v3071_v5  ;;  %v3077_v16 = vcombine.high %v2899_v55, %v3071_v5 }
 0xafd   : > { %v3266_v17 = vrot.slane %v3258_v6, %v6166_v47  ;;  %v3273_v18 = vrot.slane %v3259_v7, %v6166_v47  ;;  %v3282_v21 = vrot.slane %v3274_v8, %v6166_v47  ;;  %v3289_v22 = vrot.slane %v3275_v9, %v6166_v47 }
 0xafe   : > { %v3100_v23 = vrot.slane %v3092_v10, %v6163_v40  ;;  %v3107_v24 = vrot.slane %v3093_v25, %v6163_v40  ;;  %v3084_v11 = vrot.slane %v3076_v27, %v6163_v40  ;;  %v3091_v12 = vrot.slane %v3077_v16, %v6163_v40 }
 0xaff   : > { %v3294_v13 = vcombine.low %v3266_v17, %v3273_v18  ;;  %v4667_v14 = vcombine.high %v3266_v17, %v3273_v18  ;;  %v3310_v28 = vcombine.low %v3282_v21, %v3289_v22  ;;  %v4668_v30 = vcombine.high %v3282_v21, %v3289_v22 }
 0xb00   : > { %v3108_v32 = vcombine.low %v3084_v11, %v3100_v23  ;;  %v3109_v33 = vcombine.high %v3084_v11, %v3100_v23  ;;  %v3124_v34 = vcombine.low %v3091_v12, %v3107_v24  ;;  %v3125_v35 = vcombine.high %v3091_v12, %v3107_v24 }
 0xb01   : > { %v3301_v36 = vrot.slane %v3294_v13, %v6163_v40  ;;  %v3309_v26 = vrot.slane %v4667_v14, %v6163_v40  ;;  %v3317_v37 = vrot.slane %v3310_v28, %v6163_v40  ;;  %v3325_v38 = vrot.slane %v4668_v30, %v6163_v40  ;;  %v3060_v13 = vpop.f32.mrb[32].mxu1 }
 0xb02   : > { %v3116_v39 = vrot.slane %v3108_v32, %v6166_v47  ;;  %v3123_v41 = vrot.slane %v3109_v33, %v6166_v47  ;;  %v3132_v42 = vrot.slane %v3124_v34, %v6166_v47  ;;  %v3139_v43 = vrot.slane %v3125_v35, %v6166_v47  ;;  %v4899_v14 = vpop.f32.mrb[33].mxu1 }
 0xb03   : > { %v3326_v44 = vcombine.low %v3301_v36, %v3309_v26  ;;  %v3342_v45 = vcombine.low %v3317_v37, %v3325_v38  ;;  %v3327_v46 = vcombine.high %v3301_v36, %v3309_v26  ;;  %v3343_v48 = vcombine.high %v3317_v37, %v3325_v38  ;;  %v3063_v28 = vpop.f32.mrb[34].mxu1 }
 0xb04   : > { %v3144_v49 = vcombine.low %v3116_v39, %v3123_v41  ;;  %v4665_v51 = vcombine.high %v3116_v39, %v3123_v41  ;;  %v3160_v52 = vcombine.low %v3132_v42, %v3139_v43  ;;  %v4666_v53 = vcombine.high %v3132_v42, %v3139_v43  ;;  %v4900_v30 = vpop.f32.mrb[35].mxu1 }
 0xb05   : > { %v3334_v29 = vrot.slane %v3326_v44, %v6166_v47  ;;  %v3350_v31 = vrot.slane %v3342_v45, %v6166_v47  ;;  %v3341_v60 = vrot.slane %v3327_v46, %v6166_v47  ;;  %v3357_v50 = vrot.slane %v3343_v48, %v6166_v47 }
 0xb06   : > { %v3151_v54 = vrot.slane %v3144_v49, %v6163_v40  ;;  %v3159_v55 = vrot.slane %v4665_v51, %v6163_v40  ;;  %v3167_v56 = vrot.slane %v3160_v52, %v6163_v40  ;;  %v3175_v57 = vrot.slane %v4666_v53, %v6163_v40 }
 0xb07   : > { %v3358_v58 = vcombine.low %v3334_v29, %v3350_v31  ;;  %v3359_v59 = vcombine.high %v3334_v29, %v3350_v31  ;;  %v3360_v4 = vcombine.low %v3341_v60, %v3357_v50  ;;  %v3361_v5 = vcombine.high %v3341_v60, %v3357_v50  ;;  %v4659_v29 = vld [vmem:[%s6766_s28] ss:$0 sm:$0xff]  ;;  %s6772_s28 = sld [smem:[#allocation47_spill]] }
 0xb08   : > { %v3176_v61 = vcombine.low %v3151_v54, %v3159_v55  ;;  %v3192_v62 = vcombine.low %v3167_v56, %v3175_v57  ;;  %v3177_v6 = vcombine.high %v3151_v54, %v3159_v55  ;;  %v3193_v7 = vcombine.high %v3167_v56, %v3175_v57 }
 0xb09   : > { %v3362_v19 = vpack.c.bf16 %v3358_v58, %v3358_v58  ;;  %v3363_v20 = vpack.c.bf16 %v3359_v59, %v3359_v59  ;;  %v3364_v10 = vpack.c.bf16 %v3360_v4, %v3360_v4  ;;  %v3365_v25 = vpack.c.bf16 %v3361_v5, %v3361_v5 }
 0xb0a   : > { %v3184_v63 = vrot.slane %v3176_v61, %v6166_v47  ;;  %v3200_v1 = vrot.slane %v3192_v62, %v6166_v47  ;;  %v3191_v17 = vrot.slane %v3177_v6, %v6166_v47  ;;  %v3207_v18 = vrot.slane %v3193_v7, %v6166_v47 }
 0xb0b   : > { %v3520_v2 = vsel %vm2181_vm2, %v3362_v19, 0  ;;  %v3566_v3 = vsel %vm2181_vm2, %v3363_v20, 0  ;;  %v3612_v21 = vsel %vm2181_vm2, %v3364_v10, 0  ;;  %v3658_v22 = vsel %vm2181_vm2, %v3365_v25, 0 }
 0xb0c   : > { %4902 = vmatpush3.bf16.xpose.msra.mxu0 %v3520_v2  ;;  %4908 = vmatpush3.bf16.xpose.msra.mxu1 %v3566_v3  ;;  %v3208_v8 = vcombine.low %v3184_v63, %v3200_v1  ;;  %v3209_v9 = vcombine.high %v3184_v63, %v3200_v1  ;;  %v3210_v23 = vcombine.low %v3191_v17, %v3207_v18 }
 0xb0d   : > { %4913 = vmatprep.subr.bf16.mxu0 %v5642_v0  ;;  %4919 = vmatprep.subr.bf16.mxu1 %v5642_v0  ;;  %v3211_v24 = vcombine.high %v3191_v17, %v3207_v18  ;;  %v3061_v31 = vadd.f32 %v4659_v29, %v3060_v13 }
 0xb0e   : > { %v3212_v27 = vpack.c.bf16 %v3208_v8, %v3208_v8  ;;  %v3213_v16 = vpack.c.bf16 %v3209_v9, %v3209_v9  ;;  %v3214_v11 = vpack.c.bf16 %v3210_v23, %v3210_v23 }
 0xb0f   : > { %v3215_v12 = vpack.c.bf16 %v3211_v24, %v3211_v24 }
 0xb13   : > { %4904 = vmatmul.mubr.msk.bf16.vlgmr.msra.gmra.mrb[28].mxu0 %vm2181_vm2, %v3212_v27  ;;  %4910 = vmatmul.mubr.msk.bf16.vlgmr.msra.gmra.mrb[36].mxu1 %vm2181_vm2, %v3213_v16 }
 0xb14   : > { %4914 = vmatpush3.bf16.xpose.msra.mxu0 %v3612_v21  ;;  %4920 = vmatpush3.bf16.xpose.msra.mxu1 %v3658_v22 }
 0xb15   : > { %4915 = vmatprep.mubr.msk.bf16.mxu0 %vm5643_vm0, %v5642_v0  ;;  %4921 = vmatprep.mubr.msk.bf16.mxu1 %vm5643_vm0, %v5642_v0 }
 0xb16   : > { %4925 = vmatprep.subr.bf16.mxu0 %v5642_v0  ;;  %4931 = vmatprep.subr.bf16.mxu1 %v5642_v0 }
 0xb1b   : > { %4916 = vmatmul.mubr.msk.bf16.vlgmr.msra.gmra.mrb[32].mxu0 %vm2181_vm2, %v3214_v11  ;;  %4922 = vmatmul.mubr.msk.bf16.vlgmr.msra.gmra.mrb[40].mxu1 %vm2181_vm2, %v3215_v12 }
 0xb1c   : > { %4927 = vmatprep.mubr.msk.bf16.mxu0 %vm5643_vm0, %v5642_v0  ;;  %4933 = vmatprep.mubr.msk.bf16.mxu1 %vm5643_vm0, %v5642_v0 }
 0xbe6   : > { %v3556_v32 = vpop.f32.mrb[28].mxu0  ;;  %v3602_v33 = vpop.f32.mrb[36].mxu1 }
 0xbe7   : > { %v4905_v34 = vpop.f32.mrb[29].mxu0  ;;  %v4911_v35 = vpop.f32.mrb[37].mxu1  ;;  %v3703_v36 = vsel %vm2181_vm2, %v3602_v33, -inf  ;;  %v3700_v26 = vsel %vm2181_vm2, %v3556_v32, -inf }
 0xbe8   : > { %3704 = vmax.xlane.f32.xlu1 %v3703_v36  ;;  %v3605_v37 = vpop.f32.mrb[38].mxu1  ;;  %3701 = vmax.xlane.f32.xlu0 %v3700_v26  ;;  %v3559_v38 = vpop.f32.mrb[30].mxu0 }
 0xbe9   : > { %v4906_v39 = vpop.f32.mrb[31].mxu0  ;;  %v4912_v41 = vpop.f32.mrb[39].mxu1 }
 0xbee   : > { %v3648_v42 = vpop.f32.mrb[32].mxu0  ;;  %v3694_v43 = vpop.f32.mrb[40].mxu1 }
 0xbef   : > { %v4917_v44 = vpop.f32.mrb[33].mxu0  ;;  %v4923_v45 = vpop.f32.mrb[41].mxu1  ;;  %v3706_v46 = vsel %vm2181_vm2, %v3648_v42, -inf  ;;  %v3709_v53 = vsel %vm2181_vm2, %v3694_v43, -inf }
 0xbf0   : > { %v3697_v48 = vpop.f32.mrb[42].mxu1  ;;  %3707 = vmax.xlane.f32.xlu0 %v3706_v46  ;;  %v3651_v49 = vpop.f32.mrb[34].mxu0 }
 0xbf1   : > { %v4918_v51 = vpop.f32.mrb[35].mxu0  ;;  %v4924_v52 = vpop.f32.mrb[43].mxu1 }
 0xbf4   : > { %3710 = vmax.xlane.f32.xlu0 %v3709_v53 }
 0xbf9   : > { %3370 = vrot.lane.b32.xlu1 %v3061_v31, %s5644_s16  ;;  %s6767_s16 = sld [smem:[#allocation45_spill]] }
 0xc75   : > { %v3705_v54 = vpop.xlane.xlu1 %3704  ;;  %v3702_v55 = vpop.xlane.xlu0 %3701 }
 0xc76   : > { %v3713_v56 = vsub.f32 %v3602_v33, %v3705_v54  ;;  %v3712_v57 = vsub.f32 %v3556_v32, %v3702_v55 }
 0xc78   : > { %v3718_v58 = vmul.f32 1.442695, %v3713_v56  ;;  %v3716_v59 = vmul.f32 1.442695, %v3712_v57 }
 0xc79   : > { %v3371_v8 = vpop.permute.xlu1 %3370 }
 0xc7a   : > { %5249 = vpow2.f32 %v3718_v58  ;;  %v3376_v25 = vcombine.low %v3061_v31, %v3371_v8  ;;  %v3377_v27 = vcombine.high %v3061_v31, %v3371_v8 }
 0xc7b   : > { %5251 = vpow2.f32 %v3716_v59 }
 0xc7c   : > { %v3384_v22 = vrot.slane %v3376_v25, %v6163_v40  ;;  %v3391_v23 = vrot.slane %v3377_v27, %v6163_v40 }
 0xc7d   : > { %v3708_v19 = vpop.xlane.xlu0 %3707 }
 0xc7e   : > { %v3714_v63 = vsub.f32 %v3648_v42, %v3708_v19 }
 0xc80   : > { %v3720_v2 = vmul.f32 1.442695, %v3714_v63 }
 0xc81   : > { %v3711_v20 = vpop.xlane.xlu0 %3710 }
 0xc82   : > { %v3715_v1 = vsub.f32 %v3694_v43, %v3711_v20  ;;  %5253 = vpow2.f32 %v3720_v2 }
 0xc84   : > { %v6476_v60 = vpop.eup %5249  ;;  %v3722_v3 = vmul.f32 1.442695, %v3715_v1 }
 0xc85   : > { %v6478_v50 = vpop.eup %5251  ;;  %v3727_v61 = vsel %vm2181_vm2, %v6476_v60, 0.0 }
 0xc86   : > { %3728 = vadd.xlane.f32.xlu1 %v3727_v61  ;;  %v3724_v62 = vsel %vm2181_vm2, %v6478_v50, 0.0  ;;  %5255 = vpow2.f32 %v3722_v3 }
 0xc87   : > { %3725 = vadd.xlane.f32.xlu0 %v3724_v62 }
 0xc8c   : > { %v6486_v4 = vpop.eup %5253 }
 0xc8d   : > { %v3730_v6 = vsel %vm2181_vm2, %v6486_v4, 0.0 }
 0xc90   : > { %v6488_v5 = vpop.eup %5255 }
 0xc91   : > { %v3733_v7 = vsel %vm2181_vm2, %v6488_v5, 0.0 }
 0xc97   : > { %3373 = vrot.lane.b32.xlu1 %v3061_v31, %s6765_s20  ;;  %s6771_s20 = smov 24  }
 0xc9d   : > { %3367 = vrot.lane.b32.xlu0 %v3061_v31, %s5645_s27  ;;  %s6768_s27 = sld [smem:[#allocation46_spill]] }
 0xcbb   : > { %3731 = vadd.xlane.f32.xlu1 %v3730_v6 }
 0xcbc   : > { %3734 = vadd.xlane.f32.xlu0 %v3733_v7 }
 0xd13   : > { %v3729_v9 = vpop.xlane.xlu1 %3728 }
 0xd14   : > { %v3726_v10 = vpop.xlane.xlu0 %3725  ;;  %5257 = vrcp.f32 %v3729_v9 }
 0xd15   : > { %5259 = vrcp.f32 %v3726_v10 }
 0xd17   : > { %v3374_v16 = vpop.permute.xlu1 %3373 }
 0xd18   : > { %v3368_v17 = vpop.permute.xlu0 %3367 }
 0xd19   : > { %v3392_v18 = vcombine.low %v3368_v17, %v3374_v16  ;;  %v3393_v21 = vcombine.high %v3368_v17, %v3374_v16 }
 0xd1b   : > { %v3400_v24 = vrot.slane %v3392_v18, %v6163_v40  ;;  %v3407_v11 = vrot.slane %v3393_v21, %v6163_v40 }
 0xd1d   : > { %v3408_v12 = vcombine.low %v3384_v22, %v3400_v24  ;;  %v3409_v13 = vcombine.high %v3384_v22, %v3400_v24  ;;  %v3424_v14 = vcombine.low %v3391_v23, %v3407_v11  ;;  %v3425_v28 = vcombine.high %v3391_v23, %v3407_v11 }
 0xd1e   : > { %v5258_v51 = vpop.eup %5257 }
 0xd1f   : > { %v3416_v30 = vrot.slane %v3408_v12, %v6166_v47  ;;  %v3423_v32 = vrot.slane %v3409_v13, %v6166_v47  ;;  %v3432_v33 = vrot.slane %v3424_v14, %v6166_v47  ;;  %v3439_v34 = vrot.slane %v3425_v28, %v6166_v47  ;;  %v5260_v29 = vpop.eup %5259 }
 0xd20   : > { %v3741_v57 = vmul.f32 %v5258_v51, %v6476_v60  ;;  %v3740_v58 = vmul.f32 %v5260_v29, %v6478_v50 }
 0xd21   : > { %v3444_v35 = vcombine.low %v3416_v30, %v3423_v32  ;;  %v4669_v36 = vcombine.high %v3416_v30, %v3423_v32  ;;  %v3460_v26 = vcombine.low %v3432_v33, %v3439_v34  ;;  %v4670_v37 = vcombine.high %v3432_v33, %v3439_v34 }
 0xd22   : > { %v3744_v1 = vpack.c.bf16 %v3740_v58, %v3740_v58  ;;  %v3745_v2 = vpack.c.bf16 %v3741_v57, %v3741_v57  ;;  %v5210_v58 = vld [vmem:[%s6767_s16 + $0x8] sm:$0xff]  }
 0xd23   : > { %v3451_v38 = vrot.slane %v3444_v35, %v6163_v40  ;;  %v3459_v39 = vrot.slane %v4669_v36, %v6163_v40  ;;  %v3467_v41 = vrot.slane %v3460_v26, %v6163_v40  ;;  %v3475_v42 = vrot.slane %v4670_v37, %v6163_v40 }
 0xd25   : > { %v3476_v43 = vcombine.low %v3451_v38, %v3459_v39  ;;  %v3477_v44 = vcombine.high %v3451_v38, %v3459_v39  ;;  %v3492_v45 = vcombine.low %v3467_v41, %v3475_v42  ;;  %v3493_v46 = vcombine.high %v3467_v41, %v3475_v42 }
 0xd27   : > { %v3484_v48 = vrot.slane %v3476_v43, %v6166_v47  ;;  %v3491_v49 = vrot.slane %v3477_v44, %v6166_v47  ;;  %v3500_v52 = vrot.slane %v3492_v45, %v6166_v47  ;;  %v3507_v53 = vrot.slane %v3493_v46, %v6166_v47  ;;  %v5209_v45 = vld [vmem:[%s6767_s16] sm:$0xff]   ;;  %s4387_s16 = sshll.u32 %s1088_s14, 4  ;;  %s6599_s16 = int_to_ptr.vmem [resolvable:$true] %s4387_s16 }
 0xd28   : > { %s5468_s0 = scalar_lea.vmem %s6599_s16, 128  ;;  %p5475_p7 = scmp.lt.s32.totalorder %s6599_s16, %s5473_s7 }
 0xd29   : > { %v3508_v31 = vcombine.low %v3484_v48, %v3500_v52  ;;  %v3509_v54 = vcombine.high %v3484_v48, %v3500_v52  ;;  %v3510_v55 = vcombine.low %v3491_v49, %v3507_v53  ;;  %v3511_v56 = vcombine.high %v3491_v49, %v3507_v53  ;;  %p5469_p9 = scmp.ne.s32.totalorder %s6599_s16, %s5468_s0  ;;  %p5476_p6 = scmp.lt.s32.totalorder %s5474_s12, %s5468_s0 }
 0xd2b   : > { %v3512_v59 = vpack.c.bf16 %v3508_v31, %v3508_v31  ;;  %v3513_v61 = vpack.c.bf16 %v3509_v54, %v3509_v54  ;;  %v3514_v20 = vpack.c.bf16 %v3510_v55, %v3510_v55  ;;  %v3515_v63 = vpack.c.bf16 %v3511_v56, %v3511_v56  ;;  %p5470_p10 = pnand %p5469_p9, %p6779_p11  ;;  %p5477_p5 = por %p5476_p6, %p5475_p7 }
 0xd2d   : > { %v3753_v62 = vsel %vm3751_vm6, %v3512_v59, 0  ;;  %v3799_v19 = vsel %vm3751_vm6, %v3513_v61, 0  ;;  %v3845_v60 = vsel %vm3751_vm6, %v3514_v20, 0  ;;  %v3891_v50 = vsel %vm3751_vm6, %v3515_v63, 0  ;;  %p5471_p4 = pneg %p5470_p10 }
 0xd2e   : > { %4926 = vmatpush3.bf16.msra.mxu0 %v3753_v62  ;;  %4932 = vmatpush3.bf16.msra.mxu1 %v3799_v19 }
 0xd2f   : > { %4937 = vmatprep.subr.bf16.mxu0 %v5642_v0  ;;  %4943 = vmatprep.subr.bf16.mxu1 %v5642_v0  ;;  %p5478_p3 = pnand %p5477_p5, %p5471_p4 }
 0xd31   : > { %4928 = vmatmul.mubr.msk.bf16.vlgmr.msra.gmra.mrb[36].mxu0 %vm2181_vm2, %v3744_v1  ;;  %4934 = vmatmul.mubr.msk.bf16.vlgmr.msra.gmra.mrb[44].mxu1 %vm2181_vm2, %v3745_v2 }
 0xd32   : > { %4938 = vmatpush3.bf16.msra.mxu0 %v3845_v60  ;;  %4944 = vmatpush3.bf16.msra.mxu1 %v3891_v50 }
 0xd33   : > { %4939 = vmatprep.mubr.msk.bf16.mxu0 %vm5643_vm0, %v5642_v0  ;;  %4945 = vmatprep.mubr.msk.bf16.mxu1 %vm5643_vm0, %v5642_v0 }
 0xd34   : > { %4949 = vmatprep.subr.bf16.mxu0 %v5642_v0  ;;  %4957 = vmatprep.subr.bf16.mxu1 %v5642_v0 }
 0xd48   : > { %v3732_v3 = vpop.xlane.xlu1 %3731 }
 0xd49   : > { %5261 = vrcp.f32 %v3732_v3  ;;  %v3735_v6 = vpop.xlane.xlu0 %3734 }
 0xd4a   : > { %5263 = vrcp.f32 %v3735_v6 }
 0xd53   : > { %v5262_v7 = vpop.eup %5261 }
 0xd54   : > { %v5264_v8 = vpop.eup %5263  ;;  %v3742_v9 = vmul.f32 %v5262_v7, %v6486_v4 }
 0xd55   : > { %v3743_v10 = vmul.f32 %v5264_v8, %v6488_v5 }
 0xd56   : > { %v3746_v25 = vpack.c.bf16 %v3742_v9, %v3742_v9 }
 0xd57   : > { %v3747_v27 = vpack.c.bf16 %v3743_v10, %v3743_v10 }
 0xd58   : > { %4940 = vmatmul.mubr.msk.bf16.vlgmr.msra.gmra.mrb[40].mxu0 %vm2181_vm2, %v3746_v25 }
 0xd59   : > { %4946 = vmatmul.mubr.msk.bf16.vlgmr.msra.gmra.mrb[48].mxu1 %vm2181_vm2, %v3747_v27  ;;  %4953 = vmatprep.mubr.msk.bf16.mxu0 %vm5643_vm0, %v5642_v0  ;;  %v4681_v27 = vld [vmem:[%s6768_s27] ss:$0 sm:$0xff]  ;;  %s6775_s27 = sld [smem:[#allocation48_spill]] }
 0xd5a   : > { %4961 = vmatprep.mubr.msk.bf16.mxu1 %vm5643_vm0, %v5642_v0  ;;  %4950 = vmatpush3.bf16.msra.mxu0 %v5209_v45 }
 0xd5b   : > { %4951 = vmatprep.subr.bf16.mxu0 %v5642_v0 }
 0xd5e   : > { %4952 = vmatpush3.bf16.msra.mxu0 %v5210_v58 }
 0xd5f   : > { %4965 = vmatprep.subr.bf16.mxu0 %v5642_v0 }
 0xe04   : > { %v3789_v16 = vpop.f32.mrb[36].mxu0  ;;  %v3835_v17 = vpop.f32.mrb[44].mxu1 }
 0xe05   : > { %v4929_v18 = vpop.f32.mrb[37].mxu0  ;;  %v4935_v21 = vpop.f32.mrb[45].mxu1 }
 0xe06   : > { %v3792_v22 = vpop.f32.mrb[38].mxu0  ;;  %v3838_v4 = vpop.f32.mrb[46].mxu1 }
 0xe07   : > { %v4930_v23 = vpop.f32.mrb[39].mxu0  ;;  %v4936_v5 = vpop.f32.mrb[47].mxu1 }
 0xe2b   : > { %v3881_v24 = vpop.f32.mrb[40].mxu0 }
 0xe2c   : > { %v3933_v11 = vcombine.low %v3789_v16, %v3881_v24  ;;  %v3934_v12 = vcombine.high %v3789_v16, %v3881_v24  ;;  %v3927_v13 = vpop.f32.mrb[48].mxu1  ;;  %v4941_v14 = vpop.f32.mrb[41].mxu0 }
 0xe2d   : > { %v3949_v28 = vcombine.low %v3835_v17, %v3927_v13  ;;  %v3950_v30 = vcombine.high %v3835_v17, %v3927_v13  ;;  %v4947_v32 = vpop.f32.mrb[49].mxu1  ;;  %v3884_v33 = vpop.f32.mrb[42].mxu0  ;;  %v5211_v14 = vld [vmem:[%s6772_s28] sm:$0xff]  }
 0xe2e   : > { %v3941_v34 = vrot.slane %v3933_v11, %v6163_v40  ;;  %v3948_v35 = vrot.slane %v3934_v12, %v6163_v40  ;;  %v3930_v36 = vpop.f32.mrb[50].mxu1  ;;  %v4942_v26 = vpop.f32.mrb[43].mxu0  ;;  %4958 = vmatpush3.bf16.msra.mxu1 %v5211_v14 }
 0xe2f   : > { %v3957_v37 = vrot.slane %v3949_v28, %v6163_v40  ;;  %v3964_v38 = vrot.slane %v3950_v30, %v6163_v40  ;;  %v4948_v39 = vpop.f32.mrb[51].mxu1  ;;  %4959 = vmatprep.subr.bf16.mxu1 %v5642_v0  ;;  %v4686_v26 = vld [vmem:[#allocation10] ss:$0 sm:$0xff] }
 0xe31   : > { %v3965_v41 = vcombine.low %v3941_v34, %v3957_v37  ;;  %v3966_v42 = vcombine.high %v3941_v34, %v3957_v37  ;;  %v3981_v43 = vcombine.low %v3948_v35, %v3964_v38  ;;  %v3982_v44 = vcombine.high %v3948_v35, %v3964_v38  ;;  %v4685_v35 = vld [vmem:[#allocation8] ss:$0 sm:$0xff] }
 0xe33   : > { %v3973_v46 = vrot.slane %v3965_v41, %v6166_v47  ;;  %v3980_v48 = vrot.slane %v3966_v42, %v6166_v47  ;;  %v3989_v49 = vrot.slane %v3981_v43, %v6166_v47  ;;  %v3996_v51 = vrot.slane %v3982_v44, %v6166_v47 }
 0xe35   : > { %v4001_v52 = vcombine.low %v3973_v46, %v3980_v48  ;;  %v4679_v53 = vcombine.high %v3973_v46, %v3980_v48  ;;  %v4017_v29 = vcombine.low %v3989_v49, %v3996_v51  ;;  %v4680_v31 = vcombine.high %v3989_v49, %v3996_v51  ;;  %v4687_v49 = vld [vmem:[%s6775_s27] ss:$0 sm:$0xff] }
 0xe37   : > { %v4008_v54 = vrot.slane %v4001_v52, %v6163_v40  ;;  %v4016_v55 = vrot.slane %v4679_v53, %v6163_v40  ;;  %v4024_v56 = vrot.slane %v4017_v29, %v6163_v40  ;;  %v4032_v57 = vrot.slane %v4680_v31, %v6163_v40 }
 0xe39   : > { %v4034_v59 = vcombine.high %v4008_v54, %v4016_v55  ;;  %v4050_v61 = vcombine.high %v4024_v56, %v4032_v57  ;;  %v4033_v62 = vcombine.low %v4008_v54, %v4016_v55  ;;  %v4049_v19 = vcombine.low %v4024_v56, %v4032_v57 }
 0xe3b   : > { %v4048_v20 = vrot.slane %v4034_v59, %v6166_v47  ;;  %v4064_v63 = vrot.slane %v4050_v61, %v6166_v47  ;;  %v4041_v1 = vrot.slane %v4033_v62, %v6166_v47  ;;  %v4057_v2 = vrot.slane %v4049_v19, %v6166_v47 }
 0xe3d   : > { %v4067_v60 = vcombine.low %v4048_v20, %v4064_v63  ;;  %v4066_v50 = vcombine.high %v4041_v1, %v4057_v2  ;;  %v4068_v40 = vcombine.high %v4048_v20, %v4064_v63  ;;  %v4065_v3 = vcombine.low %v4041_v1, %v4057_v2 }
 0xe3f   : > { %4074 = vrot.lane.b32.xlu1 %v4067_v60, %s6769_s19  ;;  %4070 = vrot.lane.b32.xlu0 %v4066_v50, %s6770_s24  ;;  %s6773_s19 = smov %s6772_s28  ;;  %s6774_s24 = sld [smem:[#allocation49_spill]] }
 0xe40   : > { %v5212_v28 = vld [vmem:[%s6773_s19 + $0x8] sm:$0xff]   ;;  %s6777_s28 = sld [smem:[#allocation51_spill]] }
 0xe41   : > { %4960 = vmatpush3.bf16.msra.mxu1 %v5212_v28 }
 0xe43   : > { %4078 = vrot.lane.b32.xlu1 %v4068_v40, %s6771_s20  ;;  %s6776_s20 = sld [smem:[#allocation50_spill]] }
 0xe45   : > { %v5214_v41 = vld [vmem:[%s6774_s24 + $0x8] sm:$0xff]   ;;  %v5215_v42 = vld [vmem:[%s6774_s24 + $0x10] sm:$0xff]   ;;  %v5216_v43 = vld [vmem:[%s6774_s24 + $0x18] sm:$0xff]  }
 0xe46   : > { %v5217_v44 = vld [vmem:[%s6774_s24 + $0x20] sm:$0xff]   ;;  %v5218_v45 = vld [vmem:[%s6774_s24 + $0x28] sm:$0xff]   ;;  %v5219_v46 = vld [vmem:[%s6774_s24 + $0x30] sm:$0xff]   ;;  %s6778_s27 = smov %s6777_s28  ;;  %s6597_s17 = scalar_lea.hbm %s6777_s28, %s4702_s13 }
 0xe47   : > { %v5220_v48 = vld [vmem:[%s6774_s24 + $0x38] sm:$0xff]  }
 0xe49   : > { %v4691_v20 = vld [vmem:[%s6776_s20] ss:$0 sm:$0xff] }
 0xeb1   : > { %v4075_v6 = vpop.permute.xlu1 %4074  ;;  %v4071_v7 = vpop.permute.xlu0 %4070 }
 0xeb2   : > { %v4081_v8 = vsel %vm2181_vm2, %v4065_v3, %v4071_v7 }
 0xeb3   : > { %v4082_v10 = vsel %vm2366_vm3, %v4081_v8, %v4075_v6 }
 0xeb5   : > { %v4079_v9 = vpop.permute.xlu1 %4078 }
 0xeb6   : > { %v4083_v47 = vsel %vm2737_vm4, %v4082_v10, %v4079_v9 }
 0xeb7   : > { %v4084_v25 = vpack.c.bf16 %v4083_v47, %v4083_v47 }
 0xeb9   : > { %4954 = vmatmul.mubr.msk.bf16.vlgmr.msra.gmra.mrb[44].mxu0 %vm1125_vm1, %v4084_v25 }
 0xeba   : > { %4981 = vmatprep.mubr.msk.bf16.mxu0 %vm5643_vm0, %v5642_v0 }
 0xf8c   : > { %v4145_v16 = vpop.f32.mrb[44].mxu0 }
 0xf8d   : > { %v4146_v17 = vadd.f32 %v4681_v27, %v4145_v16  ;;  %v4955_v18 = vpop.f32.mrb[45].mxu0 }
 0xf8e   : > { %v4148_v21 = vpop.f32.mrb[46].mxu0 }
 0xf8f   : > { %v6565_v22 = vadd.f32 %v4146_v17, %v6373_v15  ;;  %v4956_v4 = vpop.f32.mrb[47].mxu0  ;;  %v5213_v15 = vld [vmem:[%s6774_s24] sm:$0xff]  }
 0xf90   : > { %4966 = vmatpush3.bf16.msra.mxu0 %v5213_v15 }
 0xf91   : > { %v4152_v23 = vsel %vm1125_vm1, %v6565_v22, 0.0  ;;  %4967 = vmatprep.subr.bf16.mxu0 %v5642_v0 }
 0xf92   : > { %4153 = vadd.xlane.f32.xlu0 %v4152_v23 }
 0xf94   : > { %4968 = vmatpush3.bf16.msra.mxu0 %v5214_v41 }
 0xf95   : > { %4969 = vmatprep.subr.bf16.mxu0 %v5642_v0 }
 0xf98   : > { %4970 = vmatpush3.bf16.msra.mxu0 %v5215_v42 }
 0xf99   : > { %4971 = vmatprep.subr.bf16.mxu0 %v5642_v0 }
 0xf9c   : > { %4972 = vmatpush3.bf16.msra.mxu0 %v5216_v43 }
 0xf9d   : > { %4973 = vmatprep.subr.bf16.mxu0 %v5642_v0 }
 0xfa0   : > { %4974 = vmatpush3.bf16.msra.mxu0 %v5217_v44 }
 0xfa1   : > { %4975 = vmatprep.subr.bf16.mxu0 %v5642_v0 }
 0xfa4   : > { %4976 = vmatpush3.bf16.msra.mxu0 %v5218_v45 }
 0xfa5   : > { %4977 = vmatprep.subr.bf16.mxu0 %v5642_v0 }
 0xfa8   : > { %4978 = vmatpush3.bf16.msra.mxu0 %v5219_v46 }
 0xfa9   : > { %4979 = vmatprep.subr.bf16.mxu0 %v5642_v0 }
 0xfac   : > { %4980 = vmatpush3.bf16.msra.mxu0 %v5220_v48 }
0x101f   : > { %v4154_v5 = vpop.xlane.xlu0 %4153 }
0x1020   : > { %v4155_v24 = vmul.f32 0.03125, %v4154_v5 }
0x1022   : > { %v4156_v11 = vsub.f32 %v6565_v22, %v4155_v24 }
0x1024   : > { %v4157_v12 = vmul.f32 %v4156_v11, %v4156_v11 }
0x1026   : > { %v4158_v13 = vsel %vm1125_vm1, %v4157_v12, 0.0 }
0x1027   : > { %4159 = vadd.xlane.f32.xlu1 %v4158_v13 }
0x10b4   : > { %v4160_v30 = vpop.xlane.xlu1 %4159 }
0x10b5   : > { %v4161_v32 = vmul.f32 0.03125, %v4160_v30 }
0x10b7   : > { %v4162_v33 = vadd.f32 1e-06, %v4161_v32 }
0x10b9   : > { %5265 = vrsqrt.f32 %v4162_v33 }
0x10c3   : > { %v5266_v34 = vpop.eup %5265 }
0x10c4   : > { %v4164_v36 = vmul.f32 %v5266_v34, %v4156_v11 }
0x10c6   : > { %v4172_v37 = vmul.f32 %v4685_v35, %v4164_v36 }
0x10c8   : > { %v4180_v38 = vadd.f32 %v4686_v26, %v4172_v37 }
0x10ca   : > { %v4181_v39 = vpack.c.bf16 %v4180_v38, %v4180_v38 }
0x10cc   : > { %4962 = vmatmul.mubr.msk.bf16.vlgmr.msra.gmra.mrb[52].mxu1 %vm1125_vm1, %v4181_v39 }
0x119f   : > { %v4242_v51 = vpop.f32.mrb[52].mxu1 }
0x11a0   : > { %v4243_v52 = vadd.f32 %v4687_v49, %v4242_v51  ;;  %v4963_v53 = vpop.f32.mrb[53].mxu1 }
0x11a1   : > { %v4245_v29 = vpop.f32.mrb[54].mxu1 }
0x11a2   : > { %v4249_v31 = vmul.f32 0.044715, %v4243_v52  ;;  %v4964_v54 = vpop.f32.mrb[55].mxu1  ;;  %v4248_v61 = vmul.f32 0.5, %v4243_v52 }
0x11a4   : > { %v4250_v55 = vmul.f32 %v4249_v31, %v4243_v52 }
0x11a6   : > { %v4251_v56 = vmul.f32 %v4250_v55, %v4243_v52 }
0x11a8   : > { %v4252_v57 = vadd.f32 %v4251_v56, %v4243_v52 }
0x11aa   : > { %v4253_v58 = vmul.f32 0.7978846, %v4252_v57 }
0x11ac   : > { %5267 = vtanh.f32 %v4253_v58 }
0x11b6   : > { %v5268_v59 = vpop.eup %5267 }
0x11b7   : > { %v4255_v0 = vadd.f32 1.0, %v5268_v59 }
0x11b9   : > { %v4256_v62 = vmul.f32 %v4255_v0, %v4248_v61 }
0x11bb   : > { %v4257_v19 = vpack.c.bf16 %v4256_v62, %v4256_v62 }
0x11bd   : > { %4982 = vmatmul.mubr.bf16.vlgmr.msra.gmra.mrb[48].mxu0 %v4257_v19 }
0x1290   : > { %v4363_v63 = vpop.f32.mrb[48].mxu0 }
0x1291   : > { %v4364_v1 = vadd.f32 %v4691_v20, %v4363_v63  ;;  %v4983_v2 = vpop.f32.mrb[49].mxu0 }
0x1292   : > { %v4366_v60 = vpop.f32.mrb[50].mxu0 }
0x1293   : > { %v4369_v50 = vadd.f32 %v4364_v1, %v6565_v22  ;;  %v4984_v40 = vpop.f32.mrb[51].mxu0 }
0x1295   : > { %4370 = vst.msk [vmem:[%s1088_s14] sm:$0xff] %vm1125_vm1, %v4369_v50 }
0x1296   : > { %5481 = shalt.err (!%p5478_p3)
}
0x1297   : > { %s5482_s13 = scalar_lea.hbm %s6597_s17, 128  ;;  %s5486_s14 = scalar_lea.hbm %s6778_s27, 512 }
0x1298   : > { %p5483_p13 = scmp.ne.s32.totalorder %s6597_s17, %s5482_s13  ;;  %p5487_p2 = scmp.lt.u32.totalorder %s6597_s17, %s6778_s27 }
0x1299   : > { %p5488_p1 = scmp.lt.u32.totalorder %s5486_s14, %s5482_s13  ;;  %p5490_p9 = scmp.lt.u32.totalorder %s5482_s13, %s6597_s17 }
0x129a   : > { %p5484_p0 = pnand %p5483_p13, %p6779_p11 }
0x129b   : > { %p5489_p8 = por %p5488_p1, %p5487_p2 }
0x129c   : > { %p5485_p12 = pneg %p5484_p0 }
0x129d   : > { %p5491_p10 = por %p5490_p9, %p5489_p8 }
0x129f   : > { %p5492_p4 = pnand %p5491_p10, %p5485_p12 }
0x12a1   : > { %5495 = shalt.err (!%p5492_p4)
}
0x12a2   : > { %5011 = dma.vmem_to_hbm [thread:$0]  (%p6779_p11), %s6599_s16, 128, %s6597_s17, %s4372_s9  }
0x12a3 PF: > { %p5053_p7 = scmp.ge.s32.totalorder %s5602_s15, 2  ;;  %s4399_s4 = sand.u32 1, %s5562_s22  }
0x12a4   : > { %p6780_p6 = scmp.ne.s32.totalorder %s6744_s6, 0  ;;  %s4400_s20 = scalar_lea.sflag [#allocation4], %s4399_s4 }
0x12a6   : > { %p5037_p5 = pnand %p5053_p7, %p6780_p6 }
0x12a8   : > { %5557 = dma.done.wait (!%p5037_p5), %s4400_s20, 128  }
0x12a9   : > { %5559 = vsyncadd (!%p5037_p5), %s4400_s20, 4294967168  ;;  %s82_s15 = sadd.s32 1, %s5602_s15   ;;  %s6781_s3 = sld [smem:[#allocation52_spill]] }
0x12aa   : > { %p79_p3 = scmp.ge.s32.totalorder %s82_s15, 6   ;;  %s6782_s17 = sld [smem:[#allocation53_spill]] }
0x12ab   : > { %s6783_s22 = smov %s5566_s23  ;;  %s6784_s23 = smov %s5570_s26 }
0x12ac   : > { %s6785_s26 = smov %s6017_s21  ;;  %s6786_s28 = smov %s5578_s1 }
0x12ad   : > { %s6787_s1 = smov %s5582_s2  ;;  %s6788_s2 = smov %s6014_s8 }
0x12ae   : > { %s6789_s0 = smov %s5594_s10  ;;  %s6790_s7 = smov %s5598_s11 }
0x12af   : > { %s6791_s10 = smov %s6781_s3  ;;  %81 = sbr.rel (!%p79_p3) target bundleno = 87 (0x57), region = 251 }
0x12b0   : > { %s6792_s11 = smov %s6782_s17 }
0x12b6   :  { %4405 = vsyncpa [#allocation3], 1 }
0x12b7   :  { %4407 = vsyncpa [#allocation3 + $0x1], 1 }
0x12b8   :  { %4408 = vsyncpa [#allocation6], 1 }
0x12b9   :  { %4409 = vsyncpa [#allocation9], 1 }
0x12ba   :  { %4410 = vsyncpa [#allocation12], 1 }
0x12bb   :  { %4411 = vsyncpa [#allocation4], 1 }
0x12bc   :  { %4413 = vsyncpa [#allocation4 + $0x1], 1 }

</bundles_post_ra>
